<compile_context>
chip_gen: v7x
topology: tpu7x:2x2x1
jax: 0.10.0
libtpu: 0.0.40
codegen_flags: <defaults>
</compile_context>

<pallas_src>
import functools

import jax
import jax.numpy as jnp
import numpy as np
from jax import lax
from jax.experimental import pallas as pl
from jax.experimental.pallas import tpu as pltpu

HID_CHANNELS = 32
KERNEL_SIZE = 4
HIDDEN_DIM = 256
STRIDE = 2
PAD = 1
CPAD = 32            # per-phase output channels padded to 32 -> 4*32 = 128 lanes
N_PHASE = 4          # output parity phases (oh % 2, ow % 2)
N_SHIFT = 9          # deduplicated padded-input shifts (row_off, col_off) in {0,1,2}^2

# Sub-pixel taps: for output parity q along one spatial dim, a ConvTranspose2d
# (k=4, s=2, p=1) output index 2*m+q only receives kernel taps k with matching
# parity, each reading the 1-padded input at padded index (off + m):
#   q=0 : (k=1, off=1), (k=3, off=0)        q=1 : (k=0, off=2), (k=2, off=1)
_TAPS = {0: ((1, 1), (3, 0)), 1: ((0, 2), (2, 1))}
_TAP1D = {q: {off: k for (k, off) in taps} for q, taps in _TAPS.items()}
_PHASES = ((0, 0), (0, 1), (1, 0), (1, 1))
_SHIFTS = tuple((ro, co) for ro in range(3) for co in range(3))


def _vmem_spec():
    return pl.BlockSpec(memory_space=pltpu.MemorySpace.VMEM)


# ----------------------- MLP head: lin1 -> lin2 -> lin3 (ReLU) -----------------------
def _mlp_kernel(z_ref, w1_ref, b1_ref, w2_ref, b2_ref, w3_ref, b3_ref, o_ref):
    h = jnp.dot(z_ref[...], w1_ref[...], preferred_element_type=jnp.float32) + b1_ref[...]
    h = jnp.maximum(h, 0.0)
    h = jnp.dot(h, w2_ref[...], preferred_element_type=jnp.float32) + b2_ref[...]
    h = jnp.maximum(h, 0.0)
    h = jnp.dot(h, w3_ref[...], preferred_element_type=jnp.float32) + b3_ref[...]
    h = jnp.maximum(h, 0.0)
    o_ref[...] = h.astype(o_ref.dtype)


def mlp_forward(z, w1, b1, w2, b2, w3, b3):
    # Whole-array VMEM residency: (B,512) activations are tiny at decoder batch
    # sizes; a batch grid would only matter for B in the many-thousands.
    B = z.shape[0]
    out_dim = w3.shape[1]
    return pl.pallas_call(
        _mlp_kernel,
        out_shape=jax.ShapeDtypeStruct((B, out_dim), jnp.float32),
        in_specs=[_vmem_spec()] * 7,
        out_specs=_vmem_spec(),
    )(z, w1, b1, w2, b2, w3, b3)


# ----------------------------- Transposed convolution --------------------------------
def _convT_gather_kernel(xp_ref, w_ref, b_ref, o_ref, *, act):
    # xp_ref: (bt, H+2, W+2, Cin) zero-padded NHWC activations
    # w_ref : (9*Cin, 4*CPAD) block-structured, shift-major weights
    # b_ref : (1, 4*CPAD) bias (tiled over phases)
    # o_ref : (bt*H*W, 4*CPAD) all 4 parity phases, full 128-lane stores
    bt, hp, wp, cin = xp_ref.shape
    H, W = hp - 2, wp - 2
    rows = bt * H * W
    acc = jnp.zeros((rows, N_PHASE * CPAD), jnp.float32)
    for s, (ro, co) in enumerate(_SHIFTS):
        # Static windowed load of one padded-input shift; W is a multiple of 8 on
        # this path so the (bt,H,W,Cin)->(rows,Cin) collapse is layout-preserving.
        xs = xp_ref[:, pl.ds(ro, H), pl.ds(co, W), :].reshape(rows, cin)
        acc = acc + jnp.dot(xs, w_ref[pl.ds(s * cin, cin), :],
                            preferred_element_type=jnp.float32)
    y = acc + b_ref[...]
    y = jnp.maximum(y, 0.0) if act == "relu" else jax.nn.sigmoid(y)
    o_ref[...] = y.astype(o_ref.dtype)


def _convT_matmul_kernel(p_ref, w_ref, b_ref, o_ref, *, act):
    # p_ref: (rows, 9*Cin) pre-gathered patch rows (only used for 4x4 inputs)
    y = jnp.dot(p_ref[...], w_ref[...], preferred_element_type=jnp.float32) + b_ref[...]
    y = jnp.maximum(y, 0.0) if act == "relu" else jax.nn.sigmoid(y)
    o_ref[...] = y.astype(o_ref.dtype)


def _batch_block(B, HW, target_rows=2048):
    """Divisor bt of B so rows = bt*HW lands near target_rows.

    Prefers >= 2 grid steps (v7x has 2 TensorCores; also enables BlockSpec
    double-buffering) whenever that still leaves >= 256 rows per step; for
    genuinely tiny batches it collapses to a single step rather than starving
    the MXU.
    """
    cap = max(1, target_rows // HW)
    divisors = [d for d in range(1, B + 1) if B % d == 0]
    fitting = [d for d in divisors if d <= cap] or [1]
    bt = max(fitting)
    if bt == B and B > 1:
        smaller = [d for d in fitting if d < B]
        if smaller and max(smaller) * HW >= 256:
            bt = max(smaller)
    return bt


def conv_transpose2d(x, w_packed, b_packed, *, act, cout):
    """nn.ConvTranspose2d(k=4, stride=2, padding=1) equivalent (NHWC in/out).

    w_packed: (9*Cin, 128) block-structured weight, b_packed: (1, 128), both
    produced once by pack_params().  `cout` (static) is the true channel count.
    """
    B, H, W, Cin = x.shape
    HW = H * W
    NL = N_PHASE * CPAD
    bt = _batch_block(B, HW)
    rows_blk = bt * HW
    xp = jnp.pad(x, ((0, 0), (1, 1), (1, 1), (0, 0)))
    cparams = pltpu.CompilerParams(dimension_semantics=("parallel",))

    if W >= 8:
        # In-kernel tap gather: HBM traffic is just the padded activations.
        out = pl.pallas_call(
            functools.partial(_convT_gather_kernel, act=act),
            out_shape=jax.ShapeDtypeStruct((B * HW, NL), jnp.float32),
            grid=(B // bt,),
            in_specs=[
                pl.BlockSpec((bt, H + 2, W + 2, Cin), lambda i: (i, 0, 0, 0)),
                pl.BlockSpec((N_SHIFT * Cin, NL), lambda i: (0, 0)),
                pl.BlockSpec((1, NL), lambda i: (0, 0)),
            ],
            out_specs=pl.BlockSpec((rows_blk, NL), lambda i: (i, 0)),
            compiler_params=cparams,
        )(xp, w_packed, b_packed)
    else:
        # 4x4 inputs only: wrapper-side gather on a tiny array (B*16 rows).
        patches = jnp.concatenate(
            [xp[:, ro:ro + H, co:co + W, :] for (ro, co) in _SHIFTS], axis=-1
        ).reshape(B * HW, N_SHIFT * Cin)
        out = pl.pallas_call(
            functools.partial(_convT_matmul_kernel, act=act),
            out_shape=jax.ShapeDtypeStruct((B * HW, NL), jnp.float32),
            grid=(B // bt,),
            in_specs=[
                pl.BlockSpec((rows_blk, N_SHIFT * Cin), lambda i: (i, 0)),
                pl.BlockSpec((N_SHIFT * Cin, NL), lambda i: (0, 0)),
                pl.BlockSpec((1, NL), lambda i: (0, 0)),
            ],
            out_specs=pl.BlockSpec((rows_blk, NL), lambda i: (i, 0)),
            compiler_params=cparams,
        )(patches, w_packed, b_packed)

    # De-interleave the 4 parity phases: lane block p = 2*qh+qw, row m*W+n holds
    # output pixel (2m+qh, 2n+qw).
    # TODO(synk): fold this de-interleave (and the next layer's pad) into the
    # next layer's in-kernel gather by keeping activations phase-major.
    y = out.reshape(B, H, W, 2, 2, CPAD)[..., :cout]
    y = jnp.transpose(y, (0, 1, 3, 2, 4, 5)).reshape(B, 2 * H, 2 * W, cout)
    return y


# ------------------------ One-time parameter packing (hoisted) ------------------------
def _permute_lin3(w3, b3):
    """Permute lin3 output columns from (c, h, w)-flat to (h, w, c)-flat so the
    MLP output reshapes straight to NHWC (no transpose between MLP and conv1)."""
    old = np.arange(HID_CHANNELS * KERNEL_SIZE * KERNEL_SIZE).reshape(
        HID_CHANNELS, KERNEL_SIZE, KERNEL_SIZE)
    perm = np.transpose(old, (1, 2, 0)).reshape(-1)
    return w3[:, perm], b3[:, perm]


def _pack_convT(wt, bias):
    """Pack PyTorch ConvTranspose2d weights (Cin, Cout, 4, 4) / (Cout,) into the
    shift-major block-structured (9*Cin, 128) weight and (1, 128) bias."""
    Cin, Cout = int(wt.shape[0]), int(wt.shape[1])
    assert Cout <= CPAD, "output channels must fit the 32-wide phase block"
    w_full = jnp.zeros((N_SHIFT * Cin, N_PHASE * CPAD), jnp.float32)
    for s, (ro, co) in enumerate(_SHIFTS):
        for p, (qh, qw) in enumerate(_PHASES):
            kh = _TAP1D[qh].get(ro)
            kw = _TAP1D[qw].get(co)
            if kh is None or kw is None:
                continue
            w_full = w_full.at[s * Cin:(s + 1) * Cin,
                               p * CPAD:p * CPAD + Cout].set(wt[:, :, kh, kw])
    b_full = jnp.tile(jnp.pad(bias, (0, CPAD - Cout)),
                      N_PHASE).reshape(1, N_PHASE * CPAD)
    return w_full, b_full


def pack_params(params, img_size):
    """Run once per model; the jitted forward consumes only pre-packed arrays."""
    w3p, b3p = _permute_lin3(*params["lin3"])
    packed = {"mlp": params["lin1"] + params["lin2"] + (w3p, b3p)}
    for name in ("convT_64", "convT1", "convT2", "convT3"):
        if name in params:
            packed[name] = _pack_convT(*params[name])
    return packed


# --------------------------------- Full decoder ---------------------------------------
def decoder_burgess_forward(z, packed, img_size):
    B = z.shape[0]
    n_chan = img_size[0]
    h = mlp_forward(z, *packed["mlp"])                               # (B, 512) NHWC-flat
    x = h.reshape(B, KERNEL_SIZE, KERNEL_SIZE, HID_CHANNELS)         # (B, 4, 4, 32) NHWC
    if img_size[1] == 64 and img_size[2] == 64:
        x = conv_transpose2d(x, *packed["convT_64"], act="relu", cout=HID_CHANNELS)
    x = conv_transpose2d(x, *packed["convT1"], act="relu", cout=HID_CHANNELS)
    x = conv_transpose2d(x, *packed["convT2"], act="relu", cout=HID_CHANNELS)
    x = conv_transpose2d(x, *packed["convT3"], act="sigmoid", cout=n_chan)
    return jnp.transpose(x, (0, 3, 1, 2))                            # back to NCHW


# -------------------------- Deterministic parameter init ------------------------------
def init_params(key, img_size, latent_dim=10):
    n_chan = img_size[0]
    out3 = int(np.prod((HID_CHANNELS, KERNEL_SIZE, KERNEL_SIZE)))
    keys = jax.random.split(key, 8)

    def linear(k, fan_in, fan_out):
        kw, kb = jax.random.split(k)
        bound = 1.0 / np.sqrt(fan_in)
        w = jax.random.uniform(kw, (fan_in, fan_out), jnp.float32, -bound, bound)
        b = jax.random.uniform(kb, (1, fan_out), jnp.float32, -bound, bound)
        return w, b

    def convT(k, cin, cout, ksize):
        kw, kb = jax.random.split(k)
        bound = 1.0 / np.sqrt(cin * ksize * ksize)
        w = jax.random.uniform(kw, (cin, cout, ksize, ksize), jnp.float32, -bound, bound)
        b = jax.random.uniform(kb, (cout,), jnp.float32, -bound, bound)
        return w, b

    params = {
        "lin1": linear(keys[0], latent_dim, HIDDEN_DIM),
        "lin2": linear(keys[1], HIDDEN_DIM, HIDDEN_DIM),
        "lin3": linear(keys[2], HIDDEN_DIM, out3),
        "convT1": convT(keys[4], HID_CHANNELS, HID_CHANNELS, KERNEL_SIZE),
        "convT2": convT(keys[5], HID_CHANNELS, HID_CHANNELS, KERNEL_SIZE),
        "convT3": convT(keys[6], HID_CHANNELS, n_chan, KERNEL_SIZE),
    }
    if img_size[1] == 64 and img_size[2] == 64:
        params["convT_64"] = convT(keys[3], HID_CHANNELS, HID_CHANNELS, KERNEL_SIZE)
    return params


# ------------------------------- Pure-JAX reference -----------------------------------
def reference_forward(z, params, img_size):
    def lin(x, w, b):
        return jnp.maximum(x @ w + b, 0.0)

    h = lin(z, *params["lin1"])
    h = lin(h, *params["lin2"])
    h = lin(h, *params["lin3"])
    x = h.reshape(z.shape[0], HID_CHANNELS, KERNEL_SIZE, KERNEL_SIZE)

    def convT(x, wt, b, act):
        K = wt.shape[2]
        rhs = jnp.transpose(jnp.flip(wt, axis=(2, 3)), (1, 0, 2, 3))  # OIHW
        y = lax.conv_general_dilated(
            x, rhs, window_strides=(1, 1),
            padding=[(K - 1 - PAD, K - 1 - PAD)] * 2,
            lhs_dilation=(STRIDE, STRIDE),
            dimension_numbers=("NCHW", "OIHW", "NCHW"))
        y = y + b.reshape(1, -1, 1, 1)
        return jnp.maximum(y, 0.0) if act == "relu" else jax.nn.sigmoid(y)

    if img_size[1] == 64 and img_size[2] == 64:
        x = convT(x, *params["convT_64"], "relu")
    x = convT(x, *params["convT1"], "relu")
    x = convT(x, *params["convT2"], "relu")
    x = convT(x, *params["convT3"], "sigmoid")
    return x


if __name__ == "__main__":
    img_size = (1, 32, 32)   # (n_chan, H, W); 32x32 path (no convT_64)
    latent_dim = 10
    batch = 2

    key = jax.random.PRNGKey(0)
    kp, kz = jax.random.split(key)
    params = init_params(kp, img_size, latent_dim)
    packed = pack_params(params, img_size)          # one-time prep (hoisted out of fwd)
    z = jax.random.normal(kz, (batch, latent_dim), jnp.float32)

    fwd = jax.jit(functools.partial(decoder_burgess_forward, img_size=img_size))
    out = jax.block_until_ready(fwd(z, packed))
    assert out.shape == (batch, *img_size), out.shape

    ref = jax.block_until_ready(reference_forward(z, params, img_size))
    np.testing.assert_allclose(np.asarray(out), np.asarray(ref), rtol=2e-4, atol=2e-4)

    print("KERNEL_OK")
</pallas_src>

<mosaic_0001>
module attributes {stable_mosaic.version = 11 : i64} {
  func.func @_mlp_kernel(%arg0: memref<2x10xf32, #tpu.memory_space<vmem>>, %arg1: memref<10x256xf32, #tpu.memory_space<vmem>>, %arg2: memref<1x256xf32, #tpu.memory_space<vmem>>, %arg3: memref<256x256xf32, #tpu.memory_space<vmem>>, %arg4: memref<1x256xf32, #tpu.memory_space<vmem>>, %arg5: memref<256x512xf32, #tpu.memory_space<vmem>>, %arg6: memref<1x512xf32, #tpu.memory_space<vmem>>, %arg7: memref<2x512xf32, #tpu.memory_space<vmem>>) attributes {dimension_semantics = [], scalar_prefetch = 0 : i64, scratch_operands = 0 : i64, tpu.core_type = #tpu.core_type<tc>} {
    %c0 = arith.constant 0 : index
    %c0_0 = arith.constant 0 : index
    %0 = vector.load %arg0[%c0, %c0_0] : memref<2x10xf32, #tpu.memory_space<vmem>>, vector<2x10xf32>
    %c0_1 = arith.constant 0 : index
    %c0_2 = arith.constant 0 : index
    %1 = vector.load %arg1[%c0_1, %c0_2] : memref<10x256xf32, #tpu.memory_space<vmem>>, vector<10x256xf32>
    %cst = arith.constant dense<0.000000e+00> : vector<2x256xf32>
    %2 = tpu.matmul %0, %1, %cst {dimension_numbers = #tpu.dot_dimension_numbers<[1], [0], [0], [1], [0, 0, 1, 1], [], []>} : vector<2x10xf32>, vector<10x256xf32>, vector<2x256xf32> -> vector<2x256xf32>
    %c0_3 = arith.constant 0 : index
    %c0_4 = arith.constant 0 : index
    %3 = vector.load %arg2[%c0_3, %c0_4] : memref<1x256xf32, #tpu.memory_space<vmem>>, vector<1x256xf32>
    %4 = vector.broadcast %3 : vector<1x256xf32> to vector<2x256xf32>
    %5 = arith.addf %2, %4 : vector<2x256xf32>
    %cst_5 = arith.constant 0.000000e+00 : f32
    %6 = vector.broadcast %cst_5 : f32 to vector<2x256xf32>
    %7 = arith.maximumf %5, %6 : vector<2x256xf32>
    %c0_6 = arith.constant 0 : index
    %c0_7 = arith.constant 0 : index
    %8 = vector.load %arg3[%c0_6, %c0_7] : memref<256x256xf32, #tpu.memory_space<vmem>>, vector<256x256xf32>
    %cst_8 = arith.constant dense<0.000000e+00> : vector<2x256xf32>
    %9 = tpu.matmul %7, %8, %cst_8 {dimension_numbers = #tpu.dot_dimension_numbers<[1], [0], [0], [1], [0, 0, 1, 1], [], []>} : vector<2x256xf32>, vector<256x256xf32>, vector<2x256xf32> -> vector<2x256xf32>
    %c0_9 = arith.constant 0 : index
    %c0_10 = arith.constant 0 : index
    %10 = vector.load %arg4[%c0_9, %c0_10] : memref<1x256xf32, #tpu.memory_space<vmem>>, vector<1x256xf32>
    %11 = vector.broadcast %10 : vector<1x256xf32> to vector<2x256xf32>
    %12 = arith.addf %9, %11 : vector<2x256xf32>
    %cst_11 = arith.constant 0.000000e+00 : f32
    %13 = vector.broadcast %cst_11 : f32 to vector<2x256xf32>
    %14 = arith.maximumf %12, %13 : vector<2x256xf32>
    %c0_12 = arith.constant 0 : index
    %c0_13 = arith.constant 0 : index
    %15 = vector.load %arg5[%c0_12, %c0_13] : memref<256x512xf32, #tpu.memory_space<vmem>>, vector<256x512xf32>
    %cst_14 = arith.constant dense<0.000000e+00> : vector<2x512xf32>
    %16 = tpu.matmul %14, %15, %cst_14 {dimension_numbers = #tpu.dot_dimension_numbers<[1], [0], [0], [1], [0, 0, 1, 1], [], []>} : vector<2x256xf32>, vector<256x512xf32>, vector<2x512xf32> -> vector<2x512xf32>
    %c0_15 = arith.constant 0 : index
    %c0_16 = arith.constant 0 : index
    %17 = vector.load %arg6[%c0_15, %c0_16] : memref<1x512xf32, #tpu.memory_space<vmem>>, vector<1x512xf32>
    %18 = vector.broadcast %17 : vector<1x512xf32> to vector<2x512xf32>
    %19 = arith.addf %16, %18 : vector<2x512xf32>
    %cst_17 = arith.constant 0.000000e+00 : f32
    %20 = vector.broadcast %cst_17 : f32 to vector<2x512xf32>
    %21 = arith.maximumf %19, %20 : vector<2x512xf32>
    %c0_18 = arith.constant 0 : index
    %c0_19 = arith.constant 0 : index
    %22 = vector.load %arg7[%c0_18, %c0_19] : memref<2x512xf32, #tpu.memory_space<vmem>>, vector<2x512xf32>
    tpu.vector_store %arg7[%c0_18, %c0_19], %21 {strides = array<i32>} : memref<2x512xf32, #tpu.memory_space<vmem>>, vector<2x512xf32>,
    return
  }
}

module attributes {stable_mosaic.version = 11 : i64} {
  func.func @_convT_matmul_kernel(%arg0: i32, %arg1: memref<32x288xf32, #tpu.memory_space<vmem>>, %arg2: memref<288x128xf32, #tpu.memory_space<vmem>>, %arg3: memref<1x128xf32, #tpu.memory_space<vmem>>, %arg4: memref<32x128xf32, #tpu.memory_space<vmem>>) attributes {dimension_semantics = [#tpu.dimension_semantics<parallel>], iteration_bounds = array<i64: 1>, scalar_prefetch = 0 : i64, scratch_operands = 0 : i64, tpu.core_type = #tpu.core_type<tc>, window_params = [{transform_indices = @transform_0, window_bounds = array<i64: 32, 288>}, {pipeline_mode = #tpu.pipeline_mode<synchronous>, transform_indices = @transform_1, window_bounds = array<i64: 288, 128>}, {pipeline_mode = #tpu.pipeline_mode<synchronous>, transform_indices = @transform_2, window_bounds = array<i64: 1, 128>}, {transform_indices = @transform_3, window_bounds = array<i64: 32, 128>}]} {
    %c0 = arith.constant 0 : index
    %c0_0 = arith.constant 0 : index
    %0 = vector.load %arg1[%c0, %c0_0] : memref<32x288xf32, #tpu.memory_space<vmem>>, vector<32x288xf32>
    %c0_1 = arith.constant 0 : index
    %c0_2 = arith.constant 0 : index
    %1 = vector.load %arg2[%c0_1, %c0_2] : memref<288x128xf32, #tpu.memory_space<vmem>>, vector<288x128xf32>
    %cst = arith.constant dense<0.000000e+00> : vector<32x128xf32>
    %2 = tpu.matmul %0, %1, %cst {dimension_numbers = #tpu.dot_dimension_numbers<[1], [0], [0], [1], [0, 0, 1, 1], [], []>} : vector<32x288xf32>, vector<288x128xf32>, vector<32x128xf32> -> vector<32x128xf32>
    %c0_3 = arith.constant 0 : index
    %c0_4 = arith.constant 0 : index
    %3 = vector.load %arg3[%c0_3, %c0_4] : memref<1x128xf32, #tpu.memory_space<vmem>>, vector<1x128xf32>
    %4 = vector.broadcast %3 : vector<1x128xf32> to vector<32x128xf32>
    %5 = arith.addf %2, %4 : vector<32x128xf32>
    %cst_5 = arith.constant 0.000000e+00 : f32
    %6 = vector.broadcast %cst_5 : f32 to vector<32x128xf32>
    %7 = arith.maximumf %5, %6 : vector<32x128xf32>
    %c0_6 = arith.constant 0 : index
    %c0_7 = arith.constant 0 : index
    %8 = vector.load %arg4[%c0_6, %c0_7] : memref<32x128xf32, #tpu.memory_space<vmem>>, vector<32x128xf32>
    tpu.vector_store %arg4[%c0_6, %c0_7], %7 {strides = array<i32>} : memref<32x128xf32, #tpu.memory_space<vmem>>, vector<32x128xf32>,
    return
  }
  func.func @transform_0(%arg0: i32) -> (i32, i32) {
    %c0_i32 = arith.constant 0 : i32
    %c0_i32_0 = arith.constant 0 : i32
    return %arg0, %c0_i32 : i32, i32
  }
  func.func @transform_1(%arg0: i32) -> (i32, i32) {
    %c0_i32 = arith.constant 0 : i32
    %c0_i32_0 = arith.constant 0 : i32
    %c0_i32_1 = arith.constant 0 : i32
    return %c0_i32, %c0_i32_0 : i32, i32
  }
  func.func @transform_2(%arg0: i32) -> (i32, i32) {
    %c0_i32 = arith.constant 0 : i32
    %c0_i32_0 = arith.constant 0 : i32
    %c0_i32_1 = arith.constant 0 : i32
    return %c0_i32, %c0_i32_0 : i32, i32
  }
  func.func @transform_3(%arg0: i32) -> (i32, i32) {
    %c0_i32 = arith.constant 0 : i32
    %c0_i32_0 = arith.constant 0 : i32
    return %arg0, %c0_i32 : i32, i32
  }
}

module attributes {stable_mosaic.version = 11 : i64} {
  func.func @_convT_gather_kernel(%arg0: i32, %arg1: memref<2x10x10x32xf32, #tpu.memory_space<vmem>>, %arg2: memref<288x128xf32, #tpu.memory_space<vmem>>, %arg3: memref<1x128xf32, #tpu.memory_space<vmem>>, %arg4: memref<128x128xf32, #tpu.memory_space<vmem>>) attributes {dimension_semantics = [#tpu.dimension_semantics<parallel>], iteration_bounds = array<i64: 1>, scalar_prefetch = 0 : i64, scratch_operands = 0 : i64, tpu.core_type = #tpu.core_type<tc>, window_params = [{transform_indices = @transform_0, window_bounds = array<i64: 2, 10, 10, 32>}, {pipeline_mode = #tpu.pipeline_mode<synchronous>, transform_indices = @transform_1, window_bounds = array<i64: 288, 128>}, {pipeline_mode = #tpu.pipeline_mode<synchronous>, transform_indices = @transform_2, window_bounds = array<i64: 1, 128>}, {transform_indices = @transform_3, window_bounds = array<i64: 128, 128>}]} {
    %cst = arith.constant 0.000000e+00 : f32
    %0 = vector.broadcast %cst : f32 to vector<128x128xf32>
    %c0 = arith.constant 0 : index
    %c0_0 = arith.constant 0 : index
    %c0_1 = arith.constant 0 : index
    %c0_2 = arith.constant 0 : index
    %1 = vector.load %arg1[%c0, %c0_0, %c0_1, %c0_2] : memref<2x10x10x32xf32, #tpu.memory_space<vmem>>, vector<2x8x8x32xf32>
    %2 = vector.shape_cast %1 : vector<2x8x8x32xf32> to vector<128x32xf32>
    %c0_3 = arith.constant 0 : index
    %c0_4 = arith.constant 0 : index
    %3 = vector.load %arg2[%c0_3, %c0_4] : memref<288x128xf32, #tpu.memory_space<vmem>>, vector<32x128xf32>
    %cst_5 = arith.constant dense<0.000000e+00> : vector<128x128xf32>
    %4 = tpu.matmul %2, %3, %cst_5 {dimension_numbers = #tpu.dot_dimension_numbers<[1], [0], [0], [1], [0, 0, 1, 1], [], []>} : vector<128x32xf32>, vector<32x128xf32>, vector<128x128xf32> -> vector<128x128xf32>
    %5 = arith.addf %0, %4 : vector<128x128xf32>
    %c0_6 = arith.constant 0 : index
    %c0_7 = arith.constant 0 : index
    %c1 = arith.constant 1 : index
    %c0_8 = arith.constant 0 : index
    %6 = vector.load %arg1[%c0_6, %c0_7, %c1, %c0_8] : memref<2x10x10x32xf32, #tpu.memory_space<vmem>>, vector<2x8x8x32xf32>
    %7 = vector.shape_cast %6 : vector<2x8x8x32xf32> to vector<128x32xf32>
    %c32 = arith.constant 32 : index
    %c0_9 = arith.constant 0 : index
    %8 = vector.load %arg2[%c32, %c0_9] : memref<288x128xf32, #tpu.memory_space<vmem>>, vector<32x128xf32>
    %cst_10 = arith.constant dense<0.000000e+00> : vector<128x128xf32>
    %9 = tpu.matmul %7, %8, %cst_10 {dimension_numbers = #tpu.dot_dimension_numbers<[1], [0], [0], [1], [0, 0, 1, 1], [], []>} : vector<128x32xf32>, vector<32x128xf32>, vector<128x128xf32> -> vector<128x128xf32>
    %10 = arith.addf %5, %9 : vector<128x128xf32>
    %c0_11 = arith.constant 0 : index
    %c0_12 = arith.constant 0 : index
    %c2 = arith.constant 2 : index
    %c0_13 = arith.constant 0 : index
    %11 = vector.load %arg1[%c0_11, %c0_12, %c2, %c0_13] : memref<2x10x10x32xf32, #tpu.memory_space<vmem>>, vector<2x8x8x32xf32>
    %12 = vector.shape_cast %11 : vector<2x8x8x32xf32> to vector<128x32xf32>
    %c64 = arith.constant 64 : index
    %c0_14 = arith.constant 0 : index
    %13 = vector.load %arg2[%c64, %c0_14] : memref<288x128xf32, #tpu.memory_space<vmem>>, vector<32x128xf32>
    %cst_15 = arith.constant dense<0.000000e+00> : vector<128x128xf32>
    %14 = tpu.matmul %12, %13, %cst_15 {dimension_numbers = #tpu.dot_dimension_numbers<[1], [0], [0], [1], [0, 0, 1, 1], [], []>} : vector<128x32xf32>, vector<32x128xf32>, vector<128x128xf32> -> vector<128x128xf32>
    %15 = arith.addf %10, %14 : vector<128x128xf32>
    %c0_16 = arith.constant 0 : index
    %c1_17 = arith.constant 1 : index
    %c0_18 = arith.constant 0 : index
    %c0_19 = arith.constant 0 : index
    %16 = vector.load %arg1[%c0_16, %c1_17, %c0_18, %c0_19] : memref<2x10x10x32xf32, #tpu.memory_space<vmem>>, vector<2x8x8x32xf32>
    %17 = vector.shape_cast %16 : vector<2x8x8x32xf32> to vector<128x32xf32>
    %c96 = arith.constant 96 : index
    %c0_20 = arith.constant 0 : index
    %18 = vector.load %arg2[%c96, %c0_20] : memref<288x128xf32, #tpu.memory_space<vmem>>, vector<32x128xf32>
    %cst_21 = arith.constant dense<0.000000e+00> : vector<128x128xf32>
    %19 = tpu.matmul %17, %18, %cst_21 {dimension_numbers = #tpu.dot_dimension_numbers<[1], [0], [0], [1], [0, 0, 1, 1], [], []>} : vector<128x32xf32>, vector<32x128xf32>, vector<128x128xf32> -> vector<128x128xf32>
    %20 = arith.addf %15, %19 : vector<128x128xf32>
    %c0_22 = arith.constant 0 : index
    %c1_23 = arith.constant 1 : index
    %c1_24 = arith.constant 1 : index
    %c0_25 = arith.constant 0 : index
    %21 = vector.load %arg1[%c0_22, %c1_23, %c1_24, %c0_25] : memref<2x10x10x32xf32, #tpu.memory_space<vmem>>, vector<2x8x8x32xf32>
    %22 = vector.shape_cast %21 : vector<2x8x8x32xf32> to vector<128x32xf32>
    %c128 = arith.constant 128 : index
    %c0_26 = arith.constant 0 : index
    %23 = vector.load %arg2[%c128, %c0_26] : memref<288x128xf32, #tpu.memory_space<vmem>>, vector<32x128xf32>
    %cst_27 = arith.constant dense<0.000000e+00> : vector<128x128xf32>
    %24 = tpu.matmul %22, %23, %cst_27 {dimension_numbers = #tpu.dot_dimension_numbers<[1], [0], [0], [1], [0, 0, 1, 1], [], []>} : vector<128x32xf32>, vector<32x128xf32>, vector<128x128xf32> -> vector<128x128xf32>
    %25 = arith.addf %20, %24 : vector<128x128xf32>
    %c0_28 = arith.constant 0 : index
    %c1_29 = arith.constant 1 : index
    %c2_30 = arith.constant 2 : index
    %c0_31 = arith.constant 0 : index
    %26 = vector.load %arg1[%c0_28, %c1_29, %c2_30, %c0_31] : memref<2x10x10x32xf32, #tpu.memory_space<vmem>>, vector<2x8x8x32xf32>
    %27 = vector.shape_cast %26 : vector<2x8x8x32xf32> to vector<128x32xf32>
    %c160 = arith.constant 160 : index
    %c0_32 = arith.constant 0 : index
    %28 = vector.load %arg2[%c160, %c0_32] : memref<288x128xf32, #tpu.memory_space<vmem>>, vector<32x128xf32>
    %cst_33 = arith.constant dense<0.000000e+00> : vector<128x128xf32>
    %29 = tpu.matmul %27, %28, %cst_33 {dimension_numbers = #tpu.dot_dimension_numbers<[1], [0], [0], [1], [0, 0, 1, 1], [], []>} : vector<128x32xf32>, vector<32x128xf32>, vector<128x128xf32> -> vector<128x128xf32>
    %30 = arith.addf %25, %29 : vector<128x128xf32>
    %c0_34 = arith.constant 0 : index
    %c2_35 = arith.constant 2 : index
    %c0_36 = arith.constant 0 : index
    %c0_37 = arith.constant 0 : index
    %31 = vector.load %arg1[%c0_34, %c2_35, %c0_36, %c0_37] : memref<2x10x10x32xf32, #tpu.memory_space<vmem>>, vector<2x8x8x32xf32>
    %32 = vector.shape_cast %31 : vector<2x8x8x32xf32> to vector<128x32xf32>
    %c192 = arith.constant 192 : index
    %c0_38 = arith.constant 0 : index
    %33 = vector.load %arg2[%c192, %c0_38] : memref<288x128xf32, #tpu.memory_space<vmem>>, vector<32x128xf32>
    %cst_39 = arith.constant dense<0.000000e+00> : vector<128x128xf32>
    %34 = tpu.matmul %32, %33, %cst_39 {dimension_numbers = #tpu.dot_dimension_numbers<[1], [0], [0], [1], [0, 0, 1, 1], [], []>} : vector<128x32xf32>, vector<32x128xf32>, vector<128x128xf32> -> vector<128x128xf32>
    %35 = arith.addf %30, %34 : vector<128x128xf32>
    %c0_40 = arith.constant 0 : index
    %c2_41 = arith.constant 2 : index
    %c1_42 = arith.constant 1 : index
    %c0_43 = arith.constant 0 : index
    %36 = vector.load %arg1[%c0_40, %c2_41, %c1_42, %c0_43] : memref<2x10x10x32xf32, #tpu.memory_space<vmem>>, vector<2x8x8x32xf32>
    %37 = vector.shape_cast %36 : vector<2x8x8x32xf32> to vector<128x32xf32>
    %c224 = arith.constant 224 : index
    %c0_44 = arith.constant 0 : index
    %38 = vector.load %arg2[%c224, %c0_44] : memref<288x128xf32, #tpu.memory_space<vmem>>, vector<32x128xf32>
    %cst_45 = arith.constant dense<0.000000e+00> : vector<128x128xf32>
    %39 = tpu.matmul %37, %38, %cst_45 {dimension_numbers = #tpu.dot_dimension_numbers<[1], [0], [0], [1], [0, 0, 1, 1], [], []>} : vector<128x32xf32>, vector<32x128xf32>, vector<128x128xf32> -> vector<128x128xf32>
    %40 = arith.addf %35, %39 : vector<128x128xf32>
    %c0_46 = arith.constant 0 : index
    %c2_47 = arith.constant 2 : index
    %c2_48 = arith.constant 2 : index
    %c0_49 = arith.constant 0 : index
    %41 = vector.load %arg1[%c0_46, %c2_47, %c2_48, %c0_49] : memref<2x10x10x32xf32, #tpu.memory_space<vmem>>, vector<2x8x8x32xf32>
    %42 = vector.shape_cast %41 : vector<2x8x8x32xf32> to vector<128x32xf32>
    %c256 = arith.constant 256 : index
    %c0_50 = arith.constant 0 : index
    %43 = vector.load %arg2[%c256, %c0_50] : memref<288x128xf32, #tpu.memory_space<vmem>>, vector<32x128xf32>
    %cst_51 = arith.constant dense<0.000000e+00> : vector<128x128xf32>
    %44 = tpu.matmul %42, %43, %cst_51 {dimension_numbers = #tpu.dot_dimension_numbers<[1], [0], [0], [1], [0, 0, 1, 1], [], []>} : vector<128x32xf32>, vector<32x128xf32>, vector<128x128xf32> -> vector<128x128xf32>
    %45 = arith.addf %40, %44 : vector<128x128xf32>
    %c0_52 = arith.constant 0 : index
    %c0_53 = arith.constant 0 : index
    %46 = vector.load %arg3[%c0_52, %c0_53] : memref<1x128xf32, #tpu.memory_space<vmem>>, vector<1x128xf32>
    %47 = vector.broadcast %46 : vector<1x128xf32> to vector<128x128xf32>
    %48 = arith.addf %45, %47 : vector<128x128xf32>
    %cst_54 = arith.constant 0.000000e+00 : f32
    %49 = vector.broadcast %cst_54 : f32 to vector<128x128xf32>
    %50 = arith.maximumf %48, %49 : vector<128x128xf32>
    %c0_55 = arith.constant 0 : index
    %c0_56 = arith.constant 0 : index
    %51 = vector.load %arg4[%c0_55, %c0_56] : memref<128x128xf32, #tpu.memory_space<vmem>>, vector<128x128xf32>
    tpu.vector_store %arg4[%c0_55, %c0_56], %50 {strides = array<i32>} : memref<128x128xf32, #tpu.memory_space<vmem>>, vector<128x128xf32>,
    return
  }
  func.func @transform_0(%arg0: i32) -> (i32, i32, i32, i32) {
    %c0_i32 = arith.constant 0 : i32
    %c0_i32_0 = arith.constant 0 : i32
    %c0_i32_1 = arith.constant 0 : i32
    %c0_i32_2 = arith.constant 0 : i32
    return %arg0, %c0_i32, %c0_i32_0, %c0_i32_1 : i32, i32, i32, i32
  }
  func.func @transform_1(%arg0: i32) -> (i32, i32) {
    %c0_i32 = arith.constant 0 : i32
    %c0_i32_0 = arith.constant 0 : i32
    %c0_i32_1 = arith.constant 0 : i32
    return %c0_i32, %c0_i32_0 : i32, i32
  }
  func.func @transform_2(%arg0: i32) -> (i32, i32) {
    %c0_i32 = arith.constant 0 : i32
    %c0_i32_0 = arith.constant 0 : i32
    %c0_i32_1 = arith.constant 0 : i32
    return %c0_i32, %c0_i32_0 : i32, i32
  }
  func.func @transform_3(%arg0: i32) -> (i32, i32) {
    %c0_i32 = arith.constant 0 : i32
    %c0_i32_0 = arith.constant 0 : i32
    return %arg0, %c0_i32 : i32, i32
  }
}

module attributes {stable_mosaic.version = 11 : i64} {
  func.func @_convT_gather_kernel(%arg0: i32, %arg1: memref<1x18x18x32xf32, #tpu.memory_space<vmem>>, %arg2: memref<288x128xf32, #tpu.memory_space<vmem>>, %arg3: memref<1x128xf32, #tpu.memory_space<vmem>>, %arg4: memref<256x128xf32, #tpu.memory_space<vmem>>) attributes {dimension_semantics = [#tpu.dimension_semantics<parallel>], iteration_bounds = array<i64: 2>, scalar_prefetch = 0 : i64, scratch_operands = 0 : i64, tpu.core_type = #tpu.core_type<tc>, window_params = [{transform_indices = @transform_0, window_bounds = array<i64: 1, 18, 18, 32>}, {pipeline_mode = #tpu.pipeline_mode<synchronous>, transform_indices = @transform_1, window_bounds = array<i64: 288, 128>}, {pipeline_mode = #tpu.pipeline_mode<synchronous>, transform_indices = @transform_2, window_bounds = array<i64: 1, 128>}, {transform_indices = @transform_3, window_bounds = array<i64: 256, 128>}]} {
    %cst = arith.constant 0.000000e+00 : f32
    %0 = vector.broadcast %cst : f32 to vector<256x128xf32>
    %c0 = arith.constant 0 : index
    %c0_0 = arith.constant 0 : index
    %c0_1 = arith.constant 0 : index
    %c0_2 = arith.constant 0 : index
    %1 = vector.load %arg1[%c0, %c0_0, %c0_1, %c0_2] : memref<1x18x18x32xf32, #tpu.memory_space<vmem>>, vector<1x16x16x32xf32>
    %2 = vector.shape_cast %1 : vector<1x16x16x32xf32> to vector<256x32xf32>
    %c0_3 = arith.constant 0 : index
    %c0_4 = arith.constant 0 : index
    %3 = vector.load %arg2[%c0_3, %c0_4] : memref<288x128xf32, #tpu.memory_space<vmem>>, vector<32x128xf32>
    %cst_5 = arith.constant dense<0.000000e+00> : vector<256x128xf32>
    %4 = tpu.matmul %2, %3, %cst_5 {dimension_numbers = #tpu.dot_dimension_numbers<[1], [0], [0], [1], [0, 0, 1, 1], [], []>} : vector<256x32xf32>, vector<32x128xf32>, vector<256x128xf32> -> vector<256x128xf32>
    %5 = arith.addf %0, %4 : vector<256x128xf32>
    %c0_6 = arith.constant 0 : index
    %c0_7 = arith.constant 0 : index
    %c1 = arith.constant 1 : index
    %c0_8 = arith.constant 0 : index
    %6 = vector.load %arg1[%c0_6, %c0_7, %c1, %c0_8] : memref<1x18x18x32xf32, #tpu.memory_space<vmem>>, vector<1x16x16x32xf32>
    %7 = vector.shape_cast %6 : vector<1x16x16x32xf32> to vector<256x32xf32>
    %c32 = arith.constant 32 : index
    %c0_9 = arith.constant 0 : index
    %8 = vector.load %arg2[%c32, %c0_9] : memref<288x128xf32, #tpu.memory_space<vmem>>, vector<32x128xf32>
    %cst_10 = arith.constant dense<0.000000e+00> : vector<256x128xf32>
    %9 = tpu.matmul %7, %8, %cst_10 {dimension_numbers = #tpu.dot_dimension_numbers<[1], [0], [0], [1], [0, 0, 1, 1], [], []>} : vector<256x32xf32>, vector<32x128xf32>, vector<256x128xf32> -> vector<256x128xf32>
    %10 = arith.addf %5, %9 : vector<256x128xf32>
    %c0_11 = arith.constant 0 : index
    %c0_12 = arith.constant 0 : index
    %c2 = arith.constant 2 : index
    %c0_13 = arith.constant 0 : index
    %11 = vector.load %arg1[%c0_11, %c0_12, %c2, %c0_13] : memref<1x18x18x32xf32, #tpu.memory_space<vmem>>, vector<1x16x16x32xf32>
    %12 = vector.shape_cast %11 : vector<1x16x16x32xf32> to vector<256x32xf32>
    %c64 = arith.constant 64 : index
    %c0_14 = arith.constant 0 : index
    %13 = vector.load %arg2[%c64, %c0_14] : memref<288x128xf32, #tpu.memory_space<vmem>>, vector<32x128xf32>
    %cst_15 = arith.constant dense<0.000000e+00> : vector<256x128xf32>
    %14 = tpu.matmul %12, %13, %cst_15 {dimension_numbers = #tpu.dot_dimension_numbers<[1], [0], [0], [1], [0, 0, 1, 1], [], []>} : vector<256x32xf32>, vector<32x128xf32>, vector<256x128xf32> -> vector<256x128xf32>
    %15 = arith.addf %10, %14 : vector<256x128xf32>
    %c0_16 = arith.constant 0 : index
    %c1_17 = arith.constant 1 : index
    %c0_18 = arith.constant 0 : index
    %c0_19 = arith.constant 0 : index
    %16 = vector.load %arg1[%c0_16, %c1_17, %c0_18, %c0_19] : memref<1x18x18x32xf32, #tpu.memory_space<vmem>>, vector<1x16x16x32xf32>
    %17 = vector.shape_cast %16 : vector<1x16x16x32xf32> to vector<256x32xf32>
    %c96 = arith.constant 96 : index
    %c0_20 = arith.constant 0 : index
    %18 = vector.load %arg2[%c96, %c0_20] : memref<288x128xf32, #tpu.memory_space<vmem>>, vector<32x128xf32>
    %cst_21 = arith.constant dense<0.000000e+00> : vector<256x128xf32>
    %19 = tpu.matmul %17, %18, %cst_21 {dimension_numbers = #tpu.dot_dimension_numbers<[1], [0], [0], [1], [0, 0, 1, 1], [], []>} : vector<256x32xf32>, vector<32x128xf32>, vector<256x128xf32> -> vector<256x128xf32>
    %20 = arith.addf %15, %19 : vector<256x128xf32>
    %c0_22 = arith.constant 0 : index
    %c1_23 = arith.constant 1 : index
    %c1_24 = arith.constant 1 : index
    %c0_25 = arith.constant 0 : index
    %21 = vector.load %arg1[%c0_22, %c1_23, %c1_24, %c0_25] : memref<1x18x18x32xf32, #tpu.memory_space<vmem>>, vector<1x16x16x32xf32>
    %22 = vector.shape_cast %21 : vector<1x16x16x32xf32> to vector<256x32xf32>
    %c128 = arith.constant 128 : index
    %c0_26 = arith.constant 0 : index
    %23 = vector.load %arg2[%c128, %c0_26] : memref<288x128xf32, #tpu.memory_space<vmem>>, vector<32x128xf32>
    %cst_27 = arith.constant dense<0.000000e+00> : vector<256x128xf32>
    %24 = tpu.matmul %22, %23, %cst_27 {dimension_numbers = #tpu.dot_dimension_numbers<[1], [0], [0], [1], [0, 0, 1, 1], [], []>} : vector<256x32xf32>, vector<32x128xf32>, vector<256x128xf32> -> vector<256x128xf32>
    %25 = arith.addf %20, %24 : vector<256x128xf32>
    %c0_28 = arith.constant 0 : index
    %c1_29 = arith.constant 1 : index
    %c2_30 = arith.constant 2 : index
    %c0_31 = arith.constant 0 : index
    %26 = vector.load %arg1[%c0_28, %c1_29, %c2_30, %c0_31] : memref<1x18x18x32xf32, #tpu.memory_space<vmem>>, vector<1x16x16x32xf32>
    %27 = vector.shape_cast %26 : vector<1x16x16x32xf32> to vector<256x32xf32>
    %c160 = arith.constant 160 : index
    %c0_32 = arith.constant 0 : index
    %28 = vector.load %arg2[%c160, %c0_32] : memref<288x128xf32, #tpu.memory_space<vmem>>, vector<32x128xf32>
    %cst_33 = arith.constant dense<0.000000e+00> : vector<256x128xf32>
    %29 = tpu.matmul %27, %28, %cst_33 {dimension_numbers = #tpu.dot_dimension_numbers<[1], [0], [0], [1], [0, 0, 1, 1], [], []>} : vector<256x32xf32>, vector<32x128xf32>, vector<256x128xf32> -> vector<256x128xf32>
    %30 = arith.addf %25, %29 : vector<256x128xf32>
    %c0_34 = arith.constant 0 : index
    %c2_35 = arith.constant 2 : index
    %c0_36 = arith.constant 0 : index
    %c0_37 = arith.constant 0 : index
    %31 = vector.load %arg1[%c0_34, %c2_35, %c0_36, %c0_37] : memref<1x18x18x32xf32, #tpu.memory_space<vmem>>, vector<1x16x16x32xf32>
    %32 = vector.shape_cast %31 : vector<1x16x16x32xf32> to vector<256x32xf32>
    %c192 = arith.constant 192 : index
    %c0_38 = arith.constant 0 : index
    %33 = vector.load %arg2[%c192, %c0_38] : memref<288x128xf32, #tpu.memory_space<vmem>>, vector<32x128xf32>
    %cst_39 = arith.constant dense<0.000000e+00> : vector<256x128xf32>
    %34 = tpu.matmul %32, %33, %cst_39 {dimension_numbers = #tpu.dot_dimension_numbers<[1], [0], [0], [1], [0, 0, 1, 1], [], []>} : vector<256x32xf32>, vector<32x128xf32>, vector<256x128xf32> -> vector<256x128xf32>
    %35 = arith.addf %30, %34 : vector<256x128xf32>
    %c0_40 = arith.constant 0 : index
    %c2_41 = arith.constant 2 : index
    %c1_42 = arith.constant 1 : index
    %c0_43 = arith.constant 0 : index
    %36 = vector.load %arg1[%c0_40, %c2_41, %c1_42, %c0_43] : memref<1x18x18x32xf32, #tpu.memory_space<vmem>>, vector<1x16x16x32xf32>
    %37 = vector.shape_cast %36 : vector<1x16x16x32xf32> to vector<256x32xf32>
    %c224 = arith.constant 224 : index
    %c0_44 = arith.constant 0 : index
    %38 = vector.load %arg2[%c224, %c0_44] : memref<288x128xf32, #tpu.memory_space<vmem>>, vector<32x128xf32>
    %cst_45 = arith.constant dense<0.000000e+00> : vector<256x128xf32>
    %39 = tpu.matmul %37, %38, %cst_45 {dimension_numbers = #tpu.dot_dimension_numbers<[1], [0], [0], [1], [0, 0, 1, 1], [], []>} : vector<256x32xf32>, vector<32x128xf32>, vector<256x128xf32> -> vector<256x128xf32>
    %40 = arith.addf %35, %39 : vector<256x128xf32>
    %c0_46 = arith.constant 0 : index
    %c2_47 = arith.constant 2 : index
    %c2_48 = arith.constant 2 : index
    %c0_49 = arith.constant 0 : index
    %41 = vector.load %arg1[%c0_46, %c2_47, %c2_48, %c0_49] : memref<1x18x18x32xf32, #tpu.memory_space<vmem>>, vector<1x16x16x32xf32>
    %42 = vector.shape_cast %41 : vector<1x16x16x32xf32> to vector<256x32xf32>
    %c256 = arith.constant 256 : index
    %c0_50 = arith.constant 0 : index
    %43 = vector.load %arg2[%c256, %c0_50] : memref<288x128xf32, #tpu.memory_space<vmem>>, vector<32x128xf32>
    %cst_51 = arith.constant dense<0.000000e+00> : vector<256x128xf32>
    %44 = tpu.matmul %42, %43, %cst_51 {dimension_numbers = #tpu.dot_dimension_numbers<[1], [0], [0], [1], [0, 0, 1, 1], [], []>} : vector<256x32xf32>, vector<32x128xf32>, vector<256x128xf32> -> vector<256x128xf32>
    %45 = arith.addf %40, %44 : vector<256x128xf32>
    %c0_52 = arith.constant 0 : index
    %c0_53 = arith.constant 0 : index
    %46 = vector.load %arg3[%c0_52, %c0_53] : memref<1x128xf32, #tpu.memory_space<vmem>>, vector<1x128xf32>
    %47 = vector.broadcast %46 : vector<1x128xf32> to vector<256x128xf32>
    %48 = arith.addf %45, %47 : vector<256x128xf32>
    %49 = arith.negf %48 : vector<256x128xf32>
    %50 = math.exp %49 : vector<256x128xf32>
    %cst_54 = arith.constant 1.000000e+00 : f32
    %51 = vector.broadcast %cst_54 : f32 to vector<256x128xf32>
    %52 = arith.addf %51, %50 : vector<256x128xf32>
    %53 = arith.divf %51, %52 : vector<256x128xf32>
    %c0_55 = arith.constant 0 : index
    %c0_56 = arith.constant 0 : index
    %54 = vector.load %arg4[%c0_55, %c0_56] : memref<256x128xf32, #tpu.memory_space<vmem>>, vector<256x128xf32>
    tpu.vector_store %arg4[%c0_55, %c0_56], %53 {strides = array<i32>} : memref<256x128xf32, #tpu.memory_space<vmem>>, vector<256x128xf32>,
    return
  }
  func.func @transform_0(%arg0: i32) -> (i32, i32, i32, i32) {
    %c0_i32 = arith.constant 0 : i32
    %c0_i32_0 = arith.constant 0 : i32
    %c0_i32_1 = arith.constant 0 : i32
    %c0_i32_2 = arith.constant 0 : i32
    return %arg0, %c0_i32, %c0_i32_0, %c0_i32_1 : i32, i32, i32, i32
  }
  func.func @transform_1(%arg0: i32) -> (i32, i32) {
    %c0_i32 = arith.constant 0 : i32
    %c0_i32_0 = arith.constant 0 : i32
    %c0_i32_1 = arith.constant 0 : i32
    return %c0_i32, %c0_i32_0 : i32, i32
  }
  func.func @transform_2(%arg0: i32) -> (i32, i32) {
    %c0_i32 = arith.constant 0 : i32
    %c0_i32_0 = arith.constant 0 : i32
    %c0_i32_1 = arith.constant 0 : i32
    return %c0_i32, %c0_i32_0 : i32, i32
  }
  func.func @transform_3(%arg0: i32) -> (i32, i32) {
    %c0_i32 = arith.constant 0 : i32
    %c0_i32_0 = arith.constant 0 : i32
    return %arg0, %c0_i32 : i32, i32
  }
}

</mosaic_0001>

<bundles_post_ra>
// kernel: decoder_burgess_forward.5
= control target key start
LH: loop header
LB: loop body
LE: loop exit
PB: predicated region body
PF: predicated region fallthrough
CT: control target
= control target key end

     0   :  { %vm69_vm0 = vcmask 261120   ;;  %s558_s1 = inlined_call_operand.vmem [shape: f32[288,128], index: 1, kind: input, shape index: {}]   ;;  %s559_s0 = inlined_call_operand.vmem [shape: f32[32,288], index: 0, kind: input, shape index: {}]   ;;  %s560_s2 = inlined_call_operand.vmem [shape: f32[1,128], index: 2, kind: input, shape index: {}]   ;;  %s561_s3 = inlined_call_operand.vmem [shape: f32[32,128], index: 3, kind: output, shape index: {}]  }
   0x1   :  { %v42_v0 = vld [vmem:[%s558_s1 + $0x80] sm:$0xff]  ;;  %v43_v1 = vld [vmem:[%s558_s1 + $0x88] sm:$0xff]  ;;  %v44_v5 = vld [vmem:[%s558_s1 + $0x90] sm:$0xff] }
   0x2   :  { %v26_v2 = vld [vmem:[%s558_s1] sm:$0xff]  ;;  %v335_v3 = vpack.c.bf16 %v43_v1, %v42_v0  ;;  %v27_v4 = vld [vmem:[%s558_s1 + $0x8] sm:$0xff]  ;;  %v45_v6 = vld [vmem:[%s558_s1 + $0x98] sm:$0xff] }
   0x3   :  { %v337_v7 = vpack.c.bf16 %v27_v4, %v26_v2  ;;  %v339_v8 = vpack.c.bf16 %v45_v6, %v44_v5  ;;  %v28_v9 = vld [vmem:[%s558_s1 + $0x10] sm:$0xff]  ;;  %v29_v10 = vld [vmem:[%s558_s1 + $0x18] sm:$0xff]  ;;  %v46_v11 = vld [vmem:[%s558_s1 + $0xa0] sm:$0xff] }
   0x4   :  { %336 = vmatprep.subr.bf16.mxu0 %v335_v3  ;;  %v47_v12 = vld [vmem:[%s558_s1 + $0xa8] sm:$0xff]  ;;  %v341_v13 = vpack.c.bf16 %v29_v10, %v28_v9  ;;  %v30_v15 = vld [vmem:[%s558_s1 + $0x20] sm:$0xff]  ;;  %v48_v17 = vld [vmem:[%s558_s1 + $0xb0] sm:$0xff] }
   0x5   :  { %338 = vmatpush3.bf16.msra.mxu0 %v337_v7  ;;  %v343_v14 = vpack.c.bf16 %v47_v12, %v46_v11  ;;  %v31_v16 = vld [vmem:[%s558_s1 + $0x28] sm:$0xff]  ;;  %v49_v18 = vld [vmem:[%s558_s1 + $0xb8] sm:$0xff]  ;;  %v32_v21 = vld [vmem:[%s558_s1 + $0x30] sm:$0xff] }
   0x6   :  { %340 = vmatprep.subr.bf16.mxu0 %v339_v8  ;;  %v345_v19 = vpack.c.bf16 %v31_v16, %v30_v15  ;;  %v347_v20 = vpack.c.bf16 %v49_v18, %v48_v17  ;;  %v33_v22 = vld [vmem:[%s558_s1 + $0x38] sm:$0xff]  ;;  %v50_v23 = vld [vmem:[%s558_s1 + $0xc0] sm:$0xff]  ;;  %v51_v24 = vld [vmem:[%s558_s1 + $0xc8] sm:$0xff] }
   0x7   :  { %v58_v25 = vld [vmem:[%s558_s1 + $0x100] sm:$0xff]  ;;  %v59_v26 = vld [vmem:[%s558_s1 + $0x108] sm:$0xff]  ;;  %v349_v29 = vpack.c.bf16 %v33_v22, %v32_v21  ;;  %v60_v30 = vld [vmem:[%s558_s1 + $0x110] sm:$0xff]  ;;  %v351_v32 = vpack.c.bf16 %v51_v24, %v50_v23 }
   0x8   :  { %v367_v27 = vpack.c.bf16 %v59_v26, %v58_v25  ;;  %v15_v28 = vld [vmem:[%s559_s0 + $0x8] sm:$0xff]  ;;  %v61_v31 = vld [vmem:[%s558_s1 + $0x118] sm:$0xff]  ;;  %v34_v33 = vld [vmem:[%s558_s1 + $0x40] sm:$0xff] }
   0x9   :  { %342 = vmatpush3.bf16.msra.mxu0 %v341_v13  ;;  %146 = vmatprep.mubr.f32.mxu0 %v15_v28  ;;  %v35_v34 = vld [vmem:[%s558_s1 + $0x48] sm:$0xff]  ;;  %v371_v35 = vpack.c.bf16 %v61_v31, %v60_v30  ;;  %v16_v36 = vld [vmem:[%s559_s0 + $0x10] sm:$0xff]  ;;  %v53_v38 = vld [vmem:[%s558_s1 + $0xd8] sm:$0xff] }
   0xa   :  { %344 = vmatprep.subr.bf16.mxu0 %v343_v14  ;;  %368 = vmatprep.subr.bf16.mxu1 %v367_v27  ;;  %v52_v37 = vld [vmem:[%s558_s1 + $0xd0] sm:$0xff]  ;;  %v353_v39 = vpack.c.bf16 %v35_v34, %v34_v33  ;;  %v37_v42 = vld [vmem:[%s558_s1 + $0x58] sm:$0xff]  ;;  %v54_v43 = vld [vmem:[%s558_s1 + $0xe0] sm:$0xff] }
   0xb   :  { %370 = vmatpush3.bf16.msra.mxu1 %v367_v27  ;;  %329 = vmatprep.mubr.msk.f32.mxu1 %vm69_vm0, %v16_v36  ;;  %v355_v40 = vpack.c.bf16 %v53_v38, %v52_v37  ;;  %v36_v41 = vld [vmem:[%s558_s1 + $0x50] sm:$0xff]  ;;  %v55_v44 = vld [vmem:[%s558_s1 + $0xe8] sm:$0xff]  ;;  %v22_v46 = vld [vmem:[%s559_s0 + $0x40] sm:$0xff] }
   0xc   :  { %372 = vmatprep.subr.bf16.mxu1 %v371_v35  ;;  %v19_v45 = vld [vmem:[%s559_s0 + $0x28] sm:$0xff]  ;;  %v357_v47 = vpack.c.bf16 %v37_v42, %v36_v41  ;;  %v359_v48 = vpack.c.bf16 %v55_v44, %v54_v43  ;;  %v38_v49 = vld [vmem:[%s558_s1 + $0x60] sm:$0xff]  ;;  %v56_v51 = vld [vmem:[%s558_s1 + $0xf0] sm:$0xff] }
   0xd   :  { %346 = vmatpush3.bf16.msra.mxu0 %v345_v19  ;;  %v39_v50 = vld [vmem:[%s558_s1 + $0x68] sm:$0xff]  ;;  %v57_v52 = vld [vmem:[%s558_s1 + $0xf8] sm:$0xff]  ;;  %v40_v56 = vld [vmem:[%s558_s1 + $0x70] sm:$0xff] }
   0xe   :  { %348 = vmatprep.subr.bf16.mxu0 %v347_v20  ;;  %v25_v53 = vld [vmem:[%s559_s0 + $0x58] sm:$0xff]  ;;  %v361_v54 = vpack.c.bf16 %v39_v50, %v38_v49  ;;  %v363_v55 = vpack.c.bf16 %v57_v52, %v56_v51  ;;  %v14_v59 = vld [vmem:[%s559_s0] sm:$0xff]  ;;  %v20_v63 = vld [vmem:[%s559_s0 + $0x30] sm:$0xff] }
   0xf   :  { %374 = vmatpush3.bf16.msra.mxu1 %v371_v35  ;;  %v41_v57 = vld [vmem:[%s558_s1 + $0x78] sm:$0xff]  ;;  %v18_v60 = vld [vmem:[%s559_s0 + $0x20] sm:$0xff]  ;;  %v24_v0 = vld [vmem:[%s559_s0 + $0x50] sm:$0xff] }
  0x10   :  { %v365_v58 = vpack.c.bf16 %v41_v57, %v40_v56  ;;  %v17_v61 = vld [vmem:[%s559_s0 + $0x18] sm:$0xff]  ;;  %v23_v1 = vld [vmem:[%s559_s0 + $0x48] sm:$0xff]  ;;  %v264_v8 = vld [vmem:[%s560_s2] ss:$0 sm:$0xff] }
  0x11   :  { %350 = vmatpush3.bf16.msra.mxu0 %v349_v29  ;;  %v21_v62 = vld [vmem:[%s559_s0 + $0x38] sm:$0xff] }
  0x12   :  { %352 = vmatprep.subr.bf16.mxu0 %v351_v32  ;;  %330 = vmatmul.mubr.msk.f32.vlgmr.msra.gmra.mrb[0].mxu1 %vm69_vm0, %v19_v45 }
  0x13   :  { %332 = vmatprep.mubr.msk.f32.mxu1 %vm69_vm0, %v22_v46 }
  0x15   :  { %354 = vmatpush3.bf16.msra.mxu0 %v353_v39 }
  0x16   :  { %356 = vmatprep.subr.bf16.mxu0 %v355_v40  ;;  %333 = vmatmul.mubr.msk.f32.gmra.mrb[2].mxu1 %vm69_vm0, %v25_v53 }
  0x19   :  { %358 = vmatpush3.bf16.msra.mxu0 %v357_v47 }
  0x1a   :  { %360 = vmatprep.subr.bf16.mxu0 %v359_v48 }
  0x1d   :  { %362 = vmatpush3.bf16.msra.mxu0 %v361_v54 }
  0x1e   :  { %364 = vmatprep.subr.bf16.mxu0 %v363_v55 }
  0x21   :  { %366 = vmatpush3.bf16.msra.mxu0 %v365_v58 }
  0x24   :  { %147 = vmatmul.mubr.f32.vlgmr.msra.gmra.mrb[0].mxu0 %v14_v59 }
  0x25   :  { %151 = vmatprep.mubr.f32.mxu0 %v18_v60 }
  0x28   :  { %152 = vmatmul.mubr.f32.gmra.mrb[2].mxu0 %v17_v61 }
  0x29   :  { %156 = vmatprep.mubr.f32.mxu0 %v21_v62 }
  0x2c   :  { %157 = vmatmul.mubr.f32.gmra.mrb[4].mxu0 %v20_v63 }
  0x2d   :  { %161 = vmatprep.mubr.f32.mxu0 %v24_v0 }
  0x30   :  { %162 = vmatmul.mubr.f32.gmra.mrb[6].mxu0 %v23_v1 }
  0xe5   :  { %v331_v2 = vpop.f32.mrb[0].mxu1 }
  0xe6   :  { %v233_v3 = vpop.f32.mrb[1].mxu1 }
  0xe9   :  { %v334_v4 = vpop.f32.mrb[2].mxu1 }
  0xea   :  { %v243_v5 = vpop.f32.mrb[3].mxu1 }
  0xf7   :  { %v301_v6 = vpop.f32.mrb[0].mxu0 }
  0xf8   :  { %v302_v7 = vpop.f32.mrb[1].mxu0 }
  0xf9   :  { %v303_v9 = vadd.f32 %v302_v7, %v301_v6 }
  0xfb   :  { %v304_v10 = vpop.f32.mrb[2].mxu0  ;;  %v149_v11 = vadd.f32 %v303_v9, %v264_v8 }
  0xfc   :  { %v305_v12 = vpop.f32.mrb[3].mxu0 }
  0xfd   :  { %v306_v13 = vadd.f32 %v305_v12, %v304_v10  ;;  %v234_v14 = vadd.f32 %v233_v3, %v149_v11 }
  0xff   :  { %v154_v15 = vadd.f32 %v306_v13, %v264_v8  ;;  %v252_v16 = vmax.f32 %v234_v14, 0.0  ;;  %v307_v17 = vpop.f32.mrb[4].mxu0 }
 0x100   :  { %v308_v18 = vpop.f32.mrb[5].mxu0 }
 0x101   :  { %v239_v19 = vadd.f32 %v331_v2, %v154_v15  ;;  %256 = vst [vmem:[%s561_s3] sm:$0xff] %v252_v16  ;;  %v309_v20 = vadd.f32 %v308_v18, %v307_v17 }
 0x103   :  { %v253_v21 = vmax.f32 %v239_v19, 0.0  ;;  %v310_v22 = vpop.f32.mrb[6].mxu0  ;;  %v159_v23 = vadd.f32 %v309_v20, %v264_v8 }
 0x104   :  { %v311_v24 = vpop.f32.mrb[7].mxu0 }
 0x105   :  { %257 = vst [vmem:[%s561_s3 + $0x8] sm:$0xff] %v253_v21  ;;  %v312_v25 = vadd.f32 %v311_v24, %v310_v22  ;;  %v244_v26 = vadd.f32 %v243_v5, %v159_v23 }
 0x107   :  { %v164_v27 = vadd.f32 %v312_v25, %v264_v8  ;;  %v254_v28 = vmax.f32 %v244_v26, 0.0 }
 0x109   :  { %v249_v29 = vadd.f32 %v334_v4, %v164_v27  ;;  %258 = vst [vmem:[%s561_s3 + $0x10] sm:$0xff] %v254_v28 }
 0x10b   :  { %v255_v30 = vmax.f32 %v249_v29, 0.0 }
 0x10d   :  { %259 = vst [vmem:[%s561_s3 + $0x18] sm:$0xff] %v255_v30 }

// kernel: decoder_burgess_forward.4
= control target key start
LH: loop header
LB: loop body
LE: loop exit
PB: predicated region body
PF: predicated region fallthrough
CT: control target
= control target key end

     0   :  { %12 = vsyncpa [#allocation3], 0  ;;  %s1103_s0 = inlined_call_operand.hbm [shape: f32[2,10], index: 0, kind: input, shape index: {}]   ;;  %s1104_s1 = inlined_call_operand.hbm [shape: f32[10,256], index: 1, kind: input, shape index: {}]   ;;  %s1105_s2 = inlined_call_operand.vmem [shape: f32[1,256], index: 2, kind: input, shape index: {}]   ;;  %s1106_s3 = inlined_call_operand.hbm [shape: f32[256,256], index: 3, kind: input, shape index: {}]   ;;  %s1107_s4 = inlined_call_operand.vmem [shape: f32[1,256], index: 4, kind: input, shape index: {}]   ;;  %s1108_s5 = inlined_call_operand.hbm [shape: f32[256,512], index: 5, kind: input, shape index: {}]   ;;  %s1109_s6 = inlined_call_operand.vmem [shape: f32[1,512], index: 6, kind: input, shape index: {}]   ;;  %s1110_s7 = inlined_call_operand.vmem [shape: f32[2,512], index: 7, kind: output, shape index: {}]  }
   0x1   :  { %13 = vsyncpa [#allocation5], 0 }
   0x2   :  { %14 = vsyncpa [#allocation8], 0  ;;  %s961_s24 = smov [#allocation4]   ;;  %s867_s28 = scalar_lea.hbm %s1104_s1, 512 }
   0x3   :  { %s30_s25 = sshll.u32 %s961_s24, 4  ;;  %p868_p0 = scmp.ne.s32.totalorder %s1104_s1, %s867_s28  ;;  %s31_s25 = int_to_ptr.vmem [resolvable:$true] %s30_s25 }
   0x4   :  { %p871_p1 = scmp.lt.u32.totalorder %s867_s28, %s1104_s1 }
   0x6   :  { %p873_p2 = pnand %p871_p1, %p868_p0 }
   0x8   :  { %876 = shalt.err (!%p873_p2)
}
   0x9   :  { %s877_s10 = scalar_lea.vmem %s31_s25, 512  ;;  %p882_p4 = scmp.lt.s32.totalorder %s31_s25, %s31_s25 }
   0xa   :  { %p878_p3 = scmp.ne.s32.totalorder %s31_s25, %s877_s10  ;;  %p883_p5 = scmp.lt.s32.totalorder %s877_s10, %s877_s10 }
   0xc   :  { %p884_p6 = por %p883_p5, %p882_p4 }
   0xe   :  { %p885_p7 = pnand %p884_p6, %p878_p3 }
  0x10   :  { %888 = shalt.err (!%p885_p7)
}
  0x11   :  { %s962_s11 = smov 256   ;;  %s963_s12 = smov 16  }
  0x12   :  { %36 = dma.hbm_to_vmem [thread:$0]  %s1104_s1, 512, %s31_s25, [#allocation5], %s962_s11, %s962_s11, %s963_s12  }
  0x13   :  { %s964_s15 = smov [#allocation2]   ;;  %s965_s17 = smov [#allocation6]  }
  0x14   :  { %s21_s16 = sshll.u32 %s964_s15, 4  ;;  %s44_s18 = sshll.u32 %s965_s17, 4  ;;  %s22_s16 = int_to_ptr.vmem [resolvable:$true] %s21_s16  ;;  %s45_s18 = int_to_ptr.vmem [resolvable:$true] %s44_s18 }
  0x15   :  { %s889_s21 = scalar_lea.hbm %s1103_s0, 32 }
  0x16   :  { %p890_p8 = scmp.ne.s32.totalorder %s1103_s0, %s889_s21  ;;  %p893_p9 = scmp.lt.u32.totalorder %s889_s21, %s1103_s0 }
  0x18   :  { %p895_p10 = pnand %p893_p9, %p890_p8 }
  0x1a   :  { %898 = shalt.err (!%p895_p10)
}
  0x1b   :  { %s899_s1 = scalar_lea.vmem %s22_s16, 32  ;;  %p904_p12 = scmp.lt.s32.totalorder %s22_s16, %s22_s16 }
  0x1c   :  { %p900_p11 = scmp.ne.s32.totalorder %s22_s16, %s899_s1  ;;  %p905_p13 = scmp.lt.s32.totalorder %s899_s1, %s899_s1 }
  0x1e   :  { %p906_p0 = por %p905_p13, %p904_p12 }
  0x20   :  { %p907_p1 = pnand %p906_p0, %p900_p11 }
  0x22   :  { %910 = shalt.err (!%p907_p1)
}
  0x23   :  { %24 = dma.hbm_to_vmem [thread:$0]  %s1103_s0, 32, %s22_s16, [#allocation3]  }
  0x24   :  { %s911_s30 = scalar_lea.hbm %s1106_s3, 8192 }
  0x25   :  { %p912_p2 = scmp.ne.s32.totalorder %s1106_s3, %s911_s30  ;;  %p915_p3 = scmp.lt.u32.totalorder %s911_s30, %s1106_s3 }
  0x27   :  { %p917_p4 = pnand %p915_p3, %p912_p2 }
  0x29   :  { %920 = shalt.err (!%p917_p4)
}
  0x2a   :  { %s921_s14 = scalar_lea.vmem %s45_s18, 8192  ;;  %p926_p6 = scmp.lt.s32.totalorder %s45_s18, %s45_s18 }
  0x2b   :  { %p922_p5 = scmp.ne.s32.totalorder %s45_s18, %s921_s14  ;;  %p927_p7 = scmp.lt.s32.totalorder %s921_s14, %s921_s14 }
  0x2d   :  { %p928_p8 = por %p927_p7, %p926_p6 }
  0x2f   :  { %p929_p9 = pnand %p928_p8, %p922_p5 }
  0x31   :  { %932 = shalt.err (!%p929_p9)
}
  0x32   :  { %50 = dma.hbm_to_vmem [thread:$0]  %s1106_s3, 8192, %s45_s18, [#allocation5], %s962_s11, %s962_s11, %s963_s12  }
  0x33   :  { %s966_s16 = smov [#allocation7]   ;;  %s933_s21 = scalar_lea.hbm %s1108_s5, 16384 }
  0x34   :  { %s58_s17 = sshll.u32 %s966_s16, 4  ;;  %p934_p10 = scmp.ne.s32.totalorder %s1108_s5, %s933_s21  ;;  %s59_s17 = int_to_ptr.vmem [resolvable:$true] %s58_s17 }
  0x35   :  { %p937_p11 = scmp.lt.u32.totalorder %s933_s21, %s1108_s5 }
  0x37   :  { %p939_p12 = pnand %p937_p11, %p934_p10 }
  0x39   :  { %942 = shalt.err (!%p939_p12)
}
  0x3a   :  { %s943_s1 = scalar_lea.vmem %s59_s17, 16384  ;;  %p948_p0 = scmp.lt.s32.totalorder %s59_s17, %s59_s17 }
  0x3b   :  { %p944_p13 = scmp.ne.s32.totalorder %s59_s17, %s943_s1  ;;  %p949_p1 = scmp.lt.s32.totalorder %s943_s1, %s943_s1 }
  0x3d   :  { %p950_p2 = por %p949_p1, %p948_p0 }
  0x3f   :  { %p951_p3 = pnand %p950_p2, %p944_p13 }
  0x41   :  { %954 = shalt.err (!%p951_p3)
}
  0x42   :  { %s967_s3 = smov 512   ;;  %s968_s11 = smov 32  }
  0x43   :  { %64 = dma.hbm_to_vmem [thread:$0]  %s1108_s5, 16384, %s59_s17, [#allocation8], %s967_s3, %s967_s3, %s968_s11  }
  0x44   :  { %955 = dma.done.wait [#allocation3], 32  }
  0x45   :  { %956 = vsyncadd [#allocation3], 4294967264 }
  0x46   :  { %957 = dma.done.wait [#allocation5], 8704  }
  0x47   :  { %958 = vsyncadd [#allocation5], 4294958592 }
  0x48   :  { %959 = dma.done.wait [#allocation8], 16384  }
  0x49   :  { %960 = vsyncadd [#allocation8], 4294950912  ;;  %v969_v0 = vmov 0.0   ;;  %vm100_vm0 = vcmask 1041408   ;;  %vm970_vm1 = vmmov 1   ;;  %v81_v2 = vld [vmem:[#allocation4 + $0x8] sm:$0xff] }
  0x4a   :  { %171 = vmatprep.mubr.f32.mxu0 %v969_v0  ;;  %vm1066_vm2 = vmpackc.low %vm100_vm0, %vm970_vm1  ;;  %v83_v3 = vld [vmem:[#allocation4 + $0x18] sm:$0x3]  ;;  %v80_v4 = vld [vmem:[#allocation4] sm:$0xff]  ;;  %vm96_vm3 = vcmask 80896  }
  0x4b   :  { %v658_v5 = vpack.c.bf16 %v83_v3, %v81_v2  ;;  %v82_v6 = vld [vmem:[#allocation4 + $0x10] sm:$0x3]  ;;  %v181_v7 = vld [vmem:[#allocation6 + $0x8] sm:$0xff]  ;;  %v79_v9 = vld [vmem:[#allocation2] sm:$0x3] }
  0x4c   :  { %v661_v8 = vpack.c.bf16 %v82_v6, %v80_v4  ;;  %v183_v10 = vld [vmem:[#allocation6 + $0x18] sm:$0xff]  ;;  %v180_v11 = vld [vmem:[#allocation6] sm:$0xff]  ;;  %v182_v12 = vld [vmem:[#allocation6 + $0x10] sm:$0xff] }
  0x4d   :  { %660 = vmatprep.subr.msk.bf16.mxu0 %vm1066_vm2, %v658_v5  ;;  %v664_v13 = vpack.c.bf16 %v183_v10, %v181_v7  ;;  %v666_v14 = vpack.c.bf16 %v182_v12, %v180_v11  ;;  %v185_v15 = vld [vmem:[#allocation6 + $0x28] sm:$0xff]  ;;  %v187_v16 = vld [vmem:[#allocation6 + $0x38] sm:$0xff]  ;;  %v184_v17 = vld [vmem:[#allocation6 + $0x20] sm:$0xff] }
  0x4e   :  { %663 = vmatpush1.bf16.msk.msra.mxu0 %vm1066_vm2, %v661_v8  ;;  %v668_v18 = vpack.c.bf16 %v187_v16, %v185_v15  ;;  %v186_v19 = vld [vmem:[#allocation6 + $0x30] sm:$0xff]  ;;  %v189_v20 = vld [vmem:[#allocation6 + $0x48] sm:$0xff]  ;;  %v191_v21 = vld [vmem:[#allocation6 + $0x58] sm:$0xff] }
  0x4f   :  { %665 = vmatprep.subr.bf16.mxu1 %v664_v13  ;;  %v670_v22 = vpack.c.bf16 %v186_v19, %v184_v17  ;;  %v672_v23 = vpack.c.bf16 %v191_v21, %v189_v20  ;;  %v188_v24 = vld [vmem:[#allocation6 + $0x40] sm:$0xff]  ;;  %v190_v25 = vld [vmem:[#allocation6 + $0x50] sm:$0xff]  ;;  %v193_v26 = vld [vmem:[#allocation6 + $0x68] sm:$0xff] }
  0x50   :  { %667 = vmatpush1.bf16.msra.mxu1 %v666_v14  ;;  %v195_v27 = vld [vmem:[#allocation6 + $0x78] sm:$0xff]  ;;  %v674_v28 = vpack.c.bf16 %v190_v25, %v188_v24  ;;  %v192_v30 = vld [vmem:[#allocation6 + $0x60] sm:$0xff]  ;;  %v194_v31 = vld [vmem:[#allocation6 + $0x70] sm:$0xff] }
  0x51   :  { %657 = vmatmul.mubr.msk.f32.vlgmr.msra.gmra.mrb[0].mxu0 %vm96_vm3, %v79_v9  ;;  %669 = vmatprep.subr.bf16.mxu1 %v668_v18  ;;  %v676_v29 = vpack.c.bf16 %v195_v27, %v193_v26  ;;  %v197_v32 = vld [vmem:[#allocation6 + $0x88] sm:$0xff]  ;;  %v199_v33 = vld [vmem:[#allocation6 + $0x98] sm:$0xff]  ;;  %v678_v34 = vpack.c.bf16 %v194_v31, %v192_v30  ;;  %v196_v36 = vld [vmem:[#allocation6 + $0x80] sm:$0xff] }
  0x52   :  { %v680_v35 = vpack.c.bf16 %v199_v33, %v197_v32  ;;  %v198_v37 = vld [vmem:[#allocation6 + $0x90] sm:$0xff]  ;;  %v201_v38 = vld [vmem:[#allocation6 + $0xa8] sm:$0xff]  ;;  %v203_v39 = vld [vmem:[#allocation6 + $0xb8] sm:$0xff] }
  0x53   :  { %v682_v40 = vpack.c.bf16 %v198_v37, %v196_v36  ;;  %v684_v41 = vpack.c.bf16 %v203_v39, %v201_v38  ;;  %v200_v42 = vld [vmem:[#allocation6 + $0xa0] sm:$0xff]  ;;  %v202_v43 = vld [vmem:[#allocation6 + $0xb0] sm:$0xff]  ;;  %v205_v44 = vld [vmem:[#allocation6 + $0xc8] sm:$0xff] }
  0x54   :  { %671 = vmatpush1.bf16.msra.mxu1 %v670_v22  ;;  %v207_v45 = vld [vmem:[#allocation6 + $0xd8] sm:$0xff]  ;;  %v686_v46 = vpack.c.bf16 %v202_v43, %v200_v42  ;;  %v204_v48 = vld [vmem:[#allocation6 + $0xc0] sm:$0xff]  ;;  %v206_v49 = vld [vmem:[#allocation6 + $0xd0] sm:$0xff] }
  0x55   :  { %673 = vmatprep.subr.bf16.mxu1 %v672_v23  ;;  %v688_v47 = vpack.c.bf16 %v207_v45, %v205_v44  ;;  %v209_v50 = vld [vmem:[#allocation6 + $0xe8] sm:$0xff]  ;;  %v211_v51 = vld [vmem:[#allocation6 + $0xf8] sm:$0xff]  ;;  %v690_v52 = vpack.c.bf16 %v206_v49, %v204_v48  ;;  %v208_v54 = vld [vmem:[#allocation6 + $0xe0] sm:$0xff] }
  0x56   :  { %v692_v53 = vpack.c.bf16 %v211_v51, %v209_v50  ;;  %v210_v55 = vld [vmem:[#allocation6 + $0xf0] sm:$0xff]  ;;  %v213_v56 = vld [vmem:[#allocation6 + $0x108] sm:$0xff]  ;;  %v215_v57 = vld [vmem:[#allocation6 + $0x118] sm:$0xff] }
  0x57   :  { %v694_v58 = vpack.c.bf16 %v210_v55, %v208_v54  ;;  %v696_v59 = vpack.c.bf16 %v215_v57, %v213_v56  ;;  %v212_v60 = vld [vmem:[#allocation6 + $0x100] sm:$0xff]  ;;  %v214_v61 = vld [vmem:[#allocation6 + $0x110] sm:$0xff]  ;;  %v217_v62 = vld [vmem:[#allocation6 + $0x128] sm:$0xff] }
  0x58   :  { %675 = vmatpush1.bf16.msra.mxu1 %v674_v28  ;;  %v219_v63 = vld [vmem:[#allocation6 + $0x138] sm:$0xff]  ;;  %v698_v0 = vpack.c.bf16 %v214_v61, %v212_v60  ;;  %v216_v2 = vld [vmem:[#allocation6 + $0x120] sm:$0xff]  ;;  %v218_v3 = vld [vmem:[#allocation6 + $0x130] sm:$0xff] }
  0x59   :  { %677 = vmatprep.subr.bf16.mxu1 %v676_v29  ;;  %v700_v1 = vpack.c.bf16 %v219_v63, %v217_v62  ;;  %v221_v4 = vld [vmem:[#allocation6 + $0x148] sm:$0xff]  ;;  %v223_v5 = vld [vmem:[#allocation6 + $0x158] sm:$0xff]  ;;  %v702_v6 = vpack.c.bf16 %v218_v3, %v216_v2  ;;  %v220_v8 = vld [vmem:[#allocation6 + $0x140] sm:$0xff] }
  0x5a   :  { %v704_v7 = vpack.c.bf16 %v223_v5, %v221_v4  ;;  %v222_v9 = vld [vmem:[#allocation6 + $0x150] sm:$0xff]  ;;  %v225_v10 = vld [vmem:[#allocation6 + $0x168] sm:$0xff]  ;;  %v227_v11 = vld [vmem:[#allocation6 + $0x178] sm:$0xff] }
  0x5b   :  { %v706_v12 = vpack.c.bf16 %v222_v9, %v220_v8  ;;  %v708_v13 = vpack.c.bf16 %v227_v11, %v225_v10  ;;  %v224_v14 = vld [vmem:[#allocation6 + $0x160] sm:$0xff]  ;;  %v226_v15 = vld [vmem:[#allocation6 + $0x170] sm:$0xff]  ;;  %v229_v16 = vld [vmem:[#allocation6 + $0x188] sm:$0xff] }
  0x5c   :  { %679 = vmatpush1.bf16.msra.mxu1 %v678_v34  ;;  %v231_v17 = vld [vmem:[#allocation6 + $0x198] sm:$0xff]  ;;  %v710_v18 = vpack.c.bf16 %v226_v15, %v224_v14  ;;  %v228_v20 = vld [vmem:[#allocation6 + $0x180] sm:$0xff]  ;;  %v230_v21 = vld [vmem:[#allocation6 + $0x190] sm:$0xff] }
  0x5d   :  { %681 = vmatprep.subr.bf16.mxu1 %v680_v35  ;;  %v712_v19 = vpack.c.bf16 %v231_v17, %v229_v16  ;;  %v233_v22 = vld [vmem:[#allocation6 + $0x1a8] sm:$0xff]  ;;  %v235_v23 = vld [vmem:[#allocation6 + $0x1b8] sm:$0xff]  ;;  %v714_v24 = vpack.c.bf16 %v230_v21, %v228_v20  ;;  %v232_v26 = vld [vmem:[#allocation6 + $0x1a0] sm:$0xff] }
  0x5e   :  { %v716_v25 = vpack.c.bf16 %v235_v23, %v233_v22  ;;  %v234_v27 = vld [vmem:[#allocation6 + $0x1b0] sm:$0xff]  ;;  %v237_v28 = vld [vmem:[#allocation6 + $0x1c8] sm:$0xff]  ;;  %v239_v29 = vld [vmem:[#allocation6 + $0x1d8] sm:$0xff] }
  0x5f   :  { %v718_v30 = vpack.c.bf16 %v234_v27, %v232_v26  ;;  %v720_v31 = vpack.c.bf16 %v239_v29, %v237_v28  ;;  %v236_v32 = vld [vmem:[#allocation6 + $0x1c0] sm:$0xff]  ;;  %v238_v33 = vld [vmem:[#allocation6 + $0x1d0] sm:$0xff]  ;;  %v241_v35 = vld [vmem:[#allocation6 + $0x1e8] sm:$0xff] }
  0x60   :  { %683 = vmatpush1.bf16.msra.mxu1 %v682_v40  ;;  %v722_v34 = vpack.c.bf16 %v238_v33, %v236_v32  ;;  %v243_v36 = vld [vmem:[#allocation6 + $0x1f8] sm:$0xff]  ;;  %v240_v38 = vld [vmem:[#allocation6 + $0x1e0] sm:$0xff]  ;;  %v242_v39 = vld [vmem:[#allocation6 + $0x1f0] sm:$0xff] }
  0x61   :  { %685 = vmatprep.subr.bf16.mxu1 %v684_v41  ;;  %v724_v37 = vpack.c.bf16 %v243_v36, %v241_v35  ;;  %v726_v40 = vpack.c.bf16 %v242_v39, %v240_v38  ;;  %v330_v41 = vld [vmem:[#allocation7 + $0x8] sm:$0xff]  ;;  %v332_v43 = vld [vmem:[#allocation7 + $0x18] sm:$0xff]  ;;  %v341_v54 = vld [vmem:[#allocation7 + $0x60] sm:$0xff] }
  0x62   :  { %v334_v42 = vld [vmem:[#allocation7 + $0x28] sm:$0xff]  ;;  %v336_v45 = vld [vmem:[#allocation7 + $0x38] sm:$0xff]  ;;  %v349_v60 = vld [vmem:[#allocation7 + $0xa0] sm:$0xff] }
  0x63   :  { %v728_v44 = vpack.c.bf16 %v334_v42, %v330_v41  ;;  %v792_v48 = vpack.c.bf16 %v336_v45, %v332_v43  ;;  %v338_v50 = vld [vmem:[#allocation7 + $0x48] sm:$0xff]  ;;  %v357_v2 = vld [vmem:[#allocation7 + $0xe0] sm:$0xff] }
  0x64   :  { %687 = vmatpush1.bf16.msra.mxu1 %v686_v46  ;;  %v329_v46 = vld [vmem:[#allocation7] sm:$0xff]  ;;  %v342_v51 = vld [vmem:[#allocation7 + $0x68] sm:$0xff] }
  0x65   :  { %689 = vmatprep.subr.bf16.mxu1 %v688_v47  ;;  %v333_v47 = vld [vmem:[#allocation7 + $0x20] sm:$0xff]  ;;  %729 = vmatprep.subr.bf16.mxu0 %v728_v44  ;;  %v346_v56 = vld [vmem:[#allocation7 + $0x88] sm:$0xff] }
  0x66   :  { %v730_v49 = vpack.c.bf16 %v333_v47, %v329_v46  ;;  %v350_v57 = vld [vmem:[#allocation7 + $0xa8] sm:$0xff]  ;;  %v365_v8 = vld [vmem:[#allocation7 + $0x120] sm:$0xff] }
  0x67   :  { %v354_v62 = vld [vmem:[#allocation7 + $0xc8] sm:$0xff]  ;;  %v373_v14 = vld [vmem:[#allocation7 + $0x160] sm:$0xff] }
  0x68   :  { %691 = vmatpush1.bf16.msra.mxu1 %v690_v52  ;;  %731 = vmatpush1.bf16.msra.mxu0 %v730_v49  ;;  %v732_v52 = vpack.c.bf16 %v342_v51, %v338_v50  ;;  %v358_v63 = vld [vmem:[#allocation7 + $0xe8] sm:$0xff]  ;;  %v381_v20 = vld [vmem:[#allocation7 + $0x1a0] sm:$0xff] }
  0x69   :  { %693 = vmatprep.subr.bf16.mxu1 %v692_v53  ;;  %v337_v53 = vld [vmem:[#allocation7 + $0x40] sm:$0xff]  ;;  %v362_v4 = vld [vmem:[#allocation7 + $0x108] sm:$0xff] }
  0x6a   :  { %v734_v55 = vpack.c.bf16 %v341_v54, %v337_v53  ;;  %733 = vmatprep.subr.bf16.mxu0 %v732_v52  ;;  %v366_v5 = vld [vmem:[#allocation7 + $0x128] sm:$0xff]  ;;  %v389_v26 = vld [vmem:[#allocation7 + $0x1e0] sm:$0xff] }
  0x6b   :  { %v370_v10 = vld [vmem:[#allocation7 + $0x148] sm:$0xff]  ;;  %v397_v32 = vld [vmem:[#allocation7 + $0x220] sm:$0xff] }
  0x6c   :  { %695 = vmatpush1.bf16.msra.mxu1 %v694_v58  ;;  %v736_v58 = vpack.c.bf16 %v350_v57, %v346_v56  ;;  %735 = vmatpush1.bf16.msra.mxu0 %v734_v55  ;;  %v374_v11 = vld [vmem:[#allocation7 + $0x168] sm:$0xff]  ;;  %v405_v38 = vld [vmem:[#allocation7 + $0x260] sm:$0xff] }
  0x6d   :  { %697 = vmatprep.subr.bf16.mxu1 %v696_v59  ;;  %v345_v59 = vld [vmem:[#allocation7 + $0x80] sm:$0xff]  ;;  %v378_v16 = vld [vmem:[#allocation7 + $0x188] sm:$0xff] }
  0x6e   :  { %v738_v61 = vpack.c.bf16 %v349_v60, %v345_v59  ;;  %737 = vmatprep.subr.bf16.mxu0 %v736_v58  ;;  %v382_v17 = vld [vmem:[#allocation7 + $0x1a8] sm:$0xff]  ;;  %v409_v43 = vld [vmem:[#allocation7 + $0x280] sm:$0xff] }
  0x6f   :  { %v386_v22 = vld [vmem:[#allocation7 + $0x1c8] sm:$0xff]  ;;  %v413_v44 = vld [vmem:[#allocation7 + $0x2a0] sm:$0xff] }
  0x70   :  { %699 = vmatpush1.bf16.msra.mxu1 %v698_v0  ;;  %v740_v0 = vpack.c.bf16 %v358_v63, %v354_v62  ;;  %739 = vmatpush1.bf16.msra.mxu0 %v738_v61  ;;  %v390_v23 = vld [vmem:[#allocation7 + $0x1e8] sm:$0xff]  ;;  %v770_v45 = vpack.c.bf16 %v413_v44, %v409_v43  ;;  %v417_v49 = vld [vmem:[#allocation7 + $0x2c0] sm:$0xff]  ;;  %v376_v43 = vld [vmem:[#allocation7 + $0x178] sm:$0xff] }
  0x71   :  { %701 = vmatprep.subr.bf16.mxu1 %v700_v1  ;;  %v353_v1 = vld [vmem:[#allocation7 + $0xc0] sm:$0xff]  ;;  %v394_v28 = vld [vmem:[#allocation7 + $0x208] sm:$0xff] }
  0x72   :  { %v742_v3 = vpack.c.bf16 %v357_v2, %v353_v1  ;;  %741 = vmatprep.subr.bf16.mxu0 %v740_v0  ;;  %v398_v29 = vld [vmem:[#allocation7 + $0x228] sm:$0xff]  ;;  %v421_v50 = vld [vmem:[#allocation7 + $0x2e0] sm:$0xff] }
  0x73   :  { %v406_v35 = vld [vmem:[#allocation7 + $0x268] sm:$0xff]  ;;  %v774_v51 = vpack.c.bf16 %v421_v50, %v417_v49  ;;  %v425_v55 = vld [vmem:[#allocation7 + $0x300] sm:$0xff]  ;;  %v384_v49 = vld [vmem:[#allocation7 + $0x1b8] sm:$0xff] }
  0x74   :  { %703 = vmatpush1.bf16.msra.mxu1 %v702_v6  ;;  %v744_v6 = vpack.c.bf16 %v366_v5, %v362_v4  ;;  %743 = vmatpush1.bf16.msra.mxu0 %v742_v3  ;;  %v414_v41 = vld [vmem:[#allocation7 + $0x2a8] sm:$0xff]  ;;  %v429_v56 = vld [vmem:[#allocation7 + $0x320] sm:$0xff]  ;;  %v86_v3 = vlaneseq }
  0x75   :  { %705 = vmatprep.subr.bf16.mxu1 %v704_v7  ;;  %v361_v7 = vld [vmem:[#allocation7 + $0x100] sm:$0xff]  ;;  %v418_v46 = vld [vmem:[#allocation7 + $0x2c8] sm:$0xff]  ;;  %v778_v57 = vpack.c.bf16 %v429_v56, %v425_v55  ;;  %v392_v55 = vld [vmem:[#allocation7 + $0x1f8] sm:$0xff] }
  0x76   :  { %v746_v9 = vpack.c.bf16 %v365_v8, %v361_v7  ;;  %745 = vmatprep.subr.bf16.mxu0 %v744_v6  ;;  %v422_v47 = vld [vmem:[#allocation7 + $0x2e8] sm:$0xff]  ;;  %v433_v61 = vld [vmem:[#allocation7 + $0x340] sm:$0xff]  ;;  %v1074_v4 = vshrl.u32 %v86_v3, 7  ;;  %v84_v6 = vld [vmem:[%s1105_s2] sm:$0x3] }
  0x77   :  { %v426_v52 = vld [vmem:[#allocation7 + $0x308] sm:$0xff]  ;;  %v437_v62 = vld [vmem:[#allocation7 + $0x360] sm:$0xff]  ;;  %v408_v3 = vld [vmem:[#allocation7 + $0x278] sm:$0xff] }
  0x78   :  { %707 = vmatpush1.bf16.msra.mxu1 %v706_v12  ;;  %v748_v12 = vpack.c.bf16 %v374_v11, %v370_v10  ;;  %747 = vmatpush1.bf16.msra.mxu0 %v746_v9  ;;  %v430_v53 = vld [vmem:[#allocation7 + $0x328] sm:$0xff]  ;;  %v782_v63 = vpack.c.bf16 %v437_v62, %v433_v61  ;;  %v1077_v5 = vsub.s32 0, %v1074_v4  ;;  %v1083_v7 = vsub.s32 1, %v1074_v4  ;;  %v400_v61 = vld [vmem:[#allocation7 + $0x238] sm:$0xff] }
  0x79   :  { %709 = vmatprep.subr.bf16.mxu1 %v708_v13  ;;  %v369_v13 = vld [vmem:[#allocation7 + $0x140] sm:$0xff]  ;;  %v776_v54 = vpack.c.bf16 %v430_v53, %v426_v52  ;;  %v434_v58 = vld [vmem:[#allocation7 + $0x348] sm:$0xff]  ;;  %v379_v52 = vld [vmem:[#allocation7 + $0x190] sm:$0xff] }
  0x7a   :  { %v750_v15 = vpack.c.bf16 %v373_v14, %v369_v13  ;;  %749 = vmatprep.subr.bf16.mxu0 %v748_v12  ;;  %v438_v59 = vld [vmem:[#allocation7 + $0x368] sm:$0xff]  ;;  %v89_v8 = vrot.slane %v84_v6, %v1077_v5  ;;  %v93_v9 = vrot.slane %v84_v6, %v1083_v7  ;;  %v331_v13 = vld [vmem:[#allocation7 + $0x10] sm:$0xff] }
  0x7b   :  { %v780_v60 = vpack.c.bf16 %v438_v59, %v434_v58  ;;  %v442_v0 = vld [vmem:[#allocation7 + $0x388] sm:$0xff]  ;;  %v335_v14 = vld [vmem:[#allocation7 + $0x30] sm:$0xff] }
  0x7c   :  { %711 = vmatpush1.bf16.msra.mxu1 %v710_v18  ;;  %v752_v18 = vpack.c.bf16 %v382_v17, %v378_v16  ;;  %751 = vmatpush1.bf16.msra.mxu0 %v750_v15  ;;  %v446_v1 = vld [vmem:[#allocation7 + $0x3a8] sm:$0xff]  ;;  %v340_v16 = vld [vmem:[#allocation7 + $0x58] sm:$0xff]  ;;  %v383_v53 = vld [vmem:[#allocation7 + $0x1b0] sm:$0xff] }
  0x7d   :  { %713 = vmatprep.subr.bf16.mxu1 %v712_v19  ;;  %v377_v19 = vld [vmem:[#allocation7 + $0x180] sm:$0xff]  ;;  %v784_v2 = vpack.c.bf16 %v446_v1, %v442_v0  ;;  %v344_v17 = vld [vmem:[#allocation7 + $0x78] sm:$0xff]  ;;  %v818_v56 = vpack.c.bf16 %v383_v53, %v379_v52  ;;  %v387_v58 = vld [vmem:[#allocation7 + $0x1d0] sm:$0xff] }
  0x7e   :  { %v754_v21 = vpack.c.bf16 %v381_v20, %v377_v19  ;;  %753 = vmatprep.subr.bf16.mxu0 %v752_v18  ;;  %v794_v19 = vpack.c.bf16 %v335_v14, %v331_v13  ;;  %v391_v59 = vld [vmem:[#allocation7 + $0x1f0] sm:$0xff] }
  0x7f   :  { %v822_v62 = vpack.c.bf16 %v391_v59, %v387_v58  ;;  %v395_v0 = vld [vmem:[#allocation7 + $0x210] sm:$0xff] }
  0x80   :  { %715 = vmatpush1.bf16.msra.mxu1 %v714_v24  ;;  %v756_v24 = vpack.c.bf16 %v390_v23, %v386_v22  ;;  %755 = vmatpush1.bf16.msra.mxu0 %v754_v21  ;;  %v796_v21 = vpack.c.bf16 %v344_v17, %v340_v16  ;;  %v339_v22 = vld [vmem:[#allocation7 + $0x50] sm:$0xff]  ;;  %v420_v17 = vld [vmem:[#allocation7 + $0x2d8] sm:$0xff] }
  0x81   :  { %717 = vmatprep.subr.bf16.mxu1 %v716_v25  ;;  %v385_v25 = vld [vmem:[#allocation7 + $0x1c0] sm:$0xff]  ;;  %v343_v23 = vld [vmem:[#allocation7 + $0x70] sm:$0xff] }
  0x82   :  { %v758_v27 = vpack.c.bf16 %v389_v26, %v385_v25  ;;  %757 = vmatprep.subr.bf16.mxu0 %v756_v24  ;;  %v348_v24 = vld [vmem:[#allocation7 + $0x98] sm:$0xff]  ;;  %v798_v26 = vpack.c.bf16 %v343_v23, %v339_v22  ;;  %v399_v1 = vld [vmem:[#allocation7 + $0x230] sm:$0xff] }
  0x83   :  { %v352_v25 = vld [vmem:[#allocation7 + $0xb8] sm:$0xff]  ;;  %v826_v6 = vpack.c.bf16 %v399_v1, %v395_v0  ;;  %v415_v16 = vld [vmem:[#allocation7 + $0x2b0] sm:$0xff] }
  0x84   :  { %719 = vmatpush1.bf16.msra.mxu1 %v718_v30  ;;  %v760_v30 = vpack.c.bf16 %v398_v29, %v394_v28  ;;  %759 = vmatpush1.bf16.msra.mxu0 %v758_v27  ;;  %v800_v27 = vpack.c.bf16 %v352_v25, %v348_v24  ;;  %v347_v28 = vld [vmem:[#allocation7 + $0x90] sm:$0xff]  ;;  %v428_v23 = vld [vmem:[#allocation7 + $0x318] sm:$0xff] }
  0x85   :  { %721 = vmatprep.subr.bf16.mxu1 %v720_v31  ;;  %v393_v31 = vld [vmem:[#allocation7 + $0x200] sm:$0xff]  ;;  %v351_v29 = vld [vmem:[#allocation7 + $0xb0] sm:$0xff]  ;;  %v432_v24 = vld [vmem:[#allocation7 + $0x338] sm:$0xff] }
  0x86   :  { %v762_v33 = vpack.c.bf16 %v397_v32, %v393_v31  ;;  %761 = vmatprep.subr.bf16.mxu0 %v760_v30  ;;  %v356_v30 = vld [vmem:[#allocation7 + $0xd8] sm:$0xff]  ;;  %v802_v32 = vpack.c.bf16 %v351_v29, %v347_v28  ;;  %v423_v22 = vld [vmem:[#allocation7 + $0x2f0] sm:$0xff] }
  0x87   :  { %v360_v31 = vld [vmem:[#allocation7 + $0xf8] sm:$0xff]  ;;  %v431_v28 = vld [vmem:[#allocation7 + $0x330] sm:$0xff] }
  0x88   :  { %723 = vmatpush1.bf16.msra.mxu1 %v722_v34  ;;  %v402_v34 = vld [vmem:[#allocation7 + $0x248] sm:$0xff]  ;;  %763 = vmatpush1.bf16.msra.mxu0 %v762_v33  ;;  %v804_v33 = vpack.c.bf16 %v360_v31, %v356_v30  ;;  %v436_v29 = vld [vmem:[#allocation7 + $0x358] sm:$0xff] }
  0x89   :  { %725 = vmatprep.subr.bf16.mxu1 %v724_v37  ;;  %v764_v36 = vpack.c.bf16 %v406_v35, %v402_v34  ;;  %v401_v37 = vld [vmem:[#allocation7 + $0x240] sm:$0xff]  ;;  %v355_v34 = vld [vmem:[#allocation7 + $0xd0] sm:$0xff]  ;;  %v440_v30 = vld [vmem:[#allocation7 + $0x378] sm:$0xff] }
  0x8a   :  { %v766_v39 = vpack.c.bf16 %v405_v38, %v401_v37  ;;  %v359_v35 = vld [vmem:[#allocation7 + $0xf0] sm:$0xff]  ;;  %v368_v37 = vld [vmem:[#allocation7 + $0x138] sm:$0xff] }
  0x8b   :  { %765 = vmatprep.subr.bf16.mxu0 %v764_v36  ;;  %v364_v36 = vld [vmem:[#allocation7 + $0x118] sm:$0xff]  ;;  %v806_v38 = vpack.c.bf16 %v359_v35, %v355_v34  ;;  %v439_v34 = vld [vmem:[#allocation7 + $0x370] sm:$0xff] }
  0x8c   :  { %727 = vmatpush1.bf16.msra.mxu1 %v726_v40  ;;  %v410_v40 = vld [vmem:[#allocation7 + $0x288] sm:$0xff]  ;;  %767 = vmatpush1.bf16.msra.mxu0 %v766_v39  ;;  %v808_v39 = vpack.c.bf16 %v368_v37, %v364_v36  ;;  %v444_v35 = vld [vmem:[#allocation7 + $0x398] sm:$0xff] }
  0x8d   :  { %793 = vmatprep.subr.bf16.mxu1 %v792_v48  ;;  %v768_v42 = vpack.c.bf16 %v414_v41, %v410_v40  ;;  %v772_v48 = vpack.c.bf16 %v422_v47, %v418_v46  ;;  %v363_v40 = vld [vmem:[#allocation7 + $0x110] sm:$0xff]  ;;  %v448_v36 = vld [vmem:[#allocation7 + $0x3b8] sm:$0xff] }
  0x8e   :  { %v367_v41 = vld [vmem:[#allocation7 + $0x130] sm:$0xff] }
  0x8f   :  { %769 = vmatprep.subr.bf16.mxu0 %v768_v42  ;;  %v372_v42 = vld [vmem:[#allocation7 + $0x158] sm:$0xff]  ;;  %v810_v44 = vpack.c.bf16 %v367_v41, %v363_v40  ;;  %v371_v46 = vld [vmem:[#allocation7 + $0x150] sm:$0xff]  ;;  %v445_v40 = vld [vmem:[#allocation7 + $0x3a0] sm:$0xff] }
  0x90   :  { %771 = vmatpush1.bf16.msra.mxu0 %v770_v45  ;;  %v812_v45 = vpack.c.bf16 %v376_v43, %v372_v42  ;;  %v375_v47 = vld [vmem:[#allocation7 + $0x170] sm:$0xff] }
  0x91   :  { %773 = vmatprep.subr.bf16.mxu0 %v772_v48  ;;  %v380_v48 = vld [vmem:[#allocation7 + $0x198] sm:$0xff]  ;;  %v814_v50 = vpack.c.bf16 %v375_v47, %v371_v46  ;;  %v443_v41 = vld [vmem:[#allocation7 + $0x390] sm:$0xff]  ;;  %v454_v46 = vld [vmem:[#allocation7 + $0x3e8] sm:$0xff] }
  0x92   :  { %v447_v43 = vld [vmem:[#allocation7 + $0x3b0] sm:$0xff]  ;;  %v452_v47 = vld [vmem:[#allocation7 + $0x3d8] sm:$0xff] }
  0x94   :  { %775 = vmatpush1.bf16.msra.mxu0 %v774_v51  ;;  %v816_v51 = vpack.c.bf16 %v384_v49, %v380_v48  ;;  %v456_v49 = vld [vmem:[#allocation7 + $0x3f8] sm:$0xff] }
  0x95   :  { %777 = vmatprep.subr.bf16.mxu0 %v776_v54  ;;  %v388_v54 = vld [vmem:[#allocation7 + $0x1d8] sm:$0xff]  ;;  %v852_v52 = vpack.c.bf16 %v456_v49, %v452_v47 }
  0x98   :  { %779 = vmatpush1.bf16.msra.mxu0 %v778_v57  ;;  %v820_v57 = vpack.c.bf16 %v392_v55, %v388_v54  ;;  %v451_v54 = vld [vmem:[#allocation7 + $0x3d0] sm:$0xff] }
  0x99   :  { %781 = vmatprep.subr.bf16.mxu0 %v780_v60  ;;  %v396_v60 = vld [vmem:[#allocation7 + $0x218] sm:$0xff]  ;;  %v455_v55 = vld [vmem:[#allocation7 + $0x3f0] sm:$0xff] }
  0x9c   :  { %783 = vmatpush1.bf16.msra.mxu0 %v782_v63  ;;  %v824_v63 = vpack.c.bf16 %v400_v61, %v396_v60 }
  0x9d   :  { %785 = vmatprep.subr.bf16.mxu0 %v784_v2  ;;  %v404_v2 = vld [vmem:[#allocation7 + $0x258] sm:$0xff] }
 0x124   :  { %v173_v10 = vpop.f32.mrb[0].mxu0 }
 0x125   :  { %v174_v11 = vadd.f32 %v173_v10, %v89_v8  ;;  %v175_v12 = vpop.f32.mrb[1].mxu0  ;;  %v828_v8 = vpack.c.bf16 %v408_v3, %v404_v2  ;;  %v407_v10 = vld [vmem:[#allocation7 + $0x270] sm:$0xff]  ;;  %v469_v2 = vsub.s32 2, %v1074_v4  ;;  %v457_v3 = vld [vmem:[%s1109_s6] sm:$0xf] }
 0x126   :  { %v176_v15 = vadd.f32 %v175_v12, %v93_v9  ;;  %v403_v9 = vld [vmem:[#allocation7 + $0x250] sm:$0xff]  ;;  %v416_v12 = vld [vmem:[#allocation7 + $0x2b8] sm:$0xff] }
 0x127   :  { %v178_v20 = vmax.f32 %v174_v11, 0.0  ;;  %v412_v11 = vld [vmem:[#allocation7 + $0x298] sm:$0xff]  ;;  %v830_v13 = vpack.c.bf16 %v407_v10, %v403_v9  ;;  %v462_v10 = vrot.slane %v457_v3, %v1077_v5 }
 0x128   :  { %v179_v18 = vmax.f32 %v176_v15, 0.0  ;;  %v832_v14 = vpack.c.bf16 %v416_v12, %v412_v11  ;;  %v411_v15 = vld [vmem:[#allocation7 + $0x290] sm:$0xff]  ;;  %v470_v11 = vrot.slane %v457_v3, %v469_v2  ;;  %v466_v12 = vrot.slane %v457_v3, %v1083_v7 }
 0x12a   :  { %320 = vmatprep.mubr.f32.mxu1 %v179_v18  ;;  %v424_v18 = vld [vmem:[#allocation7 + $0x2f8] sm:$0xff] }
 0x12b   :  { %321 = vmatmul.mubr.f32.vlgmr.msra.gmra.mrb[0].mxu1 %v178_v20  ;;  %v836_v20 = vpack.c.bf16 %v424_v18, %v420_v17 }
 0x12c   :  { %795 = vmatpush1.bf16.msra.mxu1 %v794_v19  ;;  %v834_v19 = vpack.c.bf16 %v415_v16, %v411_v15 }
 0x12d   :  { %797 = vmatprep.subr.bf16.mxu1 %v796_v21  ;;  %v419_v21 = vld [vmem:[#allocation7 + $0x2d0] sm:$0xff] }
 0x12e   :  { %v838_v25 = vpack.c.bf16 %v423_v22, %v419_v21 }
 0x130   :  { %799 = vmatpush1.bf16.msra.mxu1 %v798_v26  ;;  %v840_v26 = vpack.c.bf16 %v432_v24, %v428_v23 }
 0x131   :  { %801 = vmatprep.subr.bf16.mxu1 %v800_v27  ;;  %v427_v27 = vld [vmem:[#allocation7 + $0x310] sm:$0xff] }
 0x132   :  { %v842_v31 = vpack.c.bf16 %v431_v28, %v427_v27 }
 0x134   :  { %803 = vmatpush1.bf16.msra.mxu1 %v802_v32  ;;  %v844_v32 = vpack.c.bf16 %v440_v30, %v436_v29 }
 0x135   :  { %805 = vmatprep.subr.bf16.mxu1 %v804_v33  ;;  %v435_v33 = vld [vmem:[#allocation7 + $0x350] sm:$0xff] }
 0x136   :  { %v846_v37 = vpack.c.bf16 %v439_v34, %v435_v33 }
 0x138   :  { %807 = vmatpush1.bf16.msra.mxu1 %v806_v38  ;;  %v848_v38 = vpack.c.bf16 %v448_v36, %v444_v35 }
 0x139   :  { %809 = vmatprep.subr.bf16.mxu1 %v808_v39  ;;  %v441_v39 = vld [vmem:[#allocation7 + $0x380] sm:$0xff] }
 0x13a   :  { %v786_v42 = vpack.c.bf16 %v445_v40, %v441_v39 }
 0x13c   :  { %811 = vmatpush1.bf16.msra.mxu1 %v810_v44  ;;  %v850_v44 = vpack.c.bf16 %v447_v43, %v443_v41  ;;  %787 = vmatpush1.bf16.msra.mxu0 %v786_v42 }
 0x13d   :  { %813 = vmatprep.subr.bf16.mxu1 %v812_v45  ;;  %v450_v45 = vld [vmem:[#allocation7 + $0x3c8] sm:$0xff] }
 0x13e   :  { %v788_v48 = vpack.c.bf16 %v454_v46, %v450_v45 }
 0x140   :  { %815 = vmatpush1.bf16.msra.mxu1 %v814_v50  ;;  %v449_v50 = vld [vmem:[#allocation7 + $0x3c0] sm:$0xff]  ;;  %789 = vmatprep.subr.bf16.mxu0 %v788_v48 }
 0x141   :  { %817 = vmatprep.subr.bf16.mxu1 %v816_v51  ;;  %v453_v51 = vld [vmem:[#allocation7 + $0x3e0] sm:$0xff] }
 0x142   :  { %v790_v53 = vpack.c.bf16 %v453_v51, %v449_v50 }
 0x144   :  { %819 = vmatpush1.bf16.msra.mxu1 %v818_v56  ;;  %v854_v56 = vpack.c.bf16 %v455_v55, %v451_v54  ;;  %791 = vmatpush1.bf16.msra.mxu0 %v790_v53 }
 0x145   :  { %821 = vmatprep.subr.bf16.mxu1 %v820_v57  ;;  %v244_v57 = vld [vmem:[%s1107_s4] sm:$0x3] }
 0x146   :  { %v249_v58 = vrot.slane %v244_v57, %v1077_v5  ;;  %v253_v59 = vrot.slane %v244_v57, %v1083_v7 }
 0x148   :  { %823 = vmatpush1.bf16.msra.mxu1 %v822_v62 }
 0x149   :  { %825 = vmatprep.subr.bf16.mxu1 %v824_v63 }
 0x14c   :  { %827 = vmatpush1.bf16.msra.mxu1 %v826_v6  ;;  %v473_v6 = vsub.s32 3, %v1074_v4 }
 0x14d   :  { %829 = vmatprep.subr.bf16.mxu1 %v828_v8  ;;  %v971_v8 = vmov 1983009808  }
 0x14e   :  { %v632_v9 = vunpack.c.l.s4 %v971_v8 }
 0x150   :  { %831 = vmatpush1.bf16.msra.mxu1 %v830_v13  ;;  %v474_v13 = vrot.slane %v457_v3, %v473_v6  ;;  %v633_v16 = vunpack.c.0.s8 %v632_v9 }
 0x151   :  { %833 = vmatprep.subr.bf16.mxu1 %v832_v14 }
 0x154   :  { %835 = vmatpush1.bf16.msra.mxu1 %v834_v19 }
 0x155   :  { %837 = vmatprep.subr.bf16.mxu1 %v836_v20 }
 0x158   :  { %839 = vmatpush1.bf16.msra.mxu1 %v838_v25 }
 0x159   :  { %841 = vmatprep.subr.bf16.mxu1 %v840_v26  ;;  %v636_v26 = vsub.s32 %v633_v16, %v1074_v4 }
 0x15c   :  { %843 = vmatpush1.bf16.msra.mxu1 %v842_v31 }
 0x15d   :  { %845 = vmatprep.subr.bf16.mxu1 %v844_v32 }
 0x160   :  { %847 = vmatpush1.bf16.msra.mxu1 %v846_v37 }
 0x161   :  { %849 = vmatprep.subr.bf16.mxu1 %v848_v38 }
 0x164   :  { %851 = vmatpush1.bf16.msra.mxu1 %v850_v44 }
 0x165   :  { %853 = vmatprep.subr.bf16.mxu1 %v852_v52 }
 0x168   :  { %855 = vmatpush1.bf16.msra.mxu1 %v854_v56 }
 0x1fe   :  { %v322_v60 = vpop.f32.mrb[0].mxu1 }
 0x1ff   :  { %v323_v61 = vadd.f32 %v322_v60, %v249_v58  ;;  %v324_v62 = vpop.f32.mrb[1].mxu1 }
 0x200   :  { %v325_v63 = vadd.f32 %v324_v62, %v253_v59 }
 0x201   :  { %v327_v1 = vmax.f32 %v323_v61, 0.0 }
 0x202   :  { %v328_v0 = vmax.f32 %v325_v63, 0.0 }
 0x204   :  { %543 = vmatprep.mubr.f32.mxu0 %v328_v0  ;;  %614 = vmatprep.mubr.f32.mxu1 %v328_v0 }
 0x205   :  { %544 = vmatmul.mubr.f32.vlgmr.msra.gmra.mrb[2].mxu0 %v327_v1  ;;  %615 = vmatmul.mubr.f32.vlgmr.msra.gmra.mrb[2].mxu1 %v327_v1 }
 0x2d8   :  { %v545_v14 = vpop.f32.mrb[2].mxu0  ;;  %v616_v15 = vpop.f32.mrb[2].mxu1 }
 0x2d9   :  { %v546_v17 = vadd.f32 %v545_v14, %v462_v10  ;;  %v617_v18 = vadd.f32 %v616_v15, %v470_v11  ;;  %v547_v19 = vpop.f32.mrb[3].mxu0  ;;  %v618_v20 = vpop.f32.mrb[3].mxu1 }
 0x2da   :  { %v548_v21 = vadd.f32 %v547_v19, %v466_v12  ;;  %v619_v22 = vadd.f32 %v618_v20, %v474_v13 }
 0x2db   :  { %v621_v23 = vmax.f32 %v546_v17, 0.0  ;;  %v623_v24 = vmax.f32 %v617_v18, 0.0 }
 0x2dc   :  { %v622_v25 = vmax.f32 %v548_v21, 0.0  ;;  %v624_v27 = vmax.f32 %v619_v22, 0.0 }
 0x2de   :  { %v629_v5 = vcombine.low %v621_v23, %v622_v25  ;;  %v630_v28 = vcombine.low %v623_v24, %v624_v27 }
 0x2e0   :  { %v637_v29 = vrot.slane %v629_v5, %v636_v26  ;;  %v644_v7 = vrot.slane %v630_v28, %v636_v26 }
 0x2e2   :  { %v645_v30 = vcombine.low %v637_v29, %v644_v7 }
 0x2e4   :  { %647 = vst [vmem:[%s1110_s7] sm:$0xff] %v645_v30 }
 0x2e5   :  { %652 = vsyncpa [#allocation3], 1 }
 0x2e6   :  { %653 = vsyncpa [#allocation5], 1 }
 0x2e7   :  { %654 = vsyncpa [#allocation8], 1 }

// kernel: decoder_burgess_forward.6
= control target key start
LH: loop header
LB: loop body
LE: loop exit
PB: predicated region body
PF: predicated region fallthrough
CT: control target
= control target key end

     0   :  { %vm54_vm0 = vcmask 261120   ;;  %s3783_s1 = inlined_call_operand.vmem [shape: f32[288,128], index: 1, kind: input, shape index: {}]   ;;  %s3784_s0 = inlined_call_operand.vmem [shape: f32[2,10,10,32], index: 0, kind: input, shape index: {}]   ;;  %s3785_s2 = inlined_call_operand.vmem [shape: f32[1,128], index: 2, kind: input, shape index: {}]   ;;  %s3786_s3 = inlined_call_operand.vmem [shape: f32[128,128], index: 3, kind: output, shape index: {}]  }
   0x1   :  { %v50_v0 = vld [vmem:[%s3783_s1 + $0x20] sm:$0xff]  ;;  %v51_v1 = vld [vmem:[%s3783_s1 + $0x28] sm:$0xff]  ;;  %v52_v5 = vld [vmem:[%s3783_s1 + $0x30] sm:$0xff] }
   0x2   :  { %v916_v2 = vld [vmem:[%s3783_s1 + $0x80] sm:$0xff]  ;;  %v2814_v3 = vpack.c.bf16 %v51_v1, %v50_v0  ;;  %v917_v4 = vld [vmem:[%s3783_s1 + $0x88] sm:$0xff]  ;;  %v53_v6 = vld [vmem:[%s3783_s1 + $0x38] sm:$0xff] }
   0x3   :  { %v3056_v7 = vpack.c.bf16 %v917_v4, %v916_v2  ;;  %v2818_v8 = vpack.c.bf16 %v53_v6, %v52_v5  ;;  %v918_v9 = vld [vmem:[%s3783_s1 + $0x90] sm:$0xff]  ;;  %v919_v10 = vld [vmem:[%s3783_s1 + $0x98] sm:$0xff]  ;;  %v34_v11 = vld [vmem:[%s3784_s0 + $0x1] sm:$0xff] }
   0x4   :  { %2815 = vmatprep.subr.bf16.mxu1 %v2814_v3  ;;  %v3067_v12 = vpack.c.bf16 %v919_v10, %v918_v9  ;;  %2534 = vmatprep.mubr.msk.f32.mxu1 %vm54_vm0, %v34_v11  ;;  %v2185_v13 = vld [vmem:[%s3784_s0 + $0x11] sm:$0xff]  ;;  %v30_v14 = vld [vmem:[%s3783_s1] sm:$0xff]  ;;  %v31_v15 = vld [vmem:[%s3783_s1 + $0x8] sm:$0xff] }
   0x5   :  { %2847 = vmatprep.subr.bf16.mxu0 %v3056_v7  ;;  %2817 = vmatpush3.bf16.msra.mxu1 %v2814_v3  ;;  %v1145_v16 = vld [vmem:[%s3783_s1 + $0xa0] sm:$0xff]  ;;  %v1146_v17 = vld [vmem:[%s3783_s1 + $0xa8] sm:$0xff]  ;;  %v2822_v18 = vpack.c.bf16 %v31_v15, %v30_v14  ;;  %v1147_v20 = vld [vmem:[%s3783_s1 + $0xb0] sm:$0xff] }
   0x6   :  { %2849 = vmatpush3.bf16.msra.mxu0 %v3056_v7  ;;  %2819 = vmatprep.subr.bf16.mxu1 %v2818_v8  ;;  %v2854_v19 = vpack.c.bf16 %v1146_v17, %v1145_v16  ;;  %v1148_v21 = vld [vmem:[%s3783_s1 + $0xb8] sm:$0xff]  ;;  %v32_v22 = vld [vmem:[%s3783_s1 + $0x10] sm:$0xff]  ;;  %v3102_v23 = vld [vmem:[%s3784_s0 + $0x21] sm:$0xff] }
   0x7   :  { %2851 = vmatprep.subr.bf16.mxu0 %v3067_v12  ;;  %2662 = vmatprep.mubr.msk.f32.mxu0 %vm54_vm0, %v2185_v13  ;;  %v33_v24 = vld [vmem:[%s3783_s1 + $0x18] sm:$0xff]  ;;  %v2858_v25 = vpack.c.bf16 %v1148_v21, %v1147_v20  ;;  %v1375_v28 = vld [vmem:[%s3783_s1 + $0xc0] sm:$0xff]  ;;  %v1376_v29 = vld [vmem:[%s3783_s1 + $0xc8] sm:$0xff] }
   0x8   :  { %v3111_v26 = vld [vmem:[%s3784_s0 + $0x31] sm:$0xff]  ;;  %v2826_v27 = vpack.c.bf16 %v33_v24, %v32_v22  ;;  %v3126_v30 = vld [vmem:[%s3784_s0 + $0x41] sm:$0xff]  ;;  %v2862_v32 = vpack.c.bf16 %v1376_v29, %v1375_v28 }
   0x9   :  { %2821 = vmatpush3.bf16.msra.mxu1 %v2818_v8  ;;  %v3133_v31 = vld [vmem:[%s3784_s0 + $0x51] sm:$0xff]  ;;  %v457_v33 = vld [vmem:[%s3783_s1 + $0x40] sm:$0xff]  ;;  %v458_v34 = vld [vmem:[%s3783_s1 + $0x48] sm:$0xff] }
   0xa   :  { %2853 = vmatpush3.bf16.msra.mxu0 %v3067_v12  ;;  %2823 = vmatprep.subr.bf16.mxu1 %v2822_v18  ;;  %v3147_v35 = vpack.c.bf16 %v458_v34, %v457_v33  ;;  %v3154_v36 = vld [vmem:[%s3784_s0 + $0x61] sm:$0xff]  ;;  %v3159_v37 = vld [vmem:[%s3784_s0 + $0x71] sm:$0xff] }
   0xb   :  { %2855 = vmatprep.subr.bf16.mxu0 %v2854_v19  ;;  %v3173_v38 = vld [vmem:[%s3784_s0 + $0x81] sm:$0xff]  ;;  %v3181_v40 = vld [vmem:[%s3784_s0 + $0x12] sm:$0xff] }
   0xc   :  { %2535 = vmatmul.mubr.msk.f32.vlgmr.msra.gmra.mrb[0].mxu1 %vm54_vm0, %v2185_v13  ;;  %v42_v39 = vld [vmem:[%s3784_s0 + $0xa1] sm:$0xff]  ;;  %v1377_v41 = vld [vmem:[%s3783_s1 + $0xd0] sm:$0xff]  ;;  %v1378_v42 = vld [vmem:[%s3783_s1 + $0xd8] sm:$0xff] }
   0xd   :  { %2663 = vmatmul.mubr.msk.f32.vlgmr.msra.gmra.mrb[0].mxu0 %vm54_vm0, %v3102_v23  ;;  %2825 = vmatpush3.bf16.msra.mxu1 %v2822_v18  ;;  %v3197_v43 = vld [vmem:[%s3784_s0 + $0xb1] sm:$0xff]  ;;  %v3204_v44 = vld [vmem:[%s3784_s0 + $0x22] sm:$0xff]  ;;  %v2866_v47 = vpack.c.bf16 %v1378_v42, %v1377_v41 }
   0xe   :  { %2857 = vmatpush3.bf16.msra.mxu0 %v2854_v19  ;;  %2537 = vmatprep.mubr.msk.f32.mxu1 %vm54_vm0, %v3102_v23  ;;  %v3209_v45 = vld [vmem:[%s3784_s0 + $0xc1] sm:$0xff]  ;;  %v3214_v46 = vld [vmem:[%s3784_s0 + $0x32] sm:$0xff] }
   0xf   :  { %2665 = vmatprep.mubr.msk.f32.mxu0 %vm54_vm0, %v3111_v26  ;;  %2859 = vmatprep.subr.bf16.mxu0 %v2858_v25  ;;  %v1604_v48 = vld [vmem:[%s3783_s1 + $0xe0] sm:$0xff]  ;;  %v1605_v49 = vld [vmem:[%s3783_s1 + $0xe8] sm:$0xff]  ;;  %v3231_v50 = vld [vmem:[%s3784_s0 + $0xd1] sm:$0xff] }
  0x10   :  { %2538 = vmatmul.mubr.msk.f32.gmra.mrb[2].mxu1 %vm54_vm0, %v3111_v26  ;;  %2827 = vmatprep.subr.bf16.mxu1 %v2826_v27  ;;  %v3238_v51 = vld [vmem:[%s3784_s0 + $0x42] sm:$0xff]  ;;  %v3248_v53 = vld [vmem:[%s3784_s0 + $0x52] sm:$0xff]  ;;  %v3250_v54 = vpack.c.bf16 %v1605_v49, %v1604_v48 }
  0x11   :  { %2666 = vmatmul.mubr.msk.f32.gmra.mrb[2].mxu0 %vm54_vm0, %v3126_v30  ;;  %2540 = vmatprep.mubr.msk.f32.mxu1 %vm54_vm0, %v3126_v30  ;;  %v3243_v52 = vld [vmem:[%s3784_s0 + $0xe1] sm:$0xff]  ;;  %v3261_v55 = vld [vmem:[%s3784_s0 + $0xf1] sm:$0xff] }
  0x12   :  { %2668 = vmatprep.mubr.msk.f32.mxu0 %vm54_vm0, %v3133_v31  ;;  %2861 = vmatpush3.bf16.msra.mxu0 %v2858_v25  ;;  %v3268_v56 = vld [vmem:[%s3784_s0 + $0x62] sm:$0xff]  ;;  %v3278_v58 = vld [vmem:[%s3784_s0 + $0x72] sm:$0xff] }
  0x13   :  { %2863 = vmatprep.subr.bf16.mxu0 %v2862_v32  ;;  %2829 = vmatpush3.bf16.msra.mxu1 %v2826_v27  ;;  %v3273_v57 = vld [vmem:[%s3784_s0 + $0x101] sm:$0xff]  ;;  %v3290_v59 = vld [vmem:[%s3784_s0 + $0x111] sm:$0xff] }
  0x14   :  { %2541 = vmatmul.mubr.msk.f32.gmra.mrb[4].mxu1 %vm54_vm0, %v3133_v31  ;;  %2831 = vmatprep.subr.bf16.mxu1 %v3147_v35  ;;  %v3297_v60 = vld [vmem:[%s3784_s0 + $0x82] sm:$0xff]  ;;  %v3305_v62 = vld [vmem:[%s3784_s0 + $0xb2] sm:$0xff] }
  0x15   :  { %2669 = vmatmul.mubr.msk.f32.gmra.mrb[4].mxu0 %vm54_vm0, %v3154_v36  ;;  %2543 = vmatprep.mubr.msk.f32.mxu1 %vm54_vm0, %v3154_v36  ;;  %v14_v61 = vld [vmem:[%s3784_s0] sm:$0xff]  ;;  %v459_v63 = vld [vmem:[%s3783_s1 + $0x50] sm:$0xff]  ;;  %v460_v0 = vld [vmem:[%s3783_s1 + $0x58] sm:$0xff] }
  0x16   :  { %2671 = vmatprep.mubr.msk.f32.mxu0 %vm54_vm0, %v3159_v37  ;;  %v3321_v1 = vld [vmem:[%s3784_s0 + $0x10] sm:$0xff]  ;;  %v3328_v2 = vld [vmem:[%s3784_s0 + $0xc2] sm:$0xff]  ;;  %v2834_v5 = vpack.c.bf16 %v460_v0, %v459_v63  ;;  %v1607_v24 = vld [vmem:[%s3783_s1 + $0xf8] sm:$0xff] }
  0x17   :  { %v3333_v3 = vld [vmem:[%s3784_s0 + $0x20] sm:$0xff]  ;;  %v3338_v4 = vld [vmem:[%s3784_s0 + $0xd2] sm:$0xff]  ;;  %v688_v8 = vld [vmem:[%s3783_s1 + $0x68] sm:$0xff] }
  0x18   :  { %2544 = vmatmul.mubr.msk.f32.gmra.mrb[6].mxu1 %vm54_vm0, %v3159_v37  ;;  %v687_v6 = vld [vmem:[%s3783_s1 + $0x60] sm:$0xff]  ;;  %v3354_v9 = vld [vmem:[%s3784_s0 + $0x30] sm:$0xff] }
  0x19   :  { %2672 = vmatmul.mubr.msk.f32.gmra.mrb[6].mxu0 %vm54_vm0, %v3173_v38  ;;  %2546 = vmatprep.mubr.msk.f32.mxu1 %vm54_vm0, %v42_v39  ;;  %v3363_v10 = vld [vmem:[%s3784_s0 + $0xe2] sm:$0xff]  ;;  %v3373_v13 = vld [vmem:[%s3784_s0 + $0xf2] sm:$0xff]  ;;  %v3375_v14 = vpack.c.bf16 %v688_v8, %v687_v6 }
  0x1a   :  { %2694 = vmatprep.mubr.msk.f32.mxu0 %vm54_vm0, %v3181_v40  ;;  %v3368_v11 = vld [vmem:[%s3784_s0 + $0x40] sm:$0xff]  ;;  %v3386_v15 = vld [vmem:[%s3784_s0 + $0x50] sm:$0xff]  ;;  %v1836_v8 = vld [vmem:[%s3783_s1 + $0x118] sm:$0xff] }
  0x1b   :  { %v3393_v16 = vld [vmem:[%s3784_s0 + $0x102] sm:$0xff]  ;;  %v3403_v18 = vld [vmem:[%s3784_s0 + $0x112] sm:$0xff] }
  0x1c   :  { %2547 = vmatmul.mubr.msk.f32.gmra.mrb[8].mxu1 %vm54_vm0, %v3197_v43  ;;  %v3398_v17 = vld [vmem:[%s3784_s0 + $0x60] sm:$0xff]  ;;  %v3415_v19 = vld [vmem:[%s3784_s0 + $0x70] sm:$0xff] }
  0x1d   :  { %2695 = vmatmul.mubr.msk.f32.vlgmr.msra.gmra.mrb[0].mxu0 %vm54_vm0, %v3204_v44  ;;  %2549 = vmatprep.mubr.msk.f32.mxu1 %vm54_vm0, %v3209_v45  ;;  %v3422_v20 = vld [vmem:[%s3784_s0 + $0x122] sm:$0xff]  ;;  %v1606_v22 = vld [vmem:[%s3783_s1 + $0xf0] sm:$0xff] }
  0x1e   :  { %2865 = vmatpush3.bf16.msra.mxu0 %v2862_v32  ;;  %2697 = vmatprep.mubr.msk.f32.mxu0 %vm54_vm0, %v3214_v46  ;;  %v22_v21 = vld [vmem:[%s3784_s0 + $0xa0] sm:$0xff]  ;;  %v3441_v25 = vld [vmem:[%s3784_s0 + $0xb0] sm:$0xff]  ;;  %v2874_v28 = vpack.c.bf16 %v1607_v24, %v1606_v22  ;;  %v1834_v32 = vld [vmem:[%s3783_s1 + $0x108] sm:$0xff] }
  0x1f   :  { %2867 = vmatprep.subr.bf16.mxu0 %v2866_v47  ;;  %v3448_v27 = vld [vmem:[%s3784_s0 + $0xc0] sm:$0xff]  ;;  %v3465_v33 = vld [vmem:[%s3784_s0 + $0xd0] sm:$0xff] }
  0x20   :  { %2550 = vmatmul.mubr.msk.f32.gmra.mrb[10].mxu1 %vm54_vm0, %v3231_v50  ;;  %v1833_v29 = vld [vmem:[%s3783_s1 + $0x100] sm:$0xff]  ;;  %v3484_v39 = vld [vmem:[%s3784_s0 + $0xf0] sm:$0xff] }
  0x21   :  { %2698 = vmatmul.mubr.msk.f32.gmra.mrb[2].mxu0 %vm54_vm0, %v3238_v51  ;;  %2552 = vmatprep.mubr.msk.f32.mxu1 %vm54_vm0, %v3243_v52  ;;  %v3473_v34 = vld [vmem:[%s3784_s0 + $0xe0] sm:$0xff]  ;;  %v2256_v48 = vld [vmem:[%s3784_s0 + $0x90] sm:$0xff] }
  0x22   :  { %2700 = vmatprep.mubr.msk.f32.mxu0 %vm54_vm0, %v3248_v53  ;;  %2869 = vmatpush3.bf16.msra.mxu0 %v2866_v47  ;;  %v3491_v41 = vld [vmem:[%s3784_s0 + $0x100] sm:$0xff]  ;;  %v3507_v47 = vld [vmem:[%s3784_s0 + $0x110] sm:$0xff] }
  0x23   :  { %2871 = vmatprep.subr.bf16.mxu0 %v3250_v54  ;;  %v3496_v42 = vld [vmem:[%s3784_s0 + $0x80] sm:$0xff]  ;;  %v2264_v0 = vld [vmem:[%s3784_s0 + $0x130] sm:$0xff] }
  0x24   :  { %2553 = vmatmul.mubr.msk.f32.gmra.mrb[12].mxu1 %vm54_vm0, %v3261_v55  ;;  %v441_v49 = vld [vmem:[%s3784_s0 + $0x2] sm:$0xff]  ;;  %v1835_v6 = vld [vmem:[%s3783_s1 + $0x110] sm:$0xff] }
  0x25   :  { %2701 = vmatmul.mubr.msk.f32.gmra.mrb[4].mxu0 %vm54_vm0, %v3268_v56  ;;  %2555 = vmatprep.mubr.msk.f32.mxu1 %vm54_vm0, %v3273_v57 }
  0x26   :  { %2703 = vmatprep.mubr.msk.f32.mxu0 %vm54_vm0, %v3278_v58 }
  0x28   :  { %2556 = vmatmul.mubr.msk.f32.gmra.mrb[14].mxu1 %vm54_vm0, %v3290_v59 }
  0x29   :  { %2704 = vmatmul.mubr.msk.f32.gmra.mrb[6].mxu0 %vm54_vm0, %v3297_v60  ;;  %2566 = vmatprep.mubr.msk.f32.mxu1 %vm54_vm0, %v14_v61  ;;  %v690_v61 = vld [vmem:[%s3783_s1 + $0x78] sm:$0xff] }
  0x2a   :  { %2706 = vmatprep.mubr.msk.f32.mxu0 %vm54_vm0, %v3305_v62 }
  0x2c   :  { %2567 = vmatmul.mubr.msk.f32.vlgmr.msra.gmra.mrb[0].mxu1 %vm54_vm0, %v3321_v1 }
  0x2d   :  { %2707 = vmatmul.mubr.msk.f32.gmra.mrb[8].mxu0 %vm54_vm0, %v3328_v2  ;;  %2833 = vmatpush3.bf16.msra.mxu1 %v3147_v35  ;;  %v2878_v35 = vpack.c.bf16 %v1834_v32, %v1833_v29 }
  0x2e   :  { %2569 = vmatprep.mubr.msk.f32.mxu1 %vm54_vm0, %v3333_v3  ;;  %2709 = vmatprep.mubr.msk.f32.mxu0 %vm54_vm0, %v3338_v4 }
  0x2f   :  { %2835 = vmatprep.subr.bf16.mxu1 %v2834_v5 }
  0x30   :  { %2570 = vmatmul.mubr.msk.f32.gmra.mrb[2].mxu1 %vm54_vm0, %v3354_v9 }
  0x31   :  { %2710 = vmatmul.mubr.msk.f32.gmra.mrb[10].mxu0 %vm54_vm0, %v3363_v10  ;;  %2572 = vmatprep.mubr.msk.f32.mxu1 %vm54_vm0, %v3368_v11 }
  0x32   :  { %2712 = vmatprep.mubr.msk.f32.mxu0 %vm54_vm0, %v3373_v13  ;;  %2837 = vmatpush3.bf16.msra.mxu1 %v2834_v5  ;;  %v449_v5 = vld [vmem:[%s3784_s0 + $0xa2] sm:$0xff] }
  0x33   :  { %2839 = vmatprep.subr.bf16.mxu1 %v3375_v14 }
  0x34   :  { %2573 = vmatmul.mubr.msk.f32.gmra.mrb[4].mxu1 %vm54_vm0, %v3386_v15 }
  0x35   :  { %2713 = vmatmul.mubr.msk.f32.gmra.mrb[12].mxu0 %vm54_vm0, %v3393_v16  ;;  %2575 = vmatprep.mubr.msk.f32.mxu1 %vm54_vm0, %v3398_v17 }
  0x36   :  { %2715 = vmatprep.mubr.msk.f32.mxu0 %vm54_vm0, %v3403_v18 }
  0x38   :  { %2576 = vmatmul.mubr.msk.f32.gmra.mrb[6].mxu1 %vm54_vm0, %v3415_v19 }
  0x39   :  { %2716 = vmatmul.mubr.msk.f32.gmra.mrb[14].mxu0 %vm54_vm0, %v3422_v20  ;;  %2578 = vmatprep.mubr.msk.f32.mxu1 %vm54_vm0, %v22_v21 }
  0x3a   :  { %2726 = vmatprep.mubr.msk.f32.mxu0 %vm54_vm0, %v3333_v3 }
  0x3c   :  { %2579 = vmatmul.mubr.msk.f32.gmra.mrb[8].mxu1 %vm54_vm0, %v3441_v25 }
  0x3d   :  { %2727 = vmatmul.mubr.msk.f32.vlgmr.msra.gmra.mrb[0].mxu0 %vm54_vm0, %v3354_v9  ;;  %2581 = vmatprep.mubr.msk.f32.mxu1 %vm54_vm0, %v3448_v27 }
  0x3e   :  { %2873 = vmatpush3.bf16.msra.mxu0 %v3250_v54  ;;  %2729 = vmatprep.mubr.msk.f32.mxu0 %vm54_vm0, %v3368_v11  ;;  %v689_v54 = vld [vmem:[%s3783_s1 + $0x70] sm:$0xff] }
  0x3f   :  { %2875 = vmatprep.subr.bf16.mxu0 %v2874_v28  ;;  %v2842_v63 = vpack.c.bf16 %v690_v61, %v689_v54 }
  0x40   :  { %2582 = vmatmul.mubr.msk.f32.gmra.mrb[10].mxu1 %vm54_vm0, %v3465_v33 }
  0x41   :  { %2730 = vmatmul.mubr.msk.f32.gmra.mrb[2].mxu0 %vm54_vm0, %v3386_v15  ;;  %2584 = vmatprep.mubr.msk.f32.mxu1 %vm54_vm0, %v3473_v34 }
  0x42   :  { %2732 = vmatprep.mubr.msk.f32.mxu0 %vm54_vm0, %v3398_v17  ;;  %2877 = vmatpush3.bf16.msra.mxu0 %v2874_v28 }
  0x43   :  { %2879 = vmatprep.subr.bf16.mxu0 %v2878_v35 }
  0x44   :  { %2585 = vmatmul.mubr.msk.f32.gmra.mrb[12].mxu1 %vm54_vm0, %v3484_v39 }
  0x45   :  { %2733 = vmatmul.mubr.msk.f32.gmra.mrb[4].mxu0 %vm54_vm0, %v3415_v19  ;;  %2587 = vmatprep.mubr.msk.f32.mxu1 %vm54_vm0, %v3491_v41 }
  0x46   :  { %2735 = vmatprep.mubr.msk.f32.mxu0 %vm54_vm0, %v3496_v42 }
  0x48   :  { %2588 = vmatmul.mubr.msk.f32.gmra.mrb[14].mxu1 %vm54_vm0, %v3507_v47 }
  0x49   :  { %2736 = vmatmul.mubr.msk.f32.gmra.mrb[6].mxu0 %vm54_vm0, %v2256_v48  ;;  %2598 = vmatprep.mubr.msk.f32.mxu1 %vm54_vm0, %v441_v49 }
  0x4a   :  { %2738 = vmatprep.mubr.msk.f32.mxu0 %vm54_vm0, %v3448_v27 }
  0x4c   :  { %2599 = vmatmul.mubr.msk.f32.vlgmr.msra.gmra.mrb[0].mxu1 %vm54_vm0, %v3181_v40  ;;  %v3549_v40 = vld [vmem:[%s3784_s0 + $0x120] sm:$0xff] }
  0x4d   :  { %2739 = vmatmul.mubr.msk.f32.gmra.mrb[8].mxu0 %vm54_vm0, %v3465_v33  ;;  %2841 = vmatpush3.bf16.msra.mxu1 %v3375_v14  ;;  %v2882_v14 = vpack.c.bf16 %v1836_v8, %v1835_v6 }
  0x4e   :  { %2601 = vmatprep.mubr.msk.f32.mxu1 %vm54_vm0, %v3204_v44  ;;  %2741 = vmatprep.mubr.msk.f32.mxu0 %vm54_vm0, %v3473_v34 }
  0x4f   :  { %2843 = vmatprep.subr.bf16.mxu1 %v2842_v63 }
  0x50   :  { %2602 = vmatmul.mubr.msk.f32.gmra.mrb[2].mxu1 %vm54_vm0, %v3214_v46 }
  0x51   :  { %2742 = vmatmul.mubr.msk.f32.gmra.mrb[10].mxu0 %vm54_vm0, %v3484_v39  ;;  %2604 = vmatprep.mubr.msk.f32.mxu1 %vm54_vm0, %v3238_v51 }
  0x52   :  { %2744 = vmatprep.mubr.msk.f32.mxu0 %vm54_vm0, %v3491_v41  ;;  %2845 = vmatpush3.bf16.msra.mxu1 %v2842_v63 }
  0x53   :  { %2886 = vmatprep.subr.bf16.mxu1 %v3056_v7 }
  0x54   :  { %2605 = vmatmul.mubr.msk.f32.gmra.mrb[4].mxu1 %vm54_vm0, %v3248_v53 }
  0x55   :  { %2745 = vmatmul.mubr.msk.f32.gmra.mrb[12].mxu0 %vm54_vm0, %v3507_v47  ;;  %2607 = vmatprep.mubr.msk.f32.mxu1 %vm54_vm0, %v3268_v56 }
  0x56   :  { %2747 = vmatprep.mubr.msk.f32.mxu0 %vm54_vm0, %v3549_v40 }
  0x58   :  { %2608 = vmatmul.mubr.msk.f32.gmra.mrb[6].mxu1 %vm54_vm0, %v3278_v58 }
  0x59   :  { %2748 = vmatmul.mubr.msk.f32.gmra.mrb[14].mxu0 %vm54_vm0, %v2264_v0  ;;  %2610 = vmatprep.mubr.msk.f32.mxu1 %vm54_vm0, %v449_v5 }
  0x5a   :  { %2758 = vmatprep.mubr.msk.f32.mxu0 %vm54_vm0, %v3102_v23  ;;  %v2288_v23 = vld [vmem:[%s3784_s0 + $0x91] sm:$0xff] }
  0x5c   :  { %2611 = vmatmul.mubr.msk.f32.gmra.mrb[8].mxu1 %vm54_vm0, %v3305_v62 }
  0x5d   :  { %2759 = vmatmul.mubr.msk.f32.vlgmr.msra.gmra.mrb[0].mxu0 %vm54_vm0, %v3111_v26  ;;  %2613 = vmatprep.mubr.msk.f32.mxu1 %vm54_vm0, %v3328_v2  ;;  %v2296_v26 = vld [vmem:[%s3784_s0 + $0x131] sm:$0xff] }
  0x5e   :  { %2881 = vmatpush3.bf16.msra.mxu0 %v2878_v35  ;;  %2761 = vmatprep.mubr.msk.f32.mxu0 %vm54_vm0, %v3126_v30  ;;  %v2328_v30 = vld [vmem:[%s3784_s0 + $0x132] sm:$0xff] }
  0x5f   :  { %2883 = vmatprep.subr.bf16.mxu0 %v2882_v14 }
  0x60   :  { %2614 = vmatmul.mubr.msk.f32.gmra.mrb[10].mxu1 %vm54_vm0, %v3338_v4 }
  0x61   :  { %2762 = vmatmul.mubr.msk.f32.gmra.mrb[2].mxu0 %vm54_vm0, %v3133_v31  ;;  %2616 = vmatprep.mubr.msk.f32.mxu1 %vm54_vm0, %v3363_v10 }
  0x62   :  { %2764 = vmatprep.mubr.msk.f32.mxu0 %vm54_vm0, %v3154_v36  ;;  %2885 = vmatpush3.bf16.msra.mxu0 %v2882_v14 }
  0x64   :  { %2617 = vmatmul.mubr.msk.f32.gmra.mrb[12].mxu1 %vm54_vm0, %v3373_v13 }
  0x65   :  { %2765 = vmatmul.mubr.msk.f32.gmra.mrb[4].mxu0 %vm54_vm0, %v3159_v37  ;;  %2619 = vmatprep.mubr.msk.f32.mxu1 %vm54_vm0, %v3393_v16 }
  0x66   :  { %2767 = vmatprep.mubr.msk.f32.mxu0 %vm54_vm0, %v3173_v38 }
  0x68   :  { %2620 = vmatmul.mubr.msk.f32.gmra.mrb[14].mxu1 %vm54_vm0, %v3403_v18 }
  0x69   :  { %2768 = vmatmul.mubr.msk.f32.gmra.mrb[6].mxu0 %vm54_vm0, %v2288_v23  ;;  %2630 = vmatprep.mubr.msk.f32.mxu1 %vm54_vm0, %v3321_v1 }
  0x6a   :  { %2770 = vmatprep.mubr.msk.f32.mxu0 %vm54_vm0, %v3209_v45 }
  0x6c   :  { %2631 = vmatmul.mubr.msk.f32.vlgmr.msra.gmra.mrb[0].mxu1 %vm54_vm0, %v3333_v3 }
  0x6d   :  { %2771 = vmatmul.mubr.msk.f32.gmra.mrb[8].mxu0 %vm54_vm0, %v3231_v50  ;;  %2888 = vmatpush3.bf16.msra.mxu1 %v3056_v7  ;;  %v2295_v7 = vld [vmem:[%s3784_s0 + $0x121] sm:$0xff] }
  0x6e   :  { %2633 = vmatprep.mubr.msk.f32.mxu1 %vm54_vm0, %v3354_v9  ;;  %2773 = vmatprep.mubr.msk.f32.mxu0 %vm54_vm0, %v3243_v52 }
  0x6f   :  { %2887 = vmatprep.subr.bf16.mxu1 %v3067_v12 }
  0x70   :  { %2634 = vmatmul.mubr.msk.f32.gmra.mrb[2].mxu1 %vm54_vm0, %v3368_v11 }
  0x71   :  { %2774 = vmatmul.mubr.msk.f32.gmra.mrb[10].mxu0 %vm54_vm0, %v3261_v55  ;;  %2636 = vmatprep.mubr.msk.f32.mxu1 %vm54_vm0, %v3386_v15 }
  0x72   :  { %2776 = vmatprep.mubr.msk.f32.mxu0 %vm54_vm0, %v3273_v57  ;;  %2889 = vmatpush3.bf16.msra.mxu1 %v3067_v12  ;;  %v2320_v12 = vld [vmem:[%s3784_s0 + $0x92] sm:$0xff] }
  0x74   :  { %2637 = vmatmul.mubr.msk.f32.gmra.mrb[4].mxu1 %vm54_vm0, %v3398_v17 }
  0x75   :  { %2777 = vmatmul.mubr.msk.f32.gmra.mrb[12].mxu0 %vm54_vm0, %v3290_v59  ;;  %2639 = vmatprep.mubr.msk.f32.mxu1 %vm54_vm0, %v3415_v19 }
  0x76   :  { %2779 = vmatprep.mubr.msk.f32.mxu0 %vm54_vm0, %v2295_v7 }
  0x78   :  { %2640 = vmatmul.mubr.msk.f32.gmra.mrb[6].mxu1 %vm54_vm0, %v3496_v42 }
  0x79   :  { %2780 = vmatmul.mubr.msk.f32.gmra.mrb[14].mxu0 %vm54_vm0, %v2296_v26  ;;  %2642 = vmatprep.mubr.msk.f32.mxu1 %vm54_vm0, %v3441_v25 }
  0x7a   :  { %2790 = vmatprep.mubr.msk.f32.mxu0 %vm54_vm0, %v3204_v44 }
  0x7c   :  { %2643 = vmatmul.mubr.msk.f32.gmra.mrb[8].mxu1 %vm54_vm0, %v3448_v27 }
  0x7d   :  { %2791 = vmatmul.mubr.msk.f32.vlgmr.msra.gmra.mrb[0].mxu0 %vm54_vm0, %v3214_v46  ;;  %2645 = vmatprep.mubr.msk.f32.mxu1 %vm54_vm0, %v3465_v33 }
  0x7e   :  { %2793 = vmatprep.mubr.msk.f32.mxu0 %vm54_vm0, %v3238_v51  ;;  %v3717_v51 = vld [vmem:[%s3785_s2] ss:$0 sm:$0xff] }
  0x80   :  { %2646 = vmatmul.mubr.msk.f32.gmra.mrb[10].mxu1 %vm54_vm0, %v3473_v34 }
  0x81   :  { %2794 = vmatmul.mubr.msk.f32.gmra.mrb[2].mxu0 %vm54_vm0, %v3248_v53  ;;  %2648 = vmatprep.mubr.msk.f32.mxu1 %vm54_vm0, %v3484_v39 }
  0x82   :  { %2796 = vmatprep.mubr.msk.f32.mxu0 %vm54_vm0, %v3268_v56 }
  0x84   :  { %2649 = vmatmul.mubr.msk.f32.gmra.mrb[12].mxu1 %vm54_vm0, %v3491_v41 }
  0x85   :  { %2797 = vmatmul.mubr.msk.f32.gmra.mrb[4].mxu0 %vm54_vm0, %v3278_v58  ;;  %2651 = vmatprep.mubr.msk.f32.mxu1 %vm54_vm0, %v3507_v47 }
  0x86   :  { %2799 = vmatprep.mubr.msk.f32.mxu0 %vm54_vm0, %v3297_v60 }
  0x88   :  { %2652 = vmatmul.mubr.msk.f32.gmra.mrb[14].mxu1 %vm54_vm0, %v3549_v40 }
  0x89   :  { %2800 = vmatmul.mubr.msk.f32.gmra.mrb[6].mxu0 %vm54_vm0, %v2320_v12  ;;  %2674 = vmatprep.mubr.msk.f32.mxu1 %vm54_vm0, %v3197_v43 }
  0x8a   :  { %2802 = vmatprep.mubr.msk.f32.mxu0 %vm54_vm0, %v3328_v2 }
  0x8c   :  { %2675 = vmatmul.mubr.msk.f32.vlgmr.msra.gmra.mrb[8].mxu1 %vm54_vm0, %v3209_v45 }
  0x8d   :  { %2803 = vmatmul.mubr.msk.f32.gmra.mrb[8].mxu0 %vm54_vm0, %v3338_v4  ;;  %2677 = vmatprep.mubr.msk.f32.mxu1 %vm54_vm0, %v3231_v50 }
  0x8e   :  { %2805 = vmatprep.mubr.msk.f32.mxu0 %vm54_vm0, %v3363_v10 }
  0x90   :  { %2678 = vmatmul.mubr.msk.f32.gmra.mrb[10].mxu1 %vm54_vm0, %v3243_v52 }
  0x91   :  { %2806 = vmatmul.mubr.msk.f32.gmra.mrb[10].mxu0 %vm54_vm0, %v3373_v13  ;;  %2680 = vmatprep.mubr.msk.f32.mxu1 %vm54_vm0, %v3261_v55 }
  0x92   :  { %2808 = vmatprep.mubr.msk.f32.mxu0 %vm54_vm0, %v3393_v16 }
  0x94   :  { %2681 = vmatmul.mubr.msk.f32.gmra.mrb[12].mxu1 %vm54_vm0, %v3273_v57 }
  0x95   :  { %2809 = vmatmul.mubr.msk.f32.gmra.mrb[12].mxu0 %vm54_vm0, %v3403_v18  ;;  %2683 = vmatprep.mubr.msk.f32.mxu1 %vm54_vm0, %v3290_v59 }
  0x96   :  { %2811 = vmatprep.mubr.msk.f32.mxu0 %vm54_vm0, %v3422_v20 }
  0x98   :  { %2684 = vmatmul.mubr.msk.f32.gmra.mrb[14].mxu1 %vm54_vm0, %v2295_v7 }
  0x99   :  { %2812 = vmatmul.mubr.msk.f32.gmra.mrb[14].mxu0 %vm54_vm0, %v2328_v30 }
 0x13f   :  { %v2632_v31 = vpop.f32.mrb[0].mxu1 }
 0x140   :  { %v805_v36 = vpop.f32.mrb[1].mxu1 }
 0x143   :  { %v2635_v37 = vpop.f32.mrb[2].mxu1 }
 0x144   :  { %v815_v38 = vpop.f32.mrb[3].mxu1 }
 0x147   :  { %v2638_v43 = vpop.f32.mrb[4].mxu1 }
 0x148   :  { %v825_v44 = vpop.f32.mrb[5].mxu1 }
 0x14b   :  { %v2641_v45 = vpop.f32.mrb[6].mxu1 }
 0x14c   :  { %v835_v46 = vpop.f32.mrb[7].mxu1 }
 0x150   :  { %v2792_v50 = vpop.f32.mrb[0].mxu0 }
 0x151   :  { %v2890_v52 = vadd.f32 %v2792_v50, %v2632_v31  ;;  %v1951_v53 = vpop.f32.mrb[1].mxu0 }
 0x152   :  { %v2891_v55 = vadd.f32 %v1951_v53, %v805_v36 }
 0x153   :  { %v2054_v56 = vadd.f32 %v2890_v52, %v3717_v51 }
 0x154   :  { %v2053_v57 = vadd.f32 %v2891_v55, %v3717_v51  ;;  %v2795_v58 = vpop.f32.mrb[2].mxu0 }
 0x155   :  { %v2070_v59 = vmax.f32 %v2054_v56, 0.0  ;;  %v2892_v60 = vadd.f32 %v2795_v58, %v2635_v37  ;;  %v1961_v62 = vpop.f32.mrb[3].mxu0 }
 0x156   :  { %v2069_v1 = vmax.f32 %v2053_v57, 0.0  ;;  %v2893_v2 = vadd.f32 %v1961_v62, %v815_v38 }
 0x157   :  { %2086 = vst [vmem:[%s3786_s3 + $0x8] sm:$0xff] %v2070_v59  ;;  %v2056_v3 = vadd.f32 %v2892_v60, %v3717_v51 }
 0x158   :  { %2085 = vst [vmem:[%s3786_s3] sm:$0xff] %v2069_v1  ;;  %v2055_v4 = vadd.f32 %v2893_v2, %v3717_v51  ;;  %v2798_v9 = vpop.f32.mrb[4].mxu0 }
 0x159   :  { %v2072_v10 = vmax.f32 %v2056_v3, 0.0  ;;  %v2894_v11 = vadd.f32 %v2798_v9, %v2638_v43  ;;  %v1971_v13 = vpop.f32.mrb[5].mxu0 }
 0x15a   :  { %v2071_v15 = vmax.f32 %v2055_v4, 0.0  ;;  %v2895_v16 = vadd.f32 %v1971_v13, %v825_v44 }
 0x15b   :  { %2088 = vst [vmem:[%s3786_s3 + $0x18] sm:$0xff] %v2072_v10  ;;  %v2058_v17 = vadd.f32 %v2894_v11, %v3717_v51 }
 0x15c   :  { %2087 = vst [vmem:[%s3786_s3 + $0x10] sm:$0xff] %v2071_v15  ;;  %v2057_v18 = vadd.f32 %v2895_v16, %v3717_v51  ;;  %v2801_v19 = vpop.f32.mrb[6].mxu0 }
 0x15d   :  { %v2074_v20 = vmax.f32 %v2058_v17, 0.0  ;;  %v2896_v21 = vadd.f32 %v2801_v19, %v2641_v45  ;;  %v1981_v22 = vpop.f32.mrb[7].mxu0 }
 0x15e   :  { %v2073_v24 = vmax.f32 %v2057_v18, 0.0  ;;  %v2897_v25 = vadd.f32 %v1981_v22, %v835_v46 }
 0x15f   :  { %2090 = vst [vmem:[%s3786_s3 + $0x28] sm:$0xff] %v2074_v20  ;;  %v2060_v27 = vadd.f32 %v2896_v21, %v3717_v51  ;;  %v2676_v28 = vpop.f32.mrb[8].mxu1 }
 0x160   :  { %2089 = vst [vmem:[%s3786_s3 + $0x20] sm:$0xff] %v2073_v24  ;;  %v2059_v29 = vadd.f32 %v2897_v25, %v3717_v51  ;;  %v2804_v32 = vpop.f32.mrb[8].mxu0  ;;  %v1074_v33 = vpop.f32.mrb[9].mxu1 }
 0x161   :  { %v2076_v34 = vmax.f32 %v2060_v27, 0.0  ;;  %v2898_v35 = vadd.f32 %v2804_v32, %v2676_v28  ;;  %v1991_v39 = vpop.f32.mrb[9].mxu0 }
 0x162   :  { %v2075_v41 = vmax.f32 %v2059_v29, 0.0  ;;  %v2899_v42 = vadd.f32 %v1991_v39, %v1074_v33 }
 0x163   :  { %2092 = vst [vmem:[%s3786_s3 + $0x38] sm:$0xff] %v2076_v34  ;;  %v2062_v47 = vadd.f32 %v2898_v35, %v3717_v51  ;;  %v2679_v48 = vpop.f32.mrb[10].mxu1 }
 0x164   :  { %2091 = vst [vmem:[%s3786_s3 + $0x30] sm:$0xff] %v2075_v41  ;;  %v2061_v49 = vadd.f32 %v2899_v42, %v3717_v51  ;;  %v2807_v54 = vpop.f32.mrb[10].mxu0  ;;  %v1084_v61 = vpop.f32.mrb[11].mxu1 }
 0x165   :  { %v2078_v63 = vmax.f32 %v2062_v47, 0.0  ;;  %v2900_v40 = vadd.f32 %v2807_v54, %v2679_v48  ;;  %v2001_v0 = vpop.f32.mrb[11].mxu0 }
 0x166   :  { %v2077_v5 = vmax.f32 %v2061_v49, 0.0  ;;  %v2901_v6 = vadd.f32 %v2001_v0, %v1084_v61 }
 0x167   :  { %2094 = vst [vmem:[%s3786_s3 + $0x48] sm:$0xff] %v2078_v63  ;;  %v2064_v8 = vadd.f32 %v2900_v40, %v3717_v51  ;;  %v2682_v14 = vpop.f32.mrb[12].mxu1 }
 0x168   :  { %2093 = vst [vmem:[%s3786_s3 + $0x40] sm:$0xff] %v2077_v5  ;;  %v2063_v23 = vadd.f32 %v2901_v6, %v3717_v51  ;;  %v2810_v7 = vpop.f32.mrb[12].mxu0  ;;  %v1094_v26 = vpop.f32.mrb[13].mxu1 }
 0x169   :  { %v2080_v12 = vmax.f32 %v2064_v8, 0.0  ;;  %v2902_v30 = vadd.f32 %v2810_v7, %v2682_v14  ;;  %v2011_v31 = vpop.f32.mrb[13].mxu0 }
 0x16a   :  { %v2079_v36 = vmax.f32 %v2063_v23, 0.0  ;;  %v2903_v37 = vadd.f32 %v2011_v31, %v1094_v26 }
 0x16b   :  { %2096 = vst [vmem:[%s3786_s3 + $0x58] sm:$0xff] %v2080_v12  ;;  %v2066_v38 = vadd.f32 %v2902_v30, %v3717_v51  ;;  %v2685_v43 = vpop.f32.mrb[14].mxu1 }
 0x16c   :  { %2095 = vst [vmem:[%s3786_s3 + $0x50] sm:$0xff] %v2079_v36  ;;  %v2065_v44 = vadd.f32 %v2903_v37, %v3717_v51  ;;  %v2813_v45 = vpop.f32.mrb[14].mxu0  ;;  %v1104_v46 = vpop.f32.mrb[15].mxu1 }
 0x16d   :  { %v2082_v50 = vmax.f32 %v2066_v38, 0.0  ;;  %v2904_v52 = vadd.f32 %v2813_v45, %v2685_v43  ;;  %v2021_v53 = vpop.f32.mrb[15].mxu0 }
 0x16e   :  { %v2081_v55 = vmax.f32 %v2065_v44, 0.0  ;;  %v2905_v56 = vadd.f32 %v2021_v53, %v1104_v46 }
 0x16f   :  { %2098 = vst [vmem:[%s3786_s3 + $0x68] sm:$0xff] %v2082_v50  ;;  %v2068_v57 = vadd.f32 %v2904_v52, %v3717_v51 }
 0x170   :  { %2097 = vst [vmem:[%s3786_s3 + $0x60] sm:$0xff] %v2081_v55  ;;  %v2067_v58 = vadd.f32 %v2905_v56, %v3717_v51 }
 0x171   :  { %v2084_v59 = vmax.f32 %v2068_v57, 0.0 }
 0x172   :  { %v2083_v60 = vmax.f32 %v2067_v58, 0.0 }
 0x173   :  { %2100 = vst [vmem:[%s3786_s3 + $0x78] sm:$0xff] %v2084_v59 }
 0x174   :  { %2099 = vst [vmem:[%s3786_s3 + $0x70] sm:$0xff] %v2083_v60 }

// kernel: decoder_burgess_forward.7
= control target key start
LH: loop header
LB: loop body
LE: loop exit
PB: predicated region body
PF: predicated region fallthrough
CT: control target
= control target key end

     0   :  { %s5779_s12 = smov 0   ;;  %s6893_s0 = inlined_call_operand.vmem [shape: f32[2,18,18,32], index: 0, kind: input, shape index: {}]   ;;  %s6894_s1 = inlined_call_operand.vmem [shape: f32[288,128], index: 1, kind: input, shape index: {}]   ;;  %s6895_s2 = inlined_call_operand.vmem [shape: f32[1,128], index: 2, kind: input, shape index: {}]   ;;  %s6896_s3 = inlined_call_operand.vmem [shape: f32[512,128], index: 3, kind: output, shape index: {}]  }
   0x1 LB: > { %s5785_s13 = sadd.s32 4294967295, %s5757_s12   ;;  %p3935_p0 = scmp.ge.s32.totalorder %s5757_s12, 1  ;;  %s5757_s12 = sphi %s5779_s12, %s13_s12  }
   0x2   : > { %p137_p1 = scmp.lt.s32.totalorder %s5757_s12, 3 }
   0x4   : > { %p138_p2 = pnand %p3935_p0, %p137_p1 }
   0x6   : > { %141 = sbr.rel (%p138_p2) target bundleno = 557 (0x22d), region = 32 }
   0xd   : > { %v240_v0 = vld [vmem:[%s6894_s1 + $0x20] sm:$0xff]  ;;  %v241_v1 = vld [vmem:[%s6894_s1 + $0x28] sm:$0xff]  ;;  %p161_p3 = scmp.lt.s32.totalorder %s5785_s13, 1  ;;  %v242_v5 = vld [vmem:[%s6894_s1 + $0x30] sm:$0xff]  ;;  %vm244_vm0 = vcmask 261120   ;;  %s3937_s19 = sshll.u32 %s5785_s13, 5 }
   0xe   : > { %v1698_v2 = vld [vmem:[%s6894_s1 + $0x80] sm:$0xff]  ;;  %v5282_v3 = vpack.c.bf16 %v241_v1, %v240_v0  ;;  %v1699_v4 = vld [vmem:[%s6894_s1 + $0x88] sm:$0xff]  ;;  %v243_v6 = vld [vmem:[%s6894_s1 + $0x38] sm:$0xff]  ;;  %p6814_p4 = scmp.lt.s32.totalorder %s3937_s19, 63 }
   0xf   : > { %v5808_v7 = vpack.c.bf16 %v1699_v4, %v1698_v2  ;;  %v5286_v8 = vpack.c.bf16 %v243_v6, %v242_v5  ;;  %v1700_v9 = vld [vmem:[%s6894_s1 + $0x90] sm:$0xff]  ;;  %v1701_v10 = vld [vmem:[%s6894_s1 + $0x98] sm:$0xff]  ;;  %s162_s30 = scalar_select %p161_p3, %s5785_s13, 1  ;;  %v204_v11 = vld [vmem:[%s6894_s1] sm:$0xff] }
  0x10   : > { %5283 = vmatprep.subr.bf16.mxu1 %v5282_v3  ;;  %v5820_v12 = vpack.c.bf16 %v1701_v10, %v1700_v9  ;;  %v205_v13 = vld [vmem:[%s6894_s1 + $0x8] sm:$0xff]  ;;  %v2087_v14 = vld [vmem:[%s6894_s1 + $0xa0] sm:$0xff]  ;;  %v2089_v18 = vld [vmem:[%s6894_s1 + $0xb0] sm:$0xff]  ;;  %s7022_s19 = smov (!%p6814_p4, %s3937_s19), 63 }
  0x11   : > { %v2088_v15 = vld [vmem:[%s6894_s1 + $0xa8] sm:$0xff]  ;;  %5315 = vmatprep.subr.bf16.mxu0 %v5808_v7  ;;  %5285 = vmatpush3.bf16.msra.mxu1 %v5282_v3  ;;  %s5614_s14 = smul.u32 432, %s162_s30  ;;  %v5290_v16 = vpack.c.bf16 %v205_v13, %v204_v11  ;;  %v2090_v21 = vld [vmem:[%s6894_s1 + $0xb8] sm:$0xff]  ;;  %v206_v23 = vld [vmem:[%s6894_s1 + $0x10] sm:$0xff]  ;;  %s3938_s13 = sshll.u32 %s7022_s19, 3 }
  0x12   : > { %6949 = vst [vmem:[#allocation2_spill] sm:$0xff] %v5820_v12  ;;  %5317 = vmatpush3.bf16.msra.mxu0 %v5808_v7  ;;  %5287 = vmatprep.subr.bf16.mxu1 %v5286_v8  ;;  %v5322_v17 = vpack.c.bf16 %v2088_v15, %v2087_v14  ;;  %v207_v24 = vld [vmem:[%s6894_s1 + $0x18] sm:$0xff]  ;;  %v5326_v26 = vpack.c.bf16 %v2090_v21, %v2089_v18  ;;  %v2477_v29 = vld [vmem:[%s6894_s1 + $0xc0] sm:$0xff]  ;;  %v2478_v30 = vld [vmem:[%s6894_s1 + $0xc8] sm:$0xff]  ;;  %s6835_s23 = scalar_lea.vmem %s6896_s3, %s3938_s13 }
  0x13   : > { %5319 = vmatprep.subr.bf16.mxu0 %v5820_v12  ;;  %s5837_s17 = scalar_lea.vmem %s6893_s0, %s5614_s14  ;;  %v5294_v28 = vpack.c.bf16 %v207_v24, %v206_v23  ;;  %v919_v31 = vld [vmem:[%s6894_s1 + $0x40] sm:$0xff]  ;;  %v920_v32 = vld [vmem:[%s6894_s1 + $0x48] sm:$0xff]  ;;  %v5330_v35 = vpack.c.bf16 %v2478_v30, %v2477_v29  ;;  %v2479_v49 = vld [vmem:[%s6894_s1 + $0xd0] sm:$0xff] }
  0x14   : > { %v208_v19 = vld [vmem:[%s5837_s17 + $0x1] sm:$0xff]  ;;  %v4099_v20 = vld [vmem:[%s5837_s17 + $0x19] sm:$0xff]  ;;  %v209_v22 = vld [vmem:[%s5837_s17 + $0x9] sm:$0xff]  ;;  %v5885_v36 = vpack.c.bf16 %v920_v32, %v919_v31 }
  0x15   : > { %5289 = vmatpush3.bf16.msra.mxu1 %v5286_v8  ;;  %4786 = vmatprep.mubr.msk.f32.mxu1 %vm244_vm0, %v208_v19  ;;  %v4100_v25 = vld [vmem:[%s5837_s17 + $0x21] sm:$0xff]  ;;  %v5860_v27 = vld [vmem:[%s5837_s17 + $0x31] sm:$0xff]  ;;  %v5877_v33 = vld [vmem:[%s5837_s17 + $0x39] sm:$0xff] }
  0x16   : > { %5321 = vmatpush3.bf16.msra.mxu0 %v5820_v12  ;;  %5010 = vmatprep.mubr.msk.f32.mxu0 %vm244_vm0, %v4099_v20  ;;  %v5882_v34 = vld [vmem:[%s5837_s17 + $0x49] sm:$0xff]  ;;  %v5894_v37 = vld [vmem:[%s5837_s17 + $0x51] sm:$0xff]  ;;  %v5897_v38 = vld [vmem:[%s5837_s17 + $0x61] sm:$0xff] }
  0x17   : > { %5291 = vmatprep.subr.bf16.mxu1 %v5290_v16  ;;  %5323 = vmatprep.subr.bf16.mxu0 %v5322_v17  ;;  %v5909_v39 = vld [vmem:[%s5837_s17 + $0x69] sm:$0xff]  ;;  %v5912_v40 = vld [vmem:[%s5837_s17 + $0x79] sm:$0xff]  ;;  %v5923_v41 = vld [vmem:[%s5837_s17 + $0x81] sm:$0xff] }
  0x18   : > { %4787 = vmatmul.mubr.msk.f32.vlgmr.msra.gmra.mrb[0].mxu1 %vm244_vm0, %v209_v22  ;;  %v5926_v42 = vld [vmem:[%s5837_s17 + $0x91] sm:$0xff]  ;;  %v5937_v43 = vld [vmem:[%s5837_s17 + $0x99] sm:$0xff]  ;;  %v5940_v44 = vld [vmem:[%s5837_s17 + $0xa9] sm:$0xff] }
  0x19   : > { %5011 = vmatmul.mubr.msk.f32.vlgmr.msra.gmra.mrb[0].mxu0 %vm244_vm0, %v4100_v25  ;;  %5293 = vmatpush3.bf16.msra.mxu1 %v5290_v16  ;;  %v5951_v45 = vld [vmem:[%s5837_s17 + $0xb1] sm:$0xff]  ;;  %v5954_v46 = vld [vmem:[%s5837_s17 + $0xc1] sm:$0xff]  ;;  %v5965_v47 = vld [vmem:[%s5837_s17 + $0xc9] sm:$0xff] }
  0x1a   : > { %5325 = vmatpush3.bf16.msra.mxu0 %v5322_v17  ;;  %4789 = vmatprep.mubr.msk.f32.mxu1 %vm244_vm0, %v4099_v20  ;;  %6950 = vst [vmem:[#allocation3_spill] sm:$0xff] %v5965_v47  ;;  %v5968_v48 = vld [vmem:[%s5837_s17 + $0x1a] sm:$0xff]  ;;  %v5985_v51 = vld [vmem:[%s5837_s17 + $0x22] sm:$0xff]  ;;  %v5991_v53 = vld [vmem:[%s5837_s17 + $0x32] sm:$0xff] }
  0x1b   : > { %5013 = vmatprep.mubr.msk.f32.mxu0 %vm244_vm0, %v5860_v27  ;;  %5327 = vmatprep.subr.bf16.mxu0 %v5326_v26  ;;  %v2480_v50 = vld [vmem:[%s6894_s1 + $0xd8] sm:$0xff]  ;;  %v2866_v55 = vld [vmem:[%s6894_s1 + $0xe0] sm:$0xff]  ;;  %v2867_v56 = vld [vmem:[%s6894_s1 + $0xe8] sm:$0xff] }
  0x1c   : > { %4790 = vmatmul.mubr.msk.f32.gmra.mrb[2].mxu1 %vm244_vm0, %v4100_v25  ;;  %5295 = vmatprep.subr.bf16.mxu1 %v5294_v28  ;;  %v5988_v52 = vld [vmem:[%s5837_s17 + $0xd9] sm:$0xff]  ;;  %v5334_v54 = vpack.c.bf16 %v2480_v50, %v2479_v49  ;;  %v6006_v57 = vld [vmem:[%s5837_s17 + $0xe1] sm:$0xff]  ;;  %v6014_v59 = vld [vmem:[%s5837_s17 + $0xf1] sm:$0xff]  ;;  %v6019_v61 = vpack.c.bf16 %v2867_v56, %v2866_v55 }
  0x1d   : > { %5014 = vmatmul.mubr.msk.f32.gmra.mrb[2].mxu0 %vm244_vm0, %v5877_v33  ;;  %4792 = vmatprep.mubr.msk.f32.mxu1 %vm244_vm0, %v5860_v27  ;;  %6951 = vst [vmem:[#allocation4_spill] sm:$0xff] %v5988_v52  ;;  %6952 = vst [vmem:[#allocation5_spill] sm:$0xff] %v6006_v57  ;;  %v6011_v58 = vld [vmem:[%s5837_s17 + $0x3a] sm:$0xff]  ;;  %v6017_v60 = vld [vmem:[%s5837_s17 + $0x4a] sm:$0xff] }
  0x1e   : > { %5016 = vmatprep.mubr.msk.f32.mxu0 %vm244_vm0, %v5882_v34  ;;  %5329 = vmatpush3.bf16.msra.mxu0 %v5326_v26  ;;  %6953 = vst [vmem:[#allocation6_spill] sm:$0xff] %v6014_v59  ;;  %v6028_v62 = vld [vmem:[%s5837_s17 + $0xf9] sm:$0xff]  ;;  %v6036_v0 = vld [vmem:[%s5837_s17 + $0x109] sm:$0xff]  ;;  %v6049_v2 = vld [vmem:[%s5837_s17 + $0x111] sm:$0xff] }
  0x1f   : > { %5331 = vmatprep.subr.bf16.mxu0 %v5330_v35  ;;  %5297 = vmatpush3.bf16.msra.mxu1 %v5294_v28  ;;  %6954 = vst [vmem:[#allocation7_spill] sm:$0xff] %v6028_v62  ;;  %v6033_v63 = vld [vmem:[%s5837_s17 + $0x52] sm:$0xff]  ;;  %6955 = vst [vmem:[#allocation8_spill] sm:$0xff] %v6036_v0  ;;  %v6039_v1 = vld [vmem:[%s5837_s17 + $0x62] sm:$0xff] }
  0x20   : > { %4793 = vmatmul.mubr.msk.f32.gmra.mrb[4].mxu1 %vm244_vm0, %v5877_v33  ;;  %5299 = vmatprep.subr.bf16.mxu1 %v5885_v36  ;;  %6956 = vst [vmem:[#allocation9_spill] sm:$0xff] %v6049_v2  ;;  %v6054_v3 = vld [vmem:[%s5837_s17 + $0x6a] sm:$0xff]  ;;  %v6057_v4 = vld [vmem:[%s5837_s17 + $0x121] sm:$0xff]  ;;  %v6077_v9 = vld [vmem:[%s5837_s17 + $0x139] sm:$0xff] }
  0x21   : > { %5017 = vmatmul.mubr.msk.f32.gmra.mrb[4].mxu0 %vm244_vm0, %v5894_v37  ;;  %4795 = vmatprep.mubr.msk.f32.mxu1 %vm244_vm0, %v5882_v34  ;;  %6957 = vst [vmem:[#allocation10_spill] sm:$0xff] %v6057_v4  ;;  %v6060_v5 = vld [vmem:[%s5837_s17 + $0x7a] sm:$0xff]  ;;  %v6069_v6 = vld [vmem:[%s5837_s17 + $0x129] sm:$0xff]  ;;  %6959 = vst [vmem:[#allocation12_spill] sm:$0xff] %v6077_v9 }
  0x22   : > { %5019 = vmatprep.mubr.msk.f32.mxu0 %vm244_vm0, %v5897_v38  ;;  %6958 = vst [vmem:[#allocation11_spill] sm:$0xff] %v6069_v6  ;;  %v6074_v8 = vld [vmem:[%s5837_s17 + $0x82] sm:$0xff]  ;;  %v6080_v10 = vld [vmem:[%s5837_s17 + $0x92] sm:$0xff]  ;;  %v6094_v13 = vld [vmem:[%s5837_s17 + $0x9a] sm:$0xff] }
  0x23   : > { %v6089_v11 = vld [vmem:[%s5837_s17 + $0x141] sm:$0xff]  ;;  %v6097_v14 = vld [vmem:[%s5837_s17 + $0x151] sm:$0xff]  ;;  %v6109_v16 = vld [vmem:[%s5837_s17 + $0x159] sm:$0xff] }
  0x24   : > { %4796 = vmatmul.mubr.msk.f32.gmra.mrb[6].mxu1 %vm244_vm0, %v5894_v37  ;;  %6960 = vst [vmem:[#allocation13_spill] sm:$0xff] %v6089_v11  ;;  %6961 = vst [vmem:[#allocation14_spill] sm:$0xff] %v6097_v14  ;;  %v6100_v15 = vld [vmem:[%s5837_s17 + $0xaa] sm:$0xff]  ;;  %v6114_v17 = vld [vmem:[%s5837_s17 + $0xb2] sm:$0xff] }
  0x25   : > { %5020 = vmatmul.mubr.msk.f32.gmra.mrb[6].mxu0 %vm244_vm0, %v5909_v39  ;;  %4798 = vmatprep.mubr.msk.f32.mxu1 %vm244_vm0, %v5897_v38  ;;  %6962 = vst [vmem:[#allocation15_spill] sm:$0xff] %v6109_v16  ;;  %v6117_v18 = vld [vmem:[%s5837_s17 + $0x169] sm:$0xff]  ;;  %v6129_v20 = vld [vmem:[%s5837_s17 + $0x171] sm:$0xff]  ;;  %v172_v22 = vld [vmem:[%s5837_s17] sm:$0xff] }
  0x26   : > { %5022 = vmatprep.mubr.msk.f32.mxu0 %vm244_vm0, %v5912_v40  ;;  %6963 = vst [vmem:[#allocation16_spill] sm:$0xff] %v6117_v18  ;;  %v6120_v19 = vld [vmem:[%s5837_s17 + $0xc2] sm:$0xff]  ;;  %6964 = vst [vmem:[#allocation17_spill] sm:$0xff] %v6129_v20  ;;  %v6134_v21 = vld [vmem:[%s5837_s17 + $0xca] sm:$0xff] }
  0x27   : > { %v6138_v23 = vld [vmem:[%s5837_s17 + $0xda] sm:$0xff]  ;;  %v921_v24 = vld [vmem:[%s6894_s1 + $0x50] sm:$0xff]  ;;  %v173_v26 = vld [vmem:[%s5837_s17 + $0x8] sm:$0xff] }
  0x28   : > { %4799 = vmatmul.mubr.msk.f32.gmra.mrb[8].mxu1 %vm244_vm0, %v5909_v39  ;;  %v922_v25 = vld [vmem:[%s6894_s1 + $0x58] sm:$0xff]  ;;  %v6155_v28 = vld [vmem:[%s5837_s17 + $0xe2] sm:$0xff]  ;;  %v6187_v55 = vld [vmem:[%s5837_s17 + $0x10a] sm:$0xff] }
  0x29   : > { %5023 = vmatmul.mubr.msk.f32.gmra.mrb[8].mxu0 %vm244_vm0, %v5923_v41  ;;  %4801 = vmatprep.mubr.msk.f32.mxu1 %vm244_vm0, %v5912_v40  ;;  %v6158_v29 = vld [vmem:[%s5837_s17 + $0x18] sm:$0xff]  ;;  %v5302_v31 = vpack.c.bf16 %v922_v25, %v921_v24  ;;  %v1309_v32 = vld [vmem:[%s6894_s1 + $0x60] sm:$0xff]  ;;  %v6206_v24 = vld [vmem:[%s5837_s17 + $0x48] sm:$0xff] }
  0x2a   : > { %5025 = vmatprep.mubr.msk.f32.mxu0 %vm244_vm0, %v5926_v42  ;;  %6965 = vst [vmem:[#allocation18_spill] sm:$0xff] %v6158_v29  ;;  %v6161_v30 = vld [vmem:[%s5837_s17 + $0xf2] sm:$0xff]  ;;  %v6174_v49 = vld [vmem:[%s5837_s17 + $0x20] sm:$0xff]  ;;  %6968 = vst [vmem:[#allocation21_spill] sm:$0xff] %v6206_v24 }
  0x2b   : > { %6966 = vst [vmem:[#allocation19_spill] sm:$0xff] %v6174_v49  ;;  %v6181_v50 = vld [vmem:[%s5837_s17 + $0xfa] sm:$0xff]  ;;  %v6209_v25 = vld [vmem:[%s5837_s17 + $0x122] sm:$0xff]  ;;  %v6284_v12 = vld [vmem:[%s5837_s17 + $0x172] sm:$0xff] }
  0x2c   : > { %4802 = vmatmul.mubr.msk.f32.gmra.mrb[10].mxu1 %vm244_vm0, %v5923_v41  ;;  %6976 = vst [vmem:[#allocation29_spill] sm:$0xff] %v6284_v12 }
  0x2d   : > { %5026 = vmatmul.mubr.msk.f32.gmra.mrb[10].mxu0 %vm244_vm0, %v5937_v43  ;;  %4804 = vmatprep.mubr.msk.f32.mxu1 %vm244_vm0, %v5926_v42 }
  0x2e   : > { %5028 = vmatprep.mubr.msk.f32.mxu0 %vm244_vm0, %v5940_v44 }
  0x30   : > { %4805 = vmatmul.mubr.msk.f32.gmra.mrb[12].mxu1 %vm244_vm0, %v5937_v43 }
  0x31   : > { %5029 = vmatmul.mubr.msk.f32.gmra.mrb[12].mxu0 %vm244_vm0, %v5951_v45  ;;  %4807 = vmatprep.mubr.msk.f32.mxu1 %vm244_vm0, %v5940_v44 }
  0x32   : > { %5031 = vmatprep.mubr.msk.f32.mxu0 %vm244_vm0, %v5954_v46 }
  0x34   : > { %4808 = vmatmul.mubr.msk.f32.gmra.mrb[14].mxu1 %vm244_vm0, %v5951_v45 }
  0x35   : > { %5032 = vmatmul.mubr.msk.f32.gmra.mrb[14].mxu0 %vm244_vm0, %v5965_v47  ;;  %4810 = vmatprep.mubr.msk.f32.mxu1 %vm244_vm0, %v5954_v46 }
  0x36   : > { %5066 = vmatprep.mubr.msk.f32.mxu0 %vm244_vm0, %v5968_v48 }
  0x38   : > { %4811 = vmatmul.mubr.msk.f32.gmra.mrb[16].mxu1 %vm244_vm0, %v5965_v47  ;;  %v3256_v47 = vld [vmem:[%s6894_s1 + $0x108] sm:$0xff] }
  0x39   : > { %5067 = vmatmul.mubr.msk.f32.vlgmr.msra.gmra.mrb[0].mxu0 %vm244_vm0, %v5985_v51  ;;  %4813 = vmatprep.mubr.msk.f32.mxu1 %vm244_vm0, %v5988_v52  ;;  %v6327_v52 = vld [vmem:[%s5837_s17 + $0xd8] sm:$0xff] }
  0x3a   : > { %5333 = vmatpush3.bf16.msra.mxu0 %v5330_v35  ;;  %5069 = vmatprep.mubr.msk.f32.mxu0 %vm244_vm0, %v5991_v53  ;;  %v1310_v35 = vld [vmem:[%s6894_s1 + $0x68] sm:$0xff]  ;;  %6983 = vst [vmem:[#allocation36_spill] sm:$0xff] %v6327_v52 }
  0x3b   : > { %5335 = vmatprep.subr.bf16.mxu0 %v5334_v54  ;;  %v6189_v56 = vpack.c.bf16 %v1310_v35, %v1309_v32  ;;  %v6227_v32 = vld [vmem:[%s5837_s17 + $0x60] sm:$0xff] }
  0x3c   : > { %4814 = vmatmul.mubr.msk.f32.gmra.mrb[18].mxu1 %vm244_vm0, %v6006_v57  ;;  %6969 = vst [vmem:[#allocation22_spill] sm:$0xff] %v6227_v32  ;;  %v6230_v35 = vld [vmem:[%s5837_s17 + $0x13a] sm:$0xff]  ;;  %v2868_v57 = vld [vmem:[%s6894_s1 + $0xf0] sm:$0xff] }
  0x3d   : > { %5070 = vmatmul.mubr.msk.f32.gmra.mrb[2].mxu0 %vm244_vm0, %v6011_v58  ;;  %4816 = vmatprep.mubr.msk.f32.mxu1 %vm244_vm0, %v6014_v59  ;;  %v6304_v59 = vld [vmem:[%s5837_s17 + $0x18a] sm:$0xff] }
  0x3e   : > { %5072 = vmatprep.mubr.msk.f32.mxu0 %vm244_vm0, %v6017_v60  ;;  %5337 = vmatpush3.bf16.msra.mxu0 %v5334_v54  ;;  %v6184_v54 = vld [vmem:[%s5837_s17 + $0x30] sm:$0xff]  ;;  %6980 = vst [vmem:[#allocation33_spill] sm:$0xff] %v6304_v59 }
  0x3f   : > { %5339 = vmatprep.subr.bf16.mxu0 %v6019_v61  ;;  %6967 = vst [vmem:[#allocation20_spill] sm:$0xff] %v6184_v54 }
  0x40   : > { %4817 = vmatmul.mubr.msk.f32.gmra.mrb[20].mxu1 %vm244_vm0, %v6028_v62  ;;  %v6290_v62 = vld [vmem:[%s5837_s17 + $0x182] sm:$0xff] }
  0x41   : > { %5073 = vmatmul.mubr.msk.f32.gmra.mrb[4].mxu0 %vm244_vm0, %v6033_v63  ;;  %4819 = vmatprep.mubr.msk.f32.mxu1 %vm244_vm0, %v6036_v0  ;;  %v6287_v0 = vld [vmem:[%s5837_s17 + $0xa8] sm:$0xff]  ;;  %6978 = vst [vmem:[#allocation31_spill] sm:$0xff] %v6290_v62 }
  0x42   : > { %5075 = vmatprep.mubr.msk.f32.mxu0 %vm244_vm0, %v6039_v1  ;;  %6977 = vst [vmem:[#allocation30_spill] sm:$0xff] %v6287_v0 }
  0x44   : > { %4820 = vmatmul.mubr.msk.f32.gmra.mrb[22].mxu1 %vm244_vm0, %v6049_v2  ;;  %v6279_v2 = vld [vmem:[%s5837_s17 + $0x98] sm:$0xff] }
  0x45   : > { %5076 = vmatmul.mubr.msk.f32.gmra.mrb[6].mxu0 %vm244_vm0, %v6054_v3  ;;  %4822 = vmatprep.mubr.msk.f32.mxu1 %vm244_vm0, %v6057_v4  ;;  %v6270_v4 = vld [vmem:[%s5837_s17 + $0x16a] sm:$0xff]  ;;  %6975 = vst [vmem:[#allocation28_spill] sm:$0xff] %v6279_v2 }
  0x46   : > { %5078 = vmatprep.mubr.msk.f32.mxu0 %vm244_vm0, %v6060_v5  ;;  %6974 = vst [vmem:[#allocation27_spill] sm:$0xff] %v6270_v4 }
  0x48   : > { %4823 = vmatmul.mubr.msk.f32.gmra.mrb[24].mxu1 %vm244_vm0, %v6069_v6  ;;  %v6267_v6 = vld [vmem:[%s5837_s17 + $0x90] sm:$0xff] }
  0x49   : > { %5079 = vmatmul.mubr.msk.f32.gmra.mrb[8].mxu0 %vm244_vm0, %v6074_v8  ;;  %4825 = vmatprep.mubr.msk.f32.mxu1 %vm244_vm0, %v6077_v9  ;;  %v6264_v9 = vld [vmem:[%s5837_s17 + $0x15a] sm:$0xff]  ;;  %6973 = vst [vmem:[#allocation26_spill] sm:$0xff] %v6267_v6 }
  0x4a   : > { %5081 = vmatprep.mubr.msk.f32.mxu0 %vm244_vm0, %v6080_v10 }
  0x4c   : > { %4826 = vmatmul.mubr.msk.f32.gmra.mrb[26].mxu1 %vm244_vm0, %v6089_v11  ;;  %v6259_v11 = vld [vmem:[%s5837_s17 + $0x80] sm:$0xff] }
  0x4d   : > { %5082 = vmatmul.mubr.msk.f32.gmra.mrb[10].mxu0 %vm244_vm0, %v6094_v13  ;;  %4828 = vmatprep.mubr.msk.f32.mxu1 %vm244_vm0, %v6097_v14  ;;  %v6250_v14 = vld [vmem:[%s5837_s17 + $0x152] sm:$0xff]  ;;  %6972 = vst [vmem:[#allocation25_spill] sm:$0xff] %v6259_v11 }
  0x4e   : > { %5084 = vmatprep.mubr.msk.f32.mxu0 %vm244_vm0, %v6100_v15 }
  0x50   : > { %4829 = vmatmul.mubr.msk.f32.gmra.mrb[28].mxu1 %vm244_vm0, %v6109_v16  ;;  %v6247_v16 = vld [vmem:[%s5837_s17 + $0x78] sm:$0xff] }
  0x51   : > { %5085 = vmatmul.mubr.msk.f32.gmra.mrb[12].mxu0 %vm244_vm0, %v6114_v17  ;;  %4831 = vmatprep.mubr.msk.f32.mxu1 %vm244_vm0, %v6117_v18  ;;  %v6244_v18 = vld [vmem:[%s5837_s17 + $0x142] sm:$0xff]  ;;  %6971 = vst [vmem:[#allocation24_spill] sm:$0xff] %v6247_v16 }
  0x52   : > { %5087 = vmatprep.mubr.msk.f32.mxu0 %vm244_vm0, %v6120_v19 }
  0x54   : > { %4832 = vmatmul.mubr.msk.f32.gmra.mrb[30].mxu1 %vm244_vm0, %v6129_v20  ;;  %v6239_v20 = vld [vmem:[%s5837_s17 + $0x68] sm:$0xff] }
  0x55   : > { %5088 = vmatmul.mubr.msk.f32.gmra.mrb[14].mxu0 %vm244_vm0, %v6134_v21  ;;  %4842 = vmatprep.mubr.msk.f32.mxu1 %vm244_vm0, %v172_v22  ;;  %v6203_v22 = vld [vmem:[%s5837_s17 + $0x112] sm:$0xff]  ;;  %6970 = vst [vmem:[#allocation23_spill] sm:$0xff] %v6239_v20 }
  0x56   : > { %5090 = vmatprep.mubr.msk.f32.mxu0 %vm244_vm0, %v6138_v23 }
  0x58   : > { %4843 = vmatmul.mubr.msk.f32.vlgmr.msra.gmra.mrb[0].mxu1 %vm244_vm0, %v173_v26  ;;  %v6219_v26 = vld [vmem:[%s5837_s17 + $0x50] sm:$0xff] }
  0x59   : > { %5091 = vmatmul.mubr.msk.f32.gmra.mrb[16].mxu0 %vm244_vm0, %v6155_v28  ;;  %5301 = vmatpush3.bf16.msra.mxu1 %v5885_v36  ;;  %v6198_v36 = vld [vmem:[%s5837_s17 + $0x38] sm:$0xff] }
  0x5a   : > { %4845 = vmatprep.mubr.msk.f32.mxu1 %vm244_vm0, %v6158_v29  ;;  %5093 = vmatprep.mubr.msk.f32.mxu0 %vm244_vm0, %v6161_v30  ;;  %v6307_v29 = vld [vmem:[%s5837_s17 + $0xc0] sm:$0xff] }
  0x5b   : > { %5303 = vmatprep.subr.bf16.mxu1 %v5302_v31  ;;  %6981 = vst [vmem:[#allocation34_spill] sm:$0xff] %v6307_v29 }
  0x5c   : > { %4846 = vmatmul.mubr.msk.f32.gmra.mrb[2].mxu1 %vm244_vm0, %v6174_v49  ;;  %v6299_v49 = vld [vmem:[%s5837_s17 + $0xb0] sm:$0xff] }
  0x5d   : > { %5094 = vmatmul.mubr.msk.f32.gmra.mrb[18].mxu0 %vm244_vm0, %v6181_v50  ;;  %4848 = vmatprep.mubr.msk.f32.mxu1 %vm244_vm0, %v6184_v54  ;;  %6979 = vst [vmem:[#allocation32_spill] sm:$0xff] %v6299_v49 }
  0x5e   : > { %5096 = vmatprep.mubr.msk.f32.mxu0 %vm244_vm0, %v6187_v55  ;;  %5305 = vmatpush3.bf16.msra.mxu1 %v5302_v31  ;;  %v6224_v31 = vld [vmem:[%s5837_s17 + $0x12a] sm:$0xff] }
  0x5f   : > { %5307 = vmatprep.subr.bf16.mxu1 %v6189_v56 }
  0x60   : > { %4849 = vmatmul.mubr.msk.f32.gmra.mrb[4].mxu1 %vm244_vm0, %v6198_v36 }
  0x61   : > { %5097 = vmatmul.mubr.msk.f32.gmra.mrb[20].mxu0 %vm244_vm0, %v6203_v22  ;;  %4851 = vmatprep.mubr.msk.f32.mxu1 %vm244_vm0, %v6206_v24 }
  0x62   : > { %5099 = vmatprep.mubr.msk.f32.mxu0 %vm244_vm0, %v6209_v25 }
  0x64   : > { %4852 = vmatmul.mubr.msk.f32.gmra.mrb[6].mxu1 %vm244_vm0, %v6219_v26 }
  0x65   : > { %5100 = vmatmul.mubr.msk.f32.gmra.mrb[22].mxu0 %vm244_vm0, %v6224_v31  ;;  %4854 = vmatprep.mubr.msk.f32.mxu1 %vm244_vm0, %v6227_v32 }
  0x66   : > { %5102 = vmatprep.mubr.msk.f32.mxu0 %vm244_vm0, %v6230_v35 }
  0x68   : > { %4855 = vmatmul.mubr.msk.f32.gmra.mrb[8].mxu1 %vm244_vm0, %v6239_v20 }
  0x69   : > { %5103 = vmatmul.mubr.msk.f32.gmra.mrb[24].mxu0 %vm244_vm0, %v6244_v18  ;;  %4857 = vmatprep.mubr.msk.f32.mxu1 %vm244_vm0, %v6247_v16 }
  0x6a   : > { %5105 = vmatprep.mubr.msk.f32.mxu0 %vm244_vm0, %v6250_v14 }
  0x6c   : > { %4858 = vmatmul.mubr.msk.f32.gmra.mrb[10].mxu1 %vm244_vm0, %v6259_v11 }
  0x6d   : > { %5106 = vmatmul.mubr.msk.f32.gmra.mrb[26].mxu0 %vm244_vm0, %v6264_v9  ;;  %4860 = vmatprep.mubr.msk.f32.mxu1 %vm244_vm0, %v6267_v6 }
  0x6e   : > { %5108 = vmatprep.mubr.msk.f32.mxu0 %vm244_vm0, %v6270_v4 }
  0x70   : > { %4861 = vmatmul.mubr.msk.f32.gmra.mrb[12].mxu1 %vm244_vm0, %v6279_v2 }
  0x71   : > { %5109 = vmatmul.mubr.msk.f32.gmra.mrb[28].mxu0 %vm244_vm0, %v6284_v12  ;;  %4863 = vmatprep.mubr.msk.f32.mxu1 %vm244_vm0, %v6287_v0  ;;  %v2869_v12 = vld [vmem:[%s6894_s1 + $0xf8] sm:$0xff] }
  0x72   : > { %5111 = vmatprep.mubr.msk.f32.mxu0 %vm244_vm0, %v6290_v62  ;;  %v6322_v62 = vld [vmem:[%s5837_s17 + $0xc8] sm:$0xff]  ;;  %v5342_v4 = vpack.c.bf16 %v2869_v12, %v2868_v57  ;;  %v6348_v12 = vld [vmem:[%s5837_s17 + $0xf0] sm:$0xff] }
  0x73   : > { %6982 = vst [vmem:[#allocation35_spill] sm:$0xff] %v6322_v62 }
  0x74   : > { %4864 = vmatmul.mubr.msk.f32.gmra.mrb[14].mxu1 %vm244_vm0, %v6299_v49 }
  0x75   : > { %5112 = vmatmul.mubr.msk.f32.gmra.mrb[30].mxu0 %vm244_vm0, %v6304_v59  ;;  %4866 = vmatprep.mubr.msk.f32.mxu1 %vm244_vm0, %v6307_v29  ;;  %v3255_v59 = vld [vmem:[%s6894_s1 + $0x100] sm:$0xff] }
  0x76   : > { %5122 = vmatprep.mubr.msk.f32.mxu0 %vm244_vm0, %v6184_v54  ;;  %v6342_v54 = vld [vmem:[%s5837_s17 + $0xe0] sm:$0xff]  ;;  %v6350_v57 = vpack.c.bf16 %v3256_v47, %v3255_v59  ;;  %v6374_v47 = vld [vmem:[%s5837_s17 + $0x110] sm:$0xff] }
  0x77   : > { %v6379_v59 = vld [vmem:[%s5837_s17 + $0x120] sm:$0xff] }
  0x78   : > { %4867 = vmatmul.mubr.msk.f32.gmra.mrb[16].mxu1 %vm244_vm0, %v6322_v62 }
  0x79   : > { %5123 = vmatmul.mubr.msk.f32.vlgmr.msra.gmra.mrb[0].mxu0 %vm244_vm0, %v6198_v36  ;;  %4869 = vmatprep.mubr.msk.f32.mxu1 %vm244_vm0, %v6327_v52 }
  0x7a   : > { %5341 = vmatpush3.bf16.msra.mxu0 %v6019_v61  ;;  %5125 = vmatprep.mubr.msk.f32.mxu0 %vm244_vm0, %v6206_v24  ;;  %v6359_v61 = vld [vmem:[%s5837_s17 + $0xf8] sm:$0xff]  ;;  %v6364_v24 = vld [vmem:[%s5837_s17 + $0x108] sm:$0xff] }
  0x7b   : > { %5343 = vmatprep.subr.bf16.mxu0 %v5342_v4 }
  0x7c   : > { %4870 = vmatmul.mubr.msk.f32.gmra.mrb[18].mxu1 %vm244_vm0, %v6342_v54 }
  0x7d   : > { %5126 = vmatmul.mubr.msk.f32.gmra.mrb[2].mxu0 %vm244_vm0, %v6219_v26  ;;  %4872 = vmatprep.mubr.msk.f32.mxu1 %vm244_vm0, %v6348_v12 }
  0x7e   : > { %5128 = vmatprep.mubr.msk.f32.mxu0 %vm244_vm0, %v6227_v32  ;;  %5345 = vmatpush3.bf16.msra.mxu0 %v5342_v4  ;;  %v6388_v4 = vld [vmem:[%s5837_s17 + $0x128] sm:$0xff] }
  0x7f   : > { %5347 = vmatprep.subr.bf16.mxu0 %v6350_v57  ;;  %v888_v32 = vld [vmem:[%s5837_s17 + $0xa] sm:$0xff] }
  0x80   : > { %4873 = vmatmul.mubr.msk.f32.gmra.mrb[20].mxu1 %vm244_vm0, %v6359_v61 }
  0x81   : > { %5129 = vmatmul.mubr.msk.f32.gmra.mrb[4].mxu0 %vm244_vm0, %v6239_v20  ;;  %4875 = vmatprep.mubr.msk.f32.mxu1 %vm244_vm0, %v6364_v24  ;;  %v6393_v20 = vld [vmem:[%s5837_s17 + $0x138] sm:$0xff] }
  0x82   : > { %5131 = vmatprep.mubr.msk.f32.mxu0 %vm244_vm0, %v6247_v16  ;;  %v6407_v16 = vld [vmem:[%s5837_s17 + $0x150] sm:$0xff] }
  0x84   : > { %4876 = vmatmul.mubr.msk.f32.gmra.mrb[22].mxu1 %vm244_vm0, %v6374_v47 }
  0x85   : > { %5132 = vmatmul.mubr.msk.f32.gmra.mrb[6].mxu0 %vm244_vm0, %v6259_v11  ;;  %4878 = vmatprep.mubr.msk.f32.mxu1 %vm244_vm0, %v6379_v59  ;;  %v6402_v11 = vld [vmem:[%s5837_s17 + $0x140] sm:$0xff] }
  0x86   : > { %5134 = vmatprep.mubr.msk.f32.mxu0 %vm244_vm0, %v6267_v6  ;;  %v6421_v6 = vld [vmem:[%s5837_s17 + $0x168] sm:$0xff] }
  0x88   : > { %4879 = vmatmul.mubr.msk.f32.gmra.mrb[24].mxu1 %vm244_vm0, %v6388_v4 }
  0x89   : > { %5135 = vmatmul.mubr.msk.f32.gmra.mrb[8].mxu0 %vm244_vm0, %v6279_v2  ;;  %4881 = vmatprep.mubr.msk.f32.mxu1 %vm244_vm0, %v6393_v20  ;;  %v6416_v2 = vld [vmem:[%s5837_s17 + $0x158] sm:$0xff] }
  0x8a   : > { %5137 = vmatprep.mubr.msk.f32.mxu0 %vm244_vm0, %v6287_v0  ;;  %v887_v0 = vld [vmem:[%s5837_s17 + $0x2] sm:$0xff] }
  0x8c   : > { %4882 = vmatmul.mubr.msk.f32.gmra.mrb[26].mxu1 %vm244_vm0, %v6402_v11 }
  0x8d   : > { %5138 = vmatmul.mubr.msk.f32.gmra.mrb[10].mxu0 %vm244_vm0, %v6299_v49  ;;  %4884 = vmatprep.mubr.msk.f32.mxu1 %vm244_vm0, %v6407_v16  ;;  %v6430_v49 = vld [vmem:[%s5837_s17 + $0x170] sm:$0xff] }
  0x8e   : > { %5140 = vmatprep.mubr.msk.f32.mxu0 %vm244_vm0, %v6307_v29  ;;  %v1311_v29 = vld [vmem:[%s6894_s1 + $0x70] sm:$0xff] }
  0x90   : > { %4885 = vmatmul.mubr.msk.f32.gmra.mrb[28].mxu1 %vm244_vm0, %v6416_v2 }
  0x91   : > { %5141 = vmatmul.mubr.msk.f32.gmra.mrb[12].mxu0 %vm244_vm0, %v6322_v62  ;;  %4887 = vmatprep.mubr.msk.f32.mxu1 %vm244_vm0, %v6421_v6  ;;  %v1312_v62 = vld [vmem:[%s6894_s1 + $0x78] sm:$0xff] }
  0x92   : > { %5143 = vmatprep.mubr.msk.f32.mxu0 %vm244_vm0, %v6327_v52  ;;  %v5310_v52 = vpack.c.bf16 %v1312_v62, %v1311_v29  ;;  %v4258_v62 = vld [vmem:[%s5837_s17 + $0x1a0] sm:$0xff]  ;;  %v3258_v29 = vld [vmem:[%s6894_s1 + $0x118] sm:$0xff] }
  0x94   : > { %4888 = vmatmul.mubr.msk.f32.gmra.mrb[30].mxu1 %vm244_vm0, %v6430_v49 }
  0x95   : > { %5144 = vmatmul.mubr.msk.f32.gmra.mrb[14].mxu0 %vm244_vm0, %v6342_v54  ;;  %4898 = vmatprep.mubr.msk.f32.mxu1 %vm244_vm0, %v887_v0  ;;  %v3257_v0 = vld [vmem:[%s6894_s1 + $0x110] sm:$0xff] }
  0x96   : > { %5146 = vmatprep.mubr.msk.f32.mxu0 %vm244_vm0, %v6348_v12 }
  0x98   : > { %4899 = vmatmul.mubr.msk.f32.vlgmr.msra.gmra.mrb[0].mxu1 %vm244_vm0, %v888_v32  ;;  %v6997_v32 = vld [vmem:[#allocation21_spill] sm:$0xff] }
  0x99   : > { %5147 = vmatmul.mubr.msk.f32.gmra.mrb[16].mxu0 %vm244_vm0, %v6359_v61  ;;  %5309 = vmatpush3.bf16.msra.mxu1 %v6189_v56  ;;  %v5350_v56 = vpack.c.bf16 %v3258_v29, %v3257_v0  ;;  %v7003_v0 = vld [vmem:[#allocation13_spill] sm:$0xff]  ;;  %v7004_v29 = vld [vmem:[#allocation24_spill] sm:$0xff] }
  0x9a   : > { %4901 = vmatprep.mubr.msk.f32.mxu1 %vm244_vm0, %v5968_v48  ;;  %5149 = vmatprep.mubr.msk.f32.mxu0 %vm244_vm0, %v6364_v24  ;;  %v6491_v48 = vld [vmem:[%s5837_s17 + $0x180] sm:$0xff] }
  0x9b   : > { %5311 = vmatprep.subr.bf16.mxu1 %v5310_v52 }
  0x9c   : > { %4902 = vmatmul.mubr.msk.f32.gmra.mrb[2].mxu1 %vm244_vm0, %v5985_v51  ;;  %v6502_v51 = vld [vmem:[%s5837_s17 + $0x188] sm:$0xff] }
  0x9d   : > { %5150 = vmatmul.mubr.msk.f32.gmra.mrb[18].mxu0 %vm244_vm0, %v6374_v47  ;;  %4904 = vmatprep.mubr.msk.f32.mxu1 %vm244_vm0, %v5991_v53 }
  0x9e   : > { %5152 = vmatprep.mubr.msk.f32.mxu0 %vm244_vm0, %v6379_v59  ;;  %5313 = vmatpush3.bf16.msra.mxu1 %v5310_v52  ;;  %v4257_v52 = vld [vmem:[%s5837_s17 + $0x198] sm:$0xff] }
  0x9f   : > { %5354 = vmatprep.subr.bf16.mxu1 %v5808_v7 }
  0xa0   : > { %4905 = vmatmul.mubr.msk.f32.gmra.mrb[4].mxu1 %vm244_vm0, %v6011_v58 }
  0xa1   : > { %5153 = vmatmul.mubr.msk.f32.gmra.mrb[20].mxu0 %vm244_vm0, %v6388_v4  ;;  %4907 = vmatprep.mubr.msk.f32.mxu1 %vm244_vm0, %v6017_v60 }
  0xa2   : > { %5155 = vmatprep.mubr.msk.f32.mxu0 %vm244_vm0, %v6393_v20 }
  0xa4   : > { %4908 = vmatmul.mubr.msk.f32.gmra.mrb[6].mxu1 %vm244_vm0, %v6033_v63 }
  0xa5   : > { %5156 = vmatmul.mubr.msk.f32.gmra.mrb[22].mxu0 %vm244_vm0, %v6402_v11  ;;  %4910 = vmatprep.mubr.msk.f32.mxu1 %vm244_vm0, %v6039_v1 }
  0xa6   : > { %5158 = vmatprep.mubr.msk.f32.mxu0 %vm244_vm0, %v6407_v16 }
  0xa8   : > { %4911 = vmatmul.mubr.msk.f32.gmra.mrb[8].mxu1 %vm244_vm0, %v6054_v3 }
  0xa9   : > { %5159 = vmatmul.mubr.msk.f32.gmra.mrb[24].mxu0 %vm244_vm0, %v6416_v2  ;;  %4913 = vmatprep.mubr.msk.f32.mxu1 %vm244_vm0, %v6060_v5 }
  0xaa   : > { %5161 = vmatprep.mubr.msk.f32.mxu0 %vm244_vm0, %v6421_v6 }
  0xac   : > { %4914 = vmatmul.mubr.msk.f32.gmra.mrb[10].mxu1 %vm244_vm0, %v6074_v8 }
  0xad   : > { %5162 = vmatmul.mubr.msk.f32.gmra.mrb[26].mxu0 %vm244_vm0, %v6430_v49  ;;  %4916 = vmatprep.mubr.msk.f32.mxu1 %vm244_vm0, %v6080_v10 }
  0xae   : > { %5164 = vmatprep.mubr.msk.f32.mxu0 %vm244_vm0, %v6491_v48 }
  0xb0   : > { %4917 = vmatmul.mubr.msk.f32.gmra.mrb[12].mxu1 %vm244_vm0, %v6094_v13 }
  0xb1   : > { %5165 = vmatmul.mubr.msk.f32.gmra.mrb[28].mxu0 %vm244_vm0, %v6502_v51  ;;  %4919 = vmatprep.mubr.msk.f32.mxu1 %vm244_vm0, %v6100_v15 }
  0xb2   : > { %5167 = vmatprep.mubr.msk.f32.mxu0 %vm244_vm0, %v4257_v52  ;;  %v7000_v52 = vld [vmem:[#allocation22_spill] sm:$0xff] }
  0xb4   : > { %4920 = vmatmul.mubr.msk.f32.gmra.mrb[14].mxu1 %vm244_vm0, %v6114_v17 }
  0xb5   : > { %5168 = vmatmul.mubr.msk.f32.gmra.mrb[30].mxu0 %vm244_vm0, %v4258_v62  ;;  %4922 = vmatprep.mubr.msk.f32.mxu1 %vm244_vm0, %v6120_v19  ;;  %v7002_v62 = vld [vmem:[#allocation23_spill] sm:$0xff] }
  0xb6   : > { %5178 = vmatprep.mubr.msk.f32.mxu0 %vm244_vm0, %v5860_v27  ;;  %v6984_v27 = vld [vmem:[#allocation3_spill] sm:$0xff] }
  0xb8   : > { %4923 = vmatmul.mubr.msk.f32.gmra.mrb[16].mxu1 %vm244_vm0, %v6134_v21 }
  0xb9   : > { %5179 = vmatmul.mubr.msk.f32.vlgmr.msra.gmra.mrb[0].mxu0 %vm244_vm0, %v5877_v33  ;;  %4925 = vmatprep.mubr.msk.f32.mxu1 %vm244_vm0, %v6138_v23  ;;  %v6985_v33 = vld [vmem:[#allocation27_spill] sm:$0xff] }
  0xba   : > { %5349 = vmatpush3.bf16.msra.mxu0 %v6350_v57  ;;  %5181 = vmatprep.mubr.msk.f32.mxu0 %vm244_vm0, %v5882_v34  ;;  %v6986_v34 = vld [vmem:[#allocation4_spill] sm:$0xff]  ;;  %v6998_v57 = vld [vmem:[#allocation10_spill] sm:$0xff] }
  0xbb   : > { %5351 = vmatprep.subr.bf16.mxu0 %v5350_v56 }
  0xbc   : > { %4926 = vmatmul.mubr.msk.f32.gmra.mrb[18].mxu1 %vm244_vm0, %v6155_v28 }
  0xbd   : > { %5182 = vmatmul.mubr.msk.f32.gmra.mrb[2].mxu0 %vm244_vm0, %v5894_v37  ;;  %4928 = vmatprep.mubr.msk.f32.mxu1 %vm244_vm0, %v6161_v30  ;;  %v6987_v37 = vld [vmem:[#allocation29_spill] sm:$0xff] }
  0xbe   : > { %5184 = vmatprep.mubr.msk.f32.mxu0 %vm244_vm0, %v5897_v38  ;;  %5353 = vmatpush3.bf16.msra.mxu0 %v5350_v56  ;;  %v6988_v38 = vld [vmem:[#allocation5_spill] sm:$0xff] }
  0xbf   : > { %v7006_v56 = vld [vmem:[#allocation25_spill] sm:$0xff] }
  0xc0   : > { %4929 = vmatmul.mubr.msk.f32.gmra.mrb[20].mxu1 %vm244_vm0, %v6181_v50 }
  0xc1   : > { %5185 = vmatmul.mubr.msk.f32.gmra.mrb[4].mxu0 %vm244_vm0, %v5909_v39  ;;  %4931 = vmatprep.mubr.msk.f32.mxu1 %vm244_vm0, %v6187_v55  ;;  %v6989_v39 = vld [vmem:[#allocation18_spill] sm:$0xff] }
  0xc2   : > { %5187 = vmatprep.mubr.msk.f32.mxu0 %vm244_vm0, %v5912_v40  ;;  %v6990_v40 = vld [vmem:[#allocation6_spill] sm:$0xff] }
  0xc4   : > { %4932 = vmatmul.mubr.msk.f32.gmra.mrb[22].mxu1 %vm244_vm0, %v6203_v22 }
  0xc5   : > { %5188 = vmatmul.mubr.msk.f32.gmra.mrb[6].mxu0 %vm244_vm0, %v5923_v41  ;;  %4934 = vmatprep.mubr.msk.f32.mxu1 %vm244_vm0, %v6209_v25  ;;  %v6991_v41 = vld [vmem:[#allocation19_spill] sm:$0xff] }
  0xc6   : > { %5190 = vmatprep.mubr.msk.f32.mxu0 %vm244_vm0, %v5926_v42  ;;  %v6992_v42 = vld [vmem:[#allocation7_spill] sm:$0xff] }
  0xc8   : > { %4935 = vmatmul.mubr.msk.f32.gmra.mrb[24].mxu1 %vm244_vm0, %v6224_v31 }
  0xc9   : > { %5191 = vmatmul.mubr.msk.f32.gmra.mrb[8].mxu0 %vm244_vm0, %v5937_v43  ;;  %4937 = vmatprep.mubr.msk.f32.mxu1 %vm244_vm0, %v6230_v35  ;;  %v6993_v43 = vld [vmem:[#allocation20_spill] sm:$0xff] }
  0xca   : > { %5193 = vmatprep.mubr.msk.f32.mxu0 %vm244_vm0, %v5940_v44  ;;  %v6994_v44 = vld [vmem:[#allocation8_spill] sm:$0xff] }
  0xcc   : > { %4938 = vmatmul.mubr.msk.f32.gmra.mrb[26].mxu1 %vm244_vm0, %v6244_v18 }
  0xcd   : > { %5194 = vmatmul.mubr.msk.f32.gmra.mrb[10].mxu0 %vm244_vm0, %v5951_v45  ;;  %4940 = vmatprep.mubr.msk.f32.mxu1 %vm244_vm0, %v6250_v14  ;;  %v6995_v45 = vld [vmem:[#allocation2_spill] sm:$0xff] }
  0xce   : > { %5196 = vmatprep.mubr.msk.f32.mxu0 %vm244_vm0, %v5954_v46  ;;  %v6996_v46 = vld [vmem:[#allocation9_spill] sm:$0xff] }
  0xd0   : > { %4941 = vmatmul.mubr.msk.f32.gmra.mrb[28].mxu1 %vm244_vm0, %v6264_v9 }
  0xd1   : > { %5197 = vmatmul.mubr.msk.f32.gmra.mrb[12].mxu0 %vm244_vm0, %v6984_v27  ;;  %4943 = vmatprep.mubr.msk.f32.mxu1 %vm244_vm0, %v6985_v33  ;;  %v7007_v27 = vld [vmem:[#allocation15_spill] sm:$0xff] }
  0xd2   : > { %5199 = vmatprep.mubr.msk.f32.mxu0 %vm244_vm0, %v6986_v34 }
  0xd4   : > { %4944 = vmatmul.mubr.msk.f32.gmra.mrb[30].mxu1 %vm244_vm0, %v6987_v37 }
  0xd5   : > { %5200 = vmatmul.mubr.msk.f32.gmra.mrb[14].mxu0 %vm244_vm0, %v6988_v38  ;;  %4954 = vmatprep.mubr.msk.f32.mxu1 %vm244_vm0, %v6989_v39  ;;  %v7008_v39 = vld [vmem:[#allocation26_spill] sm:$0xff] }
  0xd6   : > { %5202 = vmatprep.mubr.msk.f32.mxu0 %vm244_vm0, %v6990_v40 }
  0xd8   : > { %4955 = vmatmul.mubr.msk.f32.vlgmr.msra.gmra.mrb[0].mxu1 %vm244_vm0, %v6991_v41  ;;  %v7009_v41 = vld [vmem:[#allocation16_spill] sm:$0xff] }
  0xd9   : > { %5203 = vmatmul.mubr.msk.f32.gmra.mrb[16].mxu0 %vm244_vm0, %v6992_v42  ;;  %5356 = vmatpush3.bf16.msra.mxu1 %v5808_v7  ;;  %v6999_v7 = vld [vmem:[#allocation11_spill] sm:$0xff] }
  0xda   : > { %4957 = vmatprep.mubr.msk.f32.mxu1 %vm244_vm0, %v6993_v43  ;;  %5205 = vmatprep.mubr.msk.f32.mxu0 %vm244_vm0, %v6994_v44  ;;  %v6635_v43 = vld [vmem:[%s5837_s17 + $0x181] sm:$0xff] }
  0xdb   : > { %5355 = vmatprep.subr.bf16.mxu1 %v6995_v45 }
  0xdc   : > { %4958 = vmatmul.mubr.msk.f32.gmra.mrb[2].mxu1 %vm244_vm0, %v6198_v36  ;;  %v7001_v36 = vld [vmem:[#allocation12_spill] sm:$0xff] }
  0xdd   : > { %5206 = vmatmul.mubr.msk.f32.gmra.mrb[18].mxu0 %vm244_vm0, %v6996_v46  ;;  %4960 = vmatprep.mubr.msk.f32.mxu1 %vm244_vm0, %v6997_v32  ;;  %v7011_v32 = vld [vmem:[#allocation17_spill] sm:$0xff] }
  0xde   : > { %5208 = vmatprep.mubr.msk.f32.mxu0 %vm244_vm0, %v6998_v57  ;;  %5357 = vmatpush3.bf16.msra.mxu1 %v6995_v45  ;;  %v7010_v45 = vld [vmem:[#allocation28_spill] sm:$0xff] }
  0xe0   : > { %4961 = vmatmul.mubr.msk.f32.gmra.mrb[4].mxu1 %vm244_vm0, %v6219_v26  ;;  %v7005_v26 = vld [vmem:[#allocation14_spill] sm:$0xff] }
  0xe1   : > { %5209 = vmatmul.mubr.msk.f32.gmra.mrb[20].mxu0 %vm244_vm0, %v6999_v7  ;;  %4963 = vmatprep.mubr.msk.f32.mxu1 %vm244_vm0, %v7000_v52  ;;  %v7012_v52 = vld [vmem:[#allocation30_spill] sm:$0xff] }
  0xe2   : > { %5211 = vmatprep.mubr.msk.f32.mxu0 %vm244_vm0, %v7001_v36 }
  0xe4   : > { %4964 = vmatmul.mubr.msk.f32.gmra.mrb[6].mxu1 %vm244_vm0, %v7002_v62  ;;  %v6646_v62 = vld [vmem:[%s5837_s17 + $0x189] sm:$0xff] }
  0xe5   : > { %5212 = vmatmul.mubr.msk.f32.gmra.mrb[22].mxu0 %vm244_vm0, %v7003_v0  ;;  %4966 = vmatprep.mubr.msk.f32.mxu1 %vm244_vm0, %v7004_v29  ;;  %v4321_v29 = vld [vmem:[%s5837_s17 + $0x199] sm:$0xff] }
  0xe6   : > { %5214 = vmatprep.mubr.msk.f32.mxu0 %vm244_vm0, %v7005_v26 }
  0xe8   : > { %4967 = vmatmul.mubr.msk.f32.gmra.mrb[8].mxu1 %vm244_vm0, %v7006_v56  ;;  %v7013_v56 = vld [vmem:[#allocation32_spill] sm:$0xff] }
  0xe9   : > { %5215 = vmatmul.mubr.msk.f32.gmra.mrb[24].mxu0 %vm244_vm0, %v7007_v27  ;;  %4969 = vmatprep.mubr.msk.f32.mxu1 %vm244_vm0, %v7008_v39  ;;  %v7014_v39 = vld [vmem:[#allocation34_spill] sm:$0xff] }
  0xea   : > { %5217 = vmatprep.mubr.msk.f32.mxu0 %vm244_vm0, %v7009_v41 }
  0xec   : > { %4970 = vmatmul.mubr.msk.f32.gmra.mrb[10].mxu1 %vm244_vm0, %v7010_v45  ;;  %v4322_v45 = vld [vmem:[%s5837_s17 + $0x1a1] sm:$0xff] }
  0xed   : > { %5218 = vmatmul.mubr.msk.f32.gmra.mrb[26].mxu0 %vm244_vm0, %v7011_v32  ;;  %4972 = vmatprep.mubr.msk.f32.mxu1 %vm244_vm0, %v7012_v52  ;;  %v7015_v32 = vld [vmem:[#allocation35_spill] sm:$0xff]  ;;  %v7016_v52 = vld [vmem:[#allocation36_spill] sm:$0xff] }
  0xee   : > { %5220 = vmatprep.mubr.msk.f32.mxu0 %vm244_vm0, %v6635_v43 }
  0xf0   : > { %4973 = vmatmul.mubr.msk.f32.gmra.mrb[12].mxu1 %vm244_vm0, %v7013_v56 }
  0xf1   : > { %5221 = vmatmul.mubr.msk.f32.gmra.mrb[28].mxu0 %vm244_vm0, %v6646_v62  ;;  %4975 = vmatprep.mubr.msk.f32.mxu1 %vm244_vm0, %v7014_v39 }
  0xf2   : > { %5223 = vmatprep.mubr.msk.f32.mxu0 %vm244_vm0, %v4321_v29 }
  0xf4   : > { %4976 = vmatmul.mubr.msk.f32.gmra.mrb[14].mxu1 %vm244_vm0, %v7015_v32 }
  0xf5   : > { %5224 = vmatmul.mubr.msk.f32.gmra.mrb[30].mxu0 %vm244_vm0, %v4322_v45  ;;  %4978 = vmatprep.mubr.msk.f32.mxu1 %vm244_vm0, %v7016_v52 }
  0xf6   : > { %5234 = vmatprep.mubr.msk.f32.mxu0 %vm244_vm0, %v5991_v53  ;;  %v7017_v53 = vld [vmem:[#allocation31_spill] sm:$0xff] }
  0xf8   : > { %4979 = vmatmul.mubr.msk.f32.gmra.mrb[16].mxu1 %vm244_vm0, %v6342_v54 }
  0xf9   : > { %5235 = vmatmul.mubr.msk.f32.vlgmr.msra.gmra.mrb[0].mxu0 %vm244_vm0, %v6011_v58  ;;  %4981 = vmatprep.mubr.msk.f32.mxu1 %vm244_vm0, %v6348_v12  ;;  %v4385_v58 = vld [vmem:[%s5837_s17 + $0x19a] sm:$0xff] }
  0xfa   : > { %5237 = vmatprep.mubr.msk.f32.mxu0 %vm244_vm0, %v6017_v60  ;;  %v7018_v60 = vld [vmem:[#allocation17_spill] sm:$0xff] }
  0xfc   : > { %4982 = vmatmul.mubr.msk.f32.gmra.mrb[18].mxu1 %vm244_vm0, %v6359_v61 }
  0xfd   : > { %5238 = vmatmul.mubr.msk.f32.gmra.mrb[2].mxu0 %vm244_vm0, %v6033_v63  ;;  %4984 = vmatprep.mubr.msk.f32.mxu1 %vm244_vm0, %v6364_v24  ;;  %v7019_v63 = vld [vmem:[#allocation33_spill] sm:$0xff] }
  0xfe   : > { %5240 = vmatprep.mubr.msk.f32.mxu0 %vm244_vm0, %v6039_v1  ;;  %v4386_v1 = vld [vmem:[%s5837_s17 + $0x1a2] sm:$0xff] }
 0x100   : > { %4985 = vmatmul.mubr.msk.f32.gmra.mrb[20].mxu1 %vm244_vm0, %v6374_v47 }
 0x101   : > { %5241 = vmatmul.mubr.msk.f32.gmra.mrb[4].mxu0 %vm244_vm0, %v6054_v3  ;;  %4987 = vmatprep.mubr.msk.f32.mxu1 %vm244_vm0, %v6379_v59 }
 0x102   : > { %5243 = vmatprep.mubr.msk.f32.mxu0 %vm244_vm0, %v6060_v5 }
 0x104   : > { %4988 = vmatmul.mubr.msk.f32.gmra.mrb[22].mxu1 %vm244_vm0, %v6388_v4 }
 0x105   : > { %5244 = vmatmul.mubr.msk.f32.gmra.mrb[6].mxu0 %vm244_vm0, %v6074_v8  ;;  %4990 = vmatprep.mubr.msk.f32.mxu1 %vm244_vm0, %v6393_v20 }
 0x106   : > { %5246 = vmatprep.mubr.msk.f32.mxu0 %vm244_vm0, %v6080_v10 }
 0x108   : > { %4991 = vmatmul.mubr.msk.f32.gmra.mrb[24].mxu1 %vm244_vm0, %v6402_v11 }
 0x109   : > { %5247 = vmatmul.mubr.msk.f32.gmra.mrb[8].mxu0 %vm244_vm0, %v6094_v13  ;;  %4993 = vmatprep.mubr.msk.f32.mxu1 %vm244_vm0, %v6407_v16 }
 0x10a   : > { %5249 = vmatprep.mubr.msk.f32.mxu0 %vm244_vm0, %v6100_v15 }
 0x10c   : > { %4994 = vmatmul.mubr.msk.f32.gmra.mrb[26].mxu1 %vm244_vm0, %v6416_v2 }
 0x10d   : > { %5250 = vmatmul.mubr.msk.f32.gmra.mrb[10].mxu0 %vm244_vm0, %v6114_v17  ;;  %4996 = vmatprep.mubr.msk.f32.mxu1 %vm244_vm0, %v6421_v6 }
 0x10e   : > { %5252 = vmatprep.mubr.msk.f32.mxu0 %vm244_vm0, %v6120_v19 }
 0x110   : > { %4997 = vmatmul.mubr.msk.f32.gmra.mrb[28].mxu1 %vm244_vm0, %v6430_v49 }
 0x111   : > { %5253 = vmatmul.mubr.msk.f32.gmra.mrb[12].mxu0 %vm244_vm0, %v6134_v21  ;;  %4999 = vmatprep.mubr.msk.f32.mxu1 %vm244_vm0, %v6491_v48 }
 0x112   : > { %5255 = vmatprep.mubr.msk.f32.mxu0 %vm244_vm0, %v6138_v23  ;;  %v6803_v23 = vld [vmem:[%s6895_s2] ss:$0 sm:$0xff] }
 0x114   : > { %5000 = vmatmul.mubr.msk.f32.gmra.mrb[30].mxu1 %vm244_vm0, %v6502_v51 }
 0x115   : > { %5256 = vmatmul.mubr.msk.f32.gmra.mrb[14].mxu0 %vm244_vm0, %v6155_v28  ;;  %5034 = vmatprep.mubr.msk.f32.mxu1 %vm244_vm0, %v6986_v34 }
 0x116   : > { %5258 = vmatprep.mubr.msk.f32.mxu0 %vm244_vm0, %v6161_v30 }
 0x118   : > { %5035 = vmatmul.mubr.msk.f32.vlgmr.msra.gmra.mrb[16].mxu1 %vm244_vm0, %v6988_v38 }
 0x119   : > { %5259 = vmatmul.mubr.msk.f32.gmra.mrb[16].mxu0 %vm244_vm0, %v6181_v50  ;;  %5037 = vmatprep.mubr.msk.f32.mxu1 %vm244_vm0, %v6990_v40 }
 0x11a   : > { %5261 = vmatprep.mubr.msk.f32.mxu0 %vm244_vm0, %v6187_v55 }
 0x11c   : > { %5038 = vmatmul.mubr.msk.f32.gmra.mrb[18].mxu1 %vm244_vm0, %v6992_v42 }
 0x11d   : > { %5262 = vmatmul.mubr.msk.f32.gmra.mrb[18].mxu0 %vm244_vm0, %v6203_v22  ;;  %5040 = vmatprep.mubr.msk.f32.mxu1 %vm244_vm0, %v6994_v44 }
 0x11e   : > { %5264 = vmatprep.mubr.msk.f32.mxu0 %vm244_vm0, %v6209_v25 }
 0x120   : > { %5041 = vmatmul.mubr.msk.f32.gmra.mrb[20].mxu1 %vm244_vm0, %v6996_v46 }
 0x121   : > { %5265 = vmatmul.mubr.msk.f32.gmra.mrb[20].mxu0 %vm244_vm0, %v6224_v31  ;;  %5043 = vmatprep.mubr.msk.f32.mxu1 %vm244_vm0, %v6998_v57 }
 0x122   : > { %5267 = vmatprep.mubr.msk.f32.mxu0 %vm244_vm0, %v6230_v35 }
 0x124   : > { %5044 = vmatmul.mubr.msk.f32.gmra.mrb[22].mxu1 %vm244_vm0, %v6999_v7 }
 0x125   : > { %5268 = vmatmul.mubr.msk.f32.gmra.mrb[22].mxu0 %vm244_vm0, %v6244_v18  ;;  %5046 = vmatprep.mubr.msk.f32.mxu1 %vm244_vm0, %v7001_v36 }
 0x126   : > { %5270 = vmatprep.mubr.msk.f32.mxu0 %vm244_vm0, %v6250_v14 }
 0x128   : > { %5047 = vmatmul.mubr.msk.f32.gmra.mrb[24].mxu1 %vm244_vm0, %v7003_v0 }
 0x129   : > { %5271 = vmatmul.mubr.msk.f32.gmra.mrb[24].mxu0 %vm244_vm0, %v6264_v9  ;;  %5049 = vmatprep.mubr.msk.f32.mxu1 %vm244_vm0, %v7005_v26 }
 0x12a   : > { %5273 = vmatprep.mubr.msk.f32.mxu0 %vm244_vm0, %v6985_v33 }
 0x12c   : > { %5050 = vmatmul.mubr.msk.f32.gmra.mrb[26].mxu1 %vm244_vm0, %v7007_v27 }
 0x12d   : > { %5274 = vmatmul.mubr.msk.f32.gmra.mrb[26].mxu0 %vm244_vm0, %v6987_v37  ;;  %5052 = vmatprep.mubr.msk.f32.mxu1 %vm244_vm0, %v7009_v41 }
 0x12e   : > { %5276 = vmatprep.mubr.msk.f32.mxu0 %vm244_vm0, %v7017_v53 }
 0x130   : > { %5053 = vmatmul.mubr.msk.f32.gmra.mrb[28].mxu1 %vm244_vm0, %v7018_v60 }
 0x131   : > { %5277 = vmatmul.mubr.msk.f32.gmra.mrb[28].mxu0 %vm244_vm0, %v7019_v63  ;;  %5055 = vmatprep.mubr.msk.f32.mxu1 %vm244_vm0, %v6635_v43 }
 0x132   : > { %5279 = vmatprep.mubr.msk.f32.mxu0 %vm244_vm0, %v4385_v58 }
 0x134   : > { %5056 = vmatmul.mubr.msk.f32.gmra.mrb[30].mxu1 %vm244_vm0, %v6646_v62 }
 0x135   : > { %5280 = vmatmul.mubr.msk.f32.gmra.mrb[30].mxu0 %vm244_vm0, %v4386_v1 }
 0x1ab   : > { %v4956_v2 = vpop.f32.mrb[0].mxu1 }
 0x1ac   : > { %v1475_v3 = vpop.f32.mrb[1].mxu1 }
 0x1af   : > { %v4959_v5 = vpop.f32.mrb[2].mxu1 }
 0x1b0   : > { %v1485_v6 = vpop.f32.mrb[3].mxu1 }
 0x1b3   : > { %v4962_v8 = vpop.f32.mrb[4].mxu1 }
 0x1b4   : > { %v1495_v9 = vpop.f32.mrb[5].mxu1 }
 0x1b7   : > { %v4965_v10 = vpop.f32.mrb[6].mxu1 }
 0x1b8   : > { %v1505_v11 = vpop.f32.mrb[7].mxu1 }
 0x1bb   : > { %v4968_v13 = vpop.f32.mrb[8].mxu1 }
 0x1bc   : > { %v1515_v14 = vpop.f32.mrb[9].mxu1 }
 0x1bf   : > { %v6788_v15 = vpop.f32.mrb[10].mxu1 }
 0x1c0   : > { %v6790_v16 = vpop.f32.mrb[11].mxu1 }
 0x1c3   : > { %v6792_v17 = vpop.f32.mrb[12].mxu1 }
 0x1c4   : > { %v6794_v18 = vpop.f32.mrb[13].mxu1 }
 0x1c7   : > { %v6796_v19 = vpop.f32.mrb[14].mxu1 }
 0x1c8   : > { %v6798_v20 = vpop.f32.mrb[15].mxu1 }
 0x1cc   : > { %v5236_v21 = vpop.f32.mrb[0].mxu0 }
 0x1cd   : > { %v5358_v28 = vadd.f32 %v5236_v21, %v4956_v2  ;;  %v3421_v30 = vpop.f32.mrb[1].mxu0 }
 0x1ce   : > { %v5359_v49 = vadd.f32 %v3421_v30, %v1475_v3 }
 0x1cf   : > { %v3620_v50 = vadd.f32 %v5358_v28, %v6803_v23 }
 0x1d0   : > { %v3619_v54 = vadd.f32 %v5359_v49, %v6803_v23  ;;  %v5239_v55 = vpop.f32.mrb[2].mxu0 }
 0x1d1   : > { %v4421_v22 = vmul.f32 -1.442695, %v3620_v50  ;;  %v5360_v24 = vadd.f32 %v5239_v55, %v4959_v5  ;;  %v3431_v25 = vpop.f32.mrb[3].mxu0 }
 0x1d2   : > { %v4420_v31 = vmul.f32 -1.442695, %v3619_v54  ;;  %v5361_v35 = vadd.f32 %v3431_v25, %v1485_v6 }
 0x1d3   : > { %5623 = vpow2.f32 %v4421_v22  ;;  %v3622_v12 = vadd.f32 %v5360_v24, %v6803_v23 }
 0x1d4   : > { %5625 = vpow2.f32 %v4420_v31  ;;  %v3621_v61 = vadd.f32 %v5361_v35, %v6803_v23  ;;  %v5242_v47 = vpop.f32.mrb[4].mxu0 }
 0x1d5   : > { %v4423_v59 = vmul.f32 -1.442695, %v3622_v12  ;;  %v5362_v4 = vadd.f32 %v5242_v47, %v4962_v8  ;;  %v3441_v48 = vpop.f32.mrb[5].mxu0 }
 0x1d6   : > { %v4422_v51 = vmul.f32 -1.442695, %v3621_v61  ;;  %v5363_v33 = vadd.f32 %v3441_v48, %v1495_v9 }
 0x1d7   : > { %5627 = vpow2.f32 %v4423_v59  ;;  %v3624_v34 = vadd.f32 %v5362_v4, %v6803_v23 }
 0x1d8   : > { %5629 = vpow2.f32 %v4422_v51  ;;  %v3623_v37 = vadd.f32 %v5363_v33, %v6803_v23  ;;  %v5245_v38 = vpop.f32.mrb[6].mxu0 }
 0x1d9   : > { %v4425_v40 = vmul.f32 -1.442695, %v3624_v34  ;;  %v5364_v42 = vadd.f32 %v5245_v38, %v4965_v10  ;;  %v3451_v44 = vpop.f32.mrb[7].mxu0 }
 0x1da   : > { %v4424_v46 = vmul.f32 -1.442695, %v3623_v37  ;;  %v5365_v57 = vadd.f32 %v3451_v44, %v1505_v11 }
 0x1db   : > { %5631 = vpow2.f32 %v4425_v40  ;;  %v3626_v7 = vadd.f32 %v5364_v42, %v6803_v23 }
 0x1dc   : > { %5633 = vpow2.f32 %v4424_v46  ;;  %v3625_v36 = vadd.f32 %v5365_v57, %v6803_v23  ;;  %v5248_v0 = vpop.f32.mrb[8].mxu0 }
 0x1dd   : > { %v5624_v26 = vpop.eup %5623  ;;  %v4427_v27 = vmul.f32 -1.442695, %v3626_v7  ;;  %v5366_v41 = vadd.f32 %v5248_v0, %v4968_v13  ;;  %v3461_v43 = vpop.f32.mrb[9].mxu0 }
 0x1de   : > { %v5626_v32 = vpop.eup %5625  ;;  %v3748_v62 = vadd.f32 1.0, %v5624_v26  ;;  %v4426_v29 = vmul.f32 -1.442695, %v3625_v36  ;;  %v5367_v56 = vadd.f32 %v3461_v43, %v1515_v14 }
 0x1df   : > { %v3747_v39 = vadd.f32 1.0, %v5626_v32  ;;  %5635 = vpow2.f32 %v4427_v27  ;;  %v3628_v45 = vadd.f32 %v5366_v41, %v6803_v23 }
 0x1e0   : > { %5637 = vrcp.f32 %v3748_v62  ;;  %v3627_v52 = vadd.f32 %v5367_v56, %v6803_v23  ;;  %v5251_v53 = vpop.f32.mrb[10].mxu0 }
 0x1e1   : > { %v5628_v58 = vpop.eup %5627  ;;  %5639 = vrcp.f32 %v3747_v39  ;;  %v4429_v60 = vmul.f32 -1.442695, %v3628_v45  ;;  %v5368_v63 = vadd.f32 %v5251_v53, %v6788_v15  ;;  %v3471_v1 = vpop.f32.mrb[11].mxu0 }
 0x1e2   : > { %v5630_v2 = vpop.eup %5629  ;;  %v3750_v3 = vadd.f32 1.0, %v5628_v58  ;;  %5641 = vpow2.f32 %v4426_v29  ;;  %v4428_v5 = vmul.f32 -1.442695, %v3627_v52  ;;  %v5369_v6 = vadd.f32 %v3471_v1, %v6790_v16 }
 0x1e3   : > { %v3749_v8 = vadd.f32 1.0, %v5630_v2  ;;  %5643 = vpow2.f32 %v4429_v60  ;;  %v3630_v9 = vadd.f32 %v5368_v63, %v6803_v23 }
 0x1e4   : > { %5645 = vrcp.f32 %v3750_v3  ;;  %v3629_v10 = vadd.f32 %v5369_v6, %v6803_v23  ;;  %v5254_v11 = vpop.f32.mrb[12].mxu0 }
 0x1e5   : > { %v5632_v13 = vpop.eup %5631  ;;  %5647 = vrcp.f32 %v3749_v8  ;;  %v4431_v14 = vmul.f32 -1.442695, %v3630_v9  ;;  %v5370_v15 = vadd.f32 %v5254_v11, %v6792_v17  ;;  %v3481_v21 = vpop.f32.mrb[13].mxu0 }
 0x1e6   : > { %v5634_v28 = vpop.eup %5633  ;;  %v3752_v30 = vadd.f32 1.0, %v5632_v13  ;;  %5649 = vpow2.f32 %v4428_v5  ;;  %v4430_v49 = vmul.f32 -1.442695, %v3629_v10  ;;  %v5371_v16 = vadd.f32 %v3481_v21, %v6794_v18 }
 0x1e7   : > { %v3751_v50 = vadd.f32 1.0, %v5634_v28  ;;  %5651 = vpow2.f32 %v4431_v14  ;;  %v3632_v54 = vadd.f32 %v5370_v15, %v6803_v23 }
 0x1e8   : > { %5653 = vrcp.f32 %v3752_v30  ;;  %v3631_v17 = vadd.f32 %v5371_v16, %v6803_v23  ;;  %v5257_v55 = vpop.f32.mrb[14].mxu0 }
 0x1e9   : > { %v5636_v22 = vpop.eup %5635  ;;  %5655 = vrcp.f32 %v3751_v50  ;;  %v4433_v24 = vmul.f32 -1.442695, %v3632_v54  ;;  %v5372_v18 = vadd.f32 %v5257_v55, %v6796_v19  ;;  %v3491_v25 = vpop.f32.mrb[15].mxu0 }
 0x1ea   : > { %v5638_v31 = vpop.eup %5637  ;;  %v3754_v35 = vadd.f32 1.0, %v5636_v22  ;;  %5657 = vpow2.f32 %v4430_v49  ;;  %v4432_v12 = vmul.f32 -1.442695, %v3631_v17  ;;  %v5373_v61 = vadd.f32 %v3491_v25, %v6798_v20 }
 0x1eb   : > { %v5640_v47 = vpop.eup %5639  ;;  %3844 = vst [vmem:[%s6835_s23 + $0x8] sm:$0xff] %v5638_v31  ;;  %5659 = vpow2.f32 %v4433_v24  ;;  %v3634_v59 = vadd.f32 %v5372_v18, %v6803_v23  ;;  %v5036_v4 = vpop.f32.mrb[16].mxu1 }
 0x1ec   : > { %v5642_v48 = vpop.eup %5641  ;;  %3843 = vst [vmem:[%s6835_s23] sm:$0xff] %v5640_v47  ;;  %5661 = vrcp.f32 %v3754_v35  ;;  %v3633_v51 = vadd.f32 %v5373_v61, %v6803_v23  ;;  %v5260_v19 = vpop.f32.mrb[16].mxu0 }
 0x1ed   : > { %v1944_v33 = vpop.f32.mrb[17].mxu1  ;;  %v5644_v34 = vpop.eup %5643  ;;  %v3753_v37 = vadd.f32 1.0, %v5642_v48  ;;  %5663 = vpow2.f32 %v4432_v12  ;;  %v4435_v38 = vmul.f32 -1.442695, %v3634_v59  ;;  %v5374_v20 = vadd.f32 %v5260_v19, %v5036_v4 }
 0x1ee   : > { %v3501_v40 = vpop.f32.mrb[17].mxu0  ;;  %v5646_v42 = vpop.eup %5645  ;;  %v3756_v44 = vadd.f32 1.0, %v5644_v34  ;;  %v4434_v46 = vmul.f32 -1.442695, %v3633_v51 }
 0x1ef   : > { %v5375_v57 = vadd.f32 %v3501_v40, %v1944_v33  ;;  %v5648_v7 = vpop.eup %5647  ;;  %3846 = vst [vmem:[%s6835_s23 + $0x18] sm:$0xff] %v5646_v42  ;;  %5665 = vrcp.f32 %v3753_v37  ;;  %v3636_v36 = vadd.f32 %v5374_v20, %v6803_v23  ;;  %v5039_v0 = vpop.f32.mrb[18].mxu1 }
 0x1f0   : > { %v5650_v26 = vpop.eup %5649  ;;  %3845 = vst [vmem:[%s6835_s23 + $0x10] sm:$0xff] %v5648_v7  ;;  %5667 = vrcp.f32 %v3756_v44  ;;  %v5263_v41 = vpop.f32.mrb[18].mxu0 }
 0x1f1   : > { %v3635_v27 = vadd.f32 %v5375_v57, %v6803_v23  ;;  %v1954_v43 = vpop.f32.mrb[19].mxu1  ;;  %v5652_v32 = vpop.eup %5651  ;;  %v3755_v62 = vadd.f32 1.0, %v5650_v26  ;;  %5669 = vpow2.f32 %v4435_v38  ;;  %v4437_v29 = vmul.f32 -1.442695, %v3636_v36 }
 0x1f2   : > { %v5376_v56 = vadd.f32 %v5263_v41, %v5039_v0  ;;  %v3511_v39 = vpop.f32.mrb[19].mxu0  ;;  %v5654_v45 = vpop.eup %5653  ;;  %v3758_v52 = vadd.f32 1.0, %v5652_v32  ;;  %5671 = vpow2.f32 %v4434_v46 }
 0x1f3   : > { %v4436_v53 = vmul.f32 -1.442695, %v3635_v27  ;;  %v5377_v58 = vadd.f32 %v3511_v39, %v1954_v43  ;;  %v5656_v60 = vpop.eup %5655  ;;  %3848 = vst [vmem:[%s6835_s23 + $0x28] sm:$0xff] %v5654_v45  ;;  %5673 = vrcp.f32 %v3755_v62  ;;  %v5042_v1 = vpop.f32.mrb[20].mxu1 }
 0x1f4   : > { %v3638_v63 = vadd.f32 %v5376_v56, %v6803_v23  ;;  %v5658_v2 = vpop.eup %5657  ;;  %3847 = vst [vmem:[%s6835_s23 + $0x20] sm:$0xff] %v5656_v60  ;;  %5675 = vrcp.f32 %v3758_v52  ;;  %v5266_v5 = vpop.f32.mrb[20].mxu0 }
 0x1f5   : > { %v3637_v3 = vadd.f32 %v5377_v58, %v6803_v23  ;;  %v1964_v6 = vpop.f32.mrb[21].mxu1  ;;  %v5660_v8 = vpop.eup %5659  ;;  %v3757_v9 = vadd.f32 1.0, %v5658_v2  ;;  %5677 = vpow2.f32 %v4437_v29  ;;  %v5378_v11 = vadd.f32 %v5266_v5, %v5042_v1 }
 0x1f6   : > { %v4439_v10 = vmul.f32 -1.442695, %v3638_v63  ;;  %v3521_v13 = vpop.f32.mrb[21].mxu0  ;;  %v5662_v14 = vpop.eup %5661  ;;  %v3760_v15 = vadd.f32 1.0, %v5660_v8  ;;  %5679 = vpow2.f32 %v4436_v53 }
 0x1f7   : > { %v5379_v21 = vadd.f32 %v3521_v13, %v1964_v6  ;;  %v5664_v28 = vpop.eup %5663  ;;  %3850 = vst [vmem:[%s6835_s23 + $0x38] sm:$0xff] %v5662_v14  ;;  %5681 = vrcp.f32 %v3757_v9  ;;  %v4438_v30 = vmul.f32 -1.442695, %v3637_v3  ;;  %v3640_v49 = vadd.f32 %v5378_v11, %v6803_v23  ;;  %v5045_v16 = vpop.f32.mrb[22].mxu1 }
 0x1f8   : > { %5683 = vrcp.f32 %v3760_v15  ;;  %v3759_v50 = vadd.f32 1.0, %v5664_v28  ;;  %v5269_v17 = vpop.f32.mrb[22].mxu0  ;;  %v1974_v55 = vpop.f32.mrb[23].mxu1 }
 0x1f9   : > { %v3639_v54 = vadd.f32 %v5379_v21, %v6803_v23  ;;  %v5666_v22 = vpop.eup %5665  ;;  %5685 = vpow2.f32 %v4439_v10  ;;  %v4441_v24 = vmul.f32 -1.442695, %v3640_v49  ;;  %v5380_v18 = vadd.f32 %v5269_v17, %v5045_v16  ;;  %v3531_v25 = vpop.f32.mrb[23].mxu0 }
 0x1fa   : > { %v5668_v31 = vpop.eup %5667  ;;  %3849 = vst [vmem:[%s6835_s23 + $0x30] sm:$0xff] %v5666_v22  ;;  %5687 = vrcp.f32 %v3759_v50  ;;  %v5381_v12 = vadd.f32 %v3531_v25, %v1974_v55 }
 0x1fb   : > { %v4440_v35 = vmul.f32 -1.442695, %v3639_v54  ;;  %v5670_v61 = vpop.eup %5669  ;;  %3852 = vst [vmem:[%s6835_s23 + $0x48] sm:$0xff] %v5668_v31  ;;  %5689 = vpow2.f32 %v4438_v30  ;;  %v3642_v47 = vadd.f32 %v5380_v18, %v6803_v23  ;;  %v5048_v59 = vpop.f32.mrb[24].mxu1 }
 0x1fc   : > { %v5672_v4 = vpop.eup %5671  ;;  %v3762_v48 = vadd.f32 1.0, %v5670_v61  ;;  %5691 = vpow2.f32 %v4441_v24  ;;  %v3641_v51 = vadd.f32 %v5381_v12, %v6803_v23  ;;  %v5272_v19 = vpop.f32.mrb[24].mxu0 }
 0x1fd   : > { %v1984_v33 = vpop.f32.mrb[25].mxu1  ;;  %v5674_v34 = vpop.eup %5673  ;;  %v3761_v37 = vadd.f32 1.0, %v5672_v4  ;;  %5693 = vpow2.f32 %v4440_v35  ;;  %v4443_v38 = vmul.f32 -1.442695, %v3642_v47  ;;  %v5382_v20 = vadd.f32 %v5272_v19, %v5048_v59 }
 0x1fe   : > { %v3541_v40 = vpop.f32.mrb[25].mxu0  ;;  %v5676_v42 = vpop.eup %5675  ;;  %3851 = vst [vmem:[%s6835_s23 + $0x40] sm:$0xff] %v5674_v34  ;;  %5695 = vrcp.f32 %v3762_v48  ;;  %v4442_v44 = vmul.f32 -1.442695, %v3641_v51 }
 0x1ff   : > { %v5383_v46 = vadd.f32 %v3541_v40, %v1984_v33  ;;  %v5678_v57 = vpop.eup %5677  ;;  %3854 = vst [vmem:[%s6835_s23 + $0x58] sm:$0xff] %v5676_v42  ;;  %5697 = vrcp.f32 %v3761_v37  ;;  %v3644_v7 = vadd.f32 %v5382_v20, %v6803_v23  ;;  %v5051_v36 = vpop.f32.mrb[26].mxu1 }
 0x200   : > { %v5680_v0 = vpop.eup %5679  ;;  %v3764_v26 = vadd.f32 1.0, %v5678_v57  ;;  %5699 = vpow2.f32 %v4443_v38  ;;  %v5275_v41 = vpop.f32.mrb[26].mxu0 }
 0x201   : > { %v3643_v27 = vadd.f32 %v5383_v46, %v6803_v23  ;;  %v1994_v43 = vpop.f32.mrb[27].mxu1  ;;  %v5682_v32 = vpop.eup %5681  ;;  %v3763_v62 = vadd.f32 1.0, %v5680_v0  ;;  %5701 = vpow2.f32 %v4442_v44  ;;  %v4445_v29 = vmul.f32 -1.442695, %v3644_v7 }
 0x202   : > { %v5384_v56 = vadd.f32 %v5275_v41, %v5051_v36  ;;  %v3551_v39 = vpop.f32.mrb[27].mxu0  ;;  %v5684_v45 = vpop.eup %5683  ;;  %3853 = vst [vmem:[%s6835_s23 + $0x50] sm:$0xff] %v5682_v32  ;;  %5703 = vrcp.f32 %v3764_v26 }
 0x203   : > { %v4444_v52 = vmul.f32 -1.442695, %v3643_v27  ;;  %v5385_v53 = vadd.f32 %v3551_v39, %v1994_v43  ;;  %v5686_v58 = vpop.eup %5685  ;;  %3856 = vst [vmem:[%s6835_s23 + $0x68] sm:$0xff] %v5684_v45  ;;  %5705 = vrcp.f32 %v3763_v62  ;;  %v5054_v63 = vpop.f32.mrb[28].mxu1 }
 0x204   : > { %v3646_v60 = vadd.f32 %v5384_v56, %v6803_v23  ;;  %v5688_v1 = vpop.eup %5687  ;;  %v3766_v2 = vadd.f32 1.0, %v5686_v58  ;;  %5707 = vpow2.f32 %v4445_v29  ;;  %v5278_v5 = vpop.f32.mrb[28].mxu0 }
 0x205   : > { %v3645_v3 = vadd.f32 %v5385_v53, %v6803_v23  ;;  %v2004_v6 = vpop.f32.mrb[29].mxu1  ;;  %v5690_v8 = vpop.eup %5689  ;;  %3855 = vst [vmem:[%s6835_s23 + $0x60] sm:$0xff] %v5688_v1  ;;  %5709 = vpow2.f32 %v4444_v52  ;;  %v5386_v10 = vadd.f32 %v5278_v5, %v5054_v63 }
 0x206   : > { %v4447_v9 = vmul.f32 -1.442695, %v3646_v60  ;;  %v3561_v11 = vpop.f32.mrb[29].mxu0  ;;  %v5692_v13 = vpop.eup %5691  ;;  %5711 = vrcp.f32 %v3766_v2  ;;  %v3765_v14 = vadd.f32 1.0, %v5690_v8 }
 0x207   : > { %v5387_v15 = vadd.f32 %v3561_v11, %v2004_v6  ;;  %v5694_v21 = vpop.eup %5693  ;;  %v3768_v28 = vadd.f32 1.0, %v5692_v13  ;;  %v4446_v30 = vmul.f32 -1.442695, %v3645_v3  ;;  %v3648_v49 = vadd.f32 %v5386_v10, %v6803_v23  ;;  %v5057_v16 = vpop.f32.mrb[30].mxu1 }
 0x208   : > { %5713 = vpow2.f32 %v4447_v9  ;;  %v5696_v50 = vpop.eup %5695  ;;  %v3767_v54 = vadd.f32 1.0, %v5694_v21  ;;  %v5281_v55 = vpop.f32.mrb[30].mxu0 }
 0x209   : > { %5715 = vrcp.f32 %v3765_v14  ;;  %v3647_v17 = vadd.f32 %v5387_v15, %v6803_v23  ;;  %v2014_v22 = vpop.f32.mrb[31].mxu1  ;;  %v5698_v24 = vpop.eup %5697  ;;  %3858 = vst [vmem:[%s6835_s23 + $0x78] sm:$0xff] %v5696_v50  ;;  %v4449_v18 = vmul.f32 -1.442695, %v3648_v49  ;;  %v5388_v25 = vadd.f32 %v5281_v55, %v5057_v16 }
 0x20a   : > { %5717 = vrcp.f32 %v3768_v28  ;;  %v3571_v31 = vpop.f32.mrb[31].mxu0  ;;  %v5700_v35 = vpop.eup %5699  ;;  %3857 = vst [vmem:[%s6835_s23 + $0x70] sm:$0xff] %v5698_v24 }
 0x20b   : > { %5719 = vrcp.f32 %v3767_v54  ;;  %v5389_v12 = vadd.f32 %v3571_v31, %v2014_v22  ;;  %v5702_v61 = vpop.eup %5701  ;;  %v3770_v47 = vadd.f32 1.0, %v5700_v35  ;;  %v4448_v59 = vmul.f32 -1.442695, %v3647_v17 }
 0x20c   : > { %5721 = vpow2.f32 %v4446_v30  ;;  %v3650_v4 = vadd.f32 %v5388_v25, %v6803_v23  ;;  %v5704_v48 = vpop.eup %5703  ;;  %v3769_v51 = vadd.f32 1.0, %v5702_v61 }
 0x20d   : > { %5723 = vpow2.f32 %v4449_v18  ;;  %v3649_v19 = vadd.f32 %v5389_v12, %v6803_v23  ;;  %v5706_v33 = vpop.eup %5705  ;;  %3860 = vst [vmem:[%s6835_s23 + $0x88] sm:$0xff] %v5704_v48 }
 0x20e   : > { %5725 = vrcp.f32 %v3770_v47  ;;  %v4451_v34 = vmul.f32 -1.442695, %v3650_v4  ;;  %v5708_v37 = vpop.eup %5707  ;;  %3859 = vst [vmem:[%s6835_s23 + $0x80] sm:$0xff] %v5706_v33 }
 0x20f   : > { %5727 = vrcp.f32 %v3769_v51  ;;  %v5710_v38 = vpop.eup %5709  ;;  %v3772_v20 = vadd.f32 1.0, %v5708_v37  ;;  %v4450_v40 = vmul.f32 -1.442695, %v3649_v19 }
 0x210   : > { %5729 = vpow2.f32 %v4448_v59  ;;  %v5712_v42 = vpop.eup %5711  ;;  %v3771_v44 = vadd.f32 1.0, %v5710_v38 }
 0x211   : > { %5731 = vpow2.f32 %v4451_v34  ;;  %3862 = vst [vmem:[%s6835_s23 + $0x98] sm:$0xff] %v5712_v42 }
 0x212   : > { %v5714_v46 = vpop.eup %5713  ;;  %5733 = vrcp.f32 %v3772_v20 }
 0x213   : > { %v5716_v23 = vpop.eup %5715  ;;  %5735 = vrcp.f32 %v3771_v44  ;;  %v3774_v57 = vadd.f32 1.0, %v5714_v46 }
 0x214   : > { %v5718_v7 = vpop.eup %5717  ;;  %3861 = vst [vmem:[%s6835_s23 + $0x90] sm:$0xff] %v5716_v23  ;;  %5737 = vpow2.f32 %v4450_v40 }
 0x215   : > { %v5720_v36 = vpop.eup %5719  ;;  %3864 = vst [vmem:[%s6835_s23 + $0xa8] sm:$0xff] %v5718_v7  ;;  %5739 = vrcp.f32 %v3774_v57 }
 0x216   : > { %v5722_v0 = vpop.eup %5721  ;;  %3863 = vst [vmem:[%s6835_s23 + $0xa0] sm:$0xff] %v5720_v36 }
 0x217   : > { %v5724_v26 = vpop.eup %5723  ;;  %v3773_v27 = vadd.f32 1.0, %v5722_v0 }
 0x218   : > { %v5726_v41 = vpop.eup %5725  ;;  %v3776_v43 = vadd.f32 1.0, %v5724_v26 }
 0x219   : > { %v5728_v32 = vpop.eup %5727  ;;  %3866 = vst [vmem:[%s6835_s23 + $0xb8] sm:$0xff] %v5726_v41  ;;  %5741 = vrcp.f32 %v3773_v27 }
 0x21a   : > { %v5730_v62 = vpop.eup %5729  ;;  %3865 = vst [vmem:[%s6835_s23 + $0xb0] sm:$0xff] %v5728_v32  ;;  %5743 = vrcp.f32 %v3776_v43 }
 0x21b   : > { %v5732_v29 = vpop.eup %5731  ;;  %v3775_v56 = vadd.f32 1.0, %v5730_v62 }
 0x21c   : > { %v5734_v39 = vpop.eup %5733  ;;  %v3778_v45 = vadd.f32 1.0, %v5732_v29 }
 0x21d   : > { %v5736_v52 = vpop.eup %5735  ;;  %3868 = vst [vmem:[%s6835_s23 + $0xc8] sm:$0xff] %v5734_v39  ;;  %5745 = vrcp.f32 %v3775_v56 }
 0x21e   : > { %v5738_v53 = vpop.eup %5737  ;;  %3867 = vst [vmem:[%s6835_s23 + $0xc0] sm:$0xff] %v5736_v52  ;;  %5747 = vrcp.f32 %v3778_v45 }
 0x21f   : > { %v5740_v58 = vpop.eup %5739  ;;  %v3777_v60 = vadd.f32 1.0, %v5738_v53 }
 0x220   : > { %3870 = vst [vmem:[%s6835_s23 + $0xd8] sm:$0xff] %v5740_v58 }
 0x221   : > { %5749 = vrcp.f32 %v3777_v60 }
 0x223   : > { %v5742_v63 = vpop.eup %5741 }
 0x224   : > { %v5744_v1 = vpop.eup %5743  ;;  %3869 = vst [vmem:[%s6835_s23 + $0xd0] sm:$0xff] %v5742_v63 }
 0x225   : > { %3872 = vst [vmem:[%s6835_s23 + $0xe8] sm:$0xff] %v5744_v1 }
 0x227   : > { %v5746_v2 = vpop.eup %5745 }
 0x228   : > { %v5748_v3 = vpop.eup %5747  ;;  %3871 = vst [vmem:[%s6835_s23 + $0xe0] sm:$0xff] %v5746_v2 }
 0x229   : > { %3874 = vst [vmem:[%s6835_s23 + $0xf8] sm:$0xff] %v5748_v3 }
 0x22b   : > { %v5750_v5 = vpop.eup %5749 }
 0x22c   : > { %3873 = vst [vmem:[%s6835_s23 + $0xf0] sm:$0xff] %v5750_v5 }
 0x22d PF: > { %s13_s12 = sadd.s32 1, %s5757_s12  }
 0x22e   : > { %p10_p5 = scmp.ge.s32.totalorder %s13_s12, 4  }
 0x230   :  { %12 = sbr.rel (!%p10_p5) target bundleno = 1 (0x1), region = 64 }

</bundles_post_ra>
